<compile_context>
chip_gen: v5e
topology: v5e:2x2
jax: 0.10.0
libtpu: 0.0.40
codegen_flags: <defaults>
</compile_context>

<pallas_src>
import math

import jax
import jax.numpy as jnp
from jax import lax
from jax.experimental import pallas as pl
from jax.experimental.pallas import tpu as pltpu

EPS = 1e-5
LANE = 128
VMEM_LIMIT = 48 * 1024 * 1024


def _round_up(x, m):
    return (x + m - 1) // m * m


def _pick_tile_h(h, w):
    """Rows of output per conv tile (8 rows -> ~1024-pixel tiles at W=128)."""
    for t in (8, 4, 2, 1):
        if h % t == 0 and (t * w) % 8 == 0:
            return t
    return h


def _pick_tile_m(m, target=1024):
    """Largest divisor of m that is <= target and a multiple of 8."""
    for t in range(min(m, target), 7, -1):
        if m % t == 0 and t % 8 == 0:
            return t
    return m


# --------------------------- Pallas kernels ---------------------------------
def _make_conv_stats_kernel(tile_h, width, cin_p, cout_p):
    """Pass 1: 3x3 conv via 9 shifted MXU matmuls + per-tile BN partial sums."""
    tile_m = tile_h * width

    def kernel(xpad_ref, w_ref, b_ref, y_ref, psum_ref, pssq_ref):
        # xpad_ref : (H+2, W+2, cin_p) bf16  -- padded image of this batch elem
        # w_ref    : (9, cin_p, cout_p) bf16 -- resident weights
        # b_ref    : (1, cout_p) f32         -- conv bias
        # y_ref    : (tile_m, cout_p) f32    -- pre-BN conv output tile
        # psum_ref : (1, cout_p) f32         -- per-tile sum (BN stats)
        # pssq_ref : (1, cout_p) f32         -- per-tile sum of squares
        h0 = pl.program_id(1) * tile_h
        y_ref[...] = jnp.broadcast_to(b_ref[...], (tile_m, cout_p))
        for dy in range(3):
            for dx in range(3):
                xt = xpad_ref[pl.ds(h0 + dy, tile_h), pl.ds(dx, width), :]
                xt = xt.reshape(tile_m, cin_p)
                y_ref[...] += jnp.dot(xt, w_ref[dy * 3 + dx],
                                      preferred_element_type=jnp.float32)
        y = y_ref[...]
        psum_ref[...] = jnp.sum(y, axis=0, keepdims=True)
        pssq_ref[...] = jnp.sum(y * y, axis=0, keepdims=True)

    return kernel


def _bn_prelu_kernel(y_ref, scale_ref, shift_ref, alpha_ref, out_ref):
    """Pass 2: BN folded to one FMA + PReLU. All math in f32, lane-dense store."""
    y = y_ref[...] * scale_ref[...] + shift_ref[...]
    out_ref[...] = (y * jnp.where(y > 0, 1.0, alpha_ref[...])).astype(out_ref.dtype)


# ------------------------------ JAX glue -------------------------------------
def _conv_bn_prelu_block(x_nhwc, w_hwio, b, gamma, beta, alpha, out_dtype):
    """One Conv3x3 + BatchNorm(train) + PReLU block. Returns (N,H,W,cout_p)."""
    N, H, W, cx = x_nhwc.shape
    _, _, cin, cout = w_hwio.shape
    cin_p = _round_up(max(cx, cin), LANE)
    cout_p = _round_up(cout, LANE)

    # Input: channel-pad to a lane multiple, add 3x3 halo, cast to bf16 (the
    # MXU operand stream); accumulation stays f32 inside the kernel.
    xp = x_nhwc
    if cx < cin_p:
        xp = jnp.pad(xp, ((0, 0), (0, 0), (0, 0), (0, cin_p - cx)))
    xp = jnp.pad(xp, ((0, 0), (1, 1), (1, 1), (0, 0))).astype(jnp.bfloat16)

    # Parameters: zero-pad channels, flatten taps.
    wq = jnp.zeros((3, 3, cin_p, cout_p), jnp.float32)
    wq = wq.at[:, :, :cin, :cout].set(w_hwio.astype(jnp.float32))
    wq = wq.reshape(9, cin_p, cout_p).astype(jnp.bfloat16)
    bq = jnp.zeros((1, cout_p), jnp.float32).at[:, :cout].set(b.reshape(1, cout))
    gq = jnp.zeros((cout_p,), jnp.float32).at[:cout].set(gamma.reshape(cout))
    beq = jnp.zeros((cout_p,), jnp.float32).at[:cout].set(beta.reshape(cout))

    tile_h = _pick_tile_h(H, W)
    num_h = H // tile_h
    tile_m = tile_h * W
    M = N * H * W
    G = N * num_h  # number of conv tiles (= partial-stat rows)

    # ---------- pass 1: tiled conv + partial BN statistics ------------------
    conv_kernel = _make_conv_stats_kernel(tile_h, W, cin_p, cout_p)
    y_flat, psum, pssq = pl.pallas_call(
        conv_kernel,
        grid=(N, num_h),
        in_specs=[
            # full padded image of batch i, resident across the H-tile axis
            pl.BlockSpec((None, H + 2, W + 2, cin_p), lambda i, j: (i, 0, 0, 0)),
            pl.BlockSpec((9, cin_p, cout_p), lambda i, j: (0, 0, 0)),
            pl.BlockSpec((1, cout_p), lambda i, j: (0, 0)),
        ],
        out_specs=[
            pl.BlockSpec((tile_m, cout_p), lambda i, j: (i * num_h + j, 0)),
            pl.BlockSpec((None, 1, cout_p), lambda i, j: (i * num_h + j, 0, 0)),
            pl.BlockSpec((None, 1, cout_p), lambda i, j: (i * num_h + j, 0, 0)),
        ],
        out_shape=[
            jax.ShapeDtypeStruct((M, cout_p), jnp.float32),
            jax.ShapeDtypeStruct((G, 1, cout_p), jnp.float32),
            jax.ShapeDtypeStruct((G, 1, cout_p), jnp.float32),
        ],
        compiler_params=pltpu.CompilerParams(
            dimension_semantics=("parallel", "parallel"),
            vmem_limit_bytes=VMEM_LIMIT),
        cost_estimate=pl.CostEstimate(
            flops=2 * M * 9 * cin_p * cout_p,
            transcendentals=0,
            bytes_accessed=(N * (H + 2) * (W + 2) * cin_p * 2
                            + 9 * cin_p * cout_p * 2
                            + M * cout_p * 4)),
    )(xp, wq, bq)

    # ---------- tiny per-channel finalize (JAX): BN -> scale/shift ----------
    cnt = jnp.float32(M)
    mu = jnp.sum(psum, axis=(0, 1)) / cnt
    var = jnp.maximum(jnp.sum(pssq, axis=(0, 1)) / cnt - mu * mu, 0.0)
    inv = lax.rsqrt(var + EPS)
    scale = (gq * inv).reshape(1, cout_p)
    shift = (beq - mu * gq * inv).reshape(1, cout_p)
    alpha_vec = jnp.full((1, cout_p), alpha.reshape(-1)[0], jnp.float32)

    # ---------- pass 2: tiled normalize (1 FMA) + PReLU ----------------------
    tile_m2 = _pick_tile_m(M)
    out_flat = pl.pallas_call(
        _bn_prelu_kernel,
        grid=(M // tile_m2,),
        in_specs=[
            pl.BlockSpec((tile_m2, cout_p), lambda i: (i, 0)),
            pl.BlockSpec((1, cout_p), lambda i: (0, 0)),
            pl.BlockSpec((1, cout_p), lambda i: (0, 0)),
            pl.BlockSpec((1, cout_p), lambda i: (0, 0)),
        ],
        out_specs=pl.BlockSpec((tile_m2, cout_p), lambda i: (i, 0)),
        out_shape=jax.ShapeDtypeStruct((M, cout_p), out_dtype),
        compiler_params=pltpu.CompilerParams(
            dimension_semantics=("parallel",),
            vmem_limit_bytes=VMEM_LIMIT),
    )(y_flat, scale, shift, alpha_vec)

    return out_flat.reshape(N, H, W, cout_p)


@jax.jit
def double_conv(x_nchw, p):
    """Forward pass of DoubleConv. Input/output are NCHW float32."""
    x = jnp.transpose(x_nchw, (0, 2, 3, 1)).astype(jnp.float32)  # NCHW -> NHWC
    cout = p["w1"].shape[-1]
    # block 1: bf16 intermediate (only consumed as the MXU operand of conv 2)
    y1 = _conv_bn_prelu_block(x, p["w1"], p["b1"], p["g1"], p["be1"], p["a1"],
                              out_dtype=jnp.bfloat16)
    # block 2: f32 final output (padded channels), then slice + NCHW
    y2 = _conv_bn_prelu_block(y1, p["w2"], p["b2"], p["g2"], p["be2"], p["a2"],
                              out_dtype=jnp.float32)
    return jnp.transpose(y2[..., :cout], (0, 3, 1, 2))


# -------------------------- deterministic params ------------------------------
def init_params(key, in_ch, out_ch):
    ks = jax.random.split(key, 8)
    bound1 = 1.0 / math.sqrt(in_ch * 9)
    bound2 = 1.0 / math.sqrt(out_ch * 9)
    return dict(
        # conv weights in HWIO = (3, 3, Cin, Cout)
        w1=jax.random.uniform(ks[0], (3, 3, in_ch, out_ch), jnp.float32, -bound1, bound1),
        b1=jax.random.uniform(ks[1], (1, out_ch), jnp.float32, -bound1, bound1),
        g1=jax.random.uniform(ks[2], (1, out_ch), jnp.float32, 0.5, 1.5),
        be1=0.1 * jax.random.normal(ks[3], (1, out_ch), jnp.float32),
        a1=jnp.full((1,), 0.25, jnp.float32),     # nn.PReLU() default init
        w2=jax.random.uniform(ks[4], (3, 3, out_ch, out_ch), jnp.float32, -bound2, bound2),
        b2=jax.random.uniform(ks[5], (1, out_ch), jnp.float32, -bound2, bound2),
        g2=jax.random.uniform(ks[6], (1, out_ch), jnp.float32, 0.5, 1.5),
        be2=0.1 * jax.random.normal(ks[7], (1, out_ch), jnp.float32),
        a2=jnp.full((1,), 0.25, jnp.float32),
    )


# ------------------------------ reference ------------------------------------
def reference(x_nchw, p):
    """Plain-JAX DoubleConv forward. Conv operands are cast to bf16 (f32
    accumulation) and the inter-block activation is rounded to bf16, mirroring
    the kernel's MXU-native numerics; BN/PReLU math is f32."""
    x = jnp.transpose(x_nchw, (0, 2, 3, 1)).astype(jnp.float32)

    def block(x, w, b, g, be, a):
        y = lax.conv_general_dilated(
            x.astype(jnp.bfloat16), w.astype(jnp.bfloat16),
            window_strides=(1, 1), padding="SAME",
            dimension_numbers=("NHWC", "HWIO", "NHWC"),
            preferred_element_type=jnp.float32)
        y = y + b.reshape(1, 1, 1, -1)
        mu = jnp.mean(y, axis=(0, 1, 2), keepdims=True)
        var = jnp.mean((y - mu) ** 2, axis=(0, 1, 2), keepdims=True)
        y = (y - mu) / jnp.sqrt(var + EPS)
        y = y * g.reshape(1, 1, 1, -1) + be.reshape(1, 1, 1, -1)
        return jnp.where(y > 0, y, a[0] * y)

    y = block(x, p["w1"], p["b1"], p["g1"], p["be1"], p["a1"])
    y = y.astype(jnp.bfloat16).astype(jnp.float32)   # kernel keeps it in bf16
    z = block(y, p["w2"], p["b2"], p["g2"], p["be2"], p["a2"])
    return jnp.transpose(z, (0, 3, 1, 2))


# -------------------------------- main ---------------------------------------
if __name__ == "__main__":
    key = jax.random.PRNGKey(0)
    kx, kp = jax.random.split(key)

    in_ch, out_ch = 4, 8
    x = jax.random.normal(kx, (2, in_ch, 16, 16), jnp.float32)   # NCHW
    params = init_params(kp, in_ch, out_ch)

    out = jax.block_until_ready(double_conv(x, params))
    ref = jax.block_until_ready(reference(x, params))

    assert out.shape == (2, out_ch, 16, 16), out.shape
    max_err = float(jnp.max(jnp.abs(out - ref)))
    assert max_err < 2e-2, f"max abs err {max_err}"
    print("KERNEL_OK")
</pallas_src>

<mosaic_0001>
module attributes {stable_mosaic.version = 11 : i64} {
  func.func @kernel(%arg0: i32, %arg1: i32, %arg2: memref<1x18x18x128xbf16, #tpu.memory_space<vmem>>, %arg3: memref<9x128x128xbf16, #tpu.memory_space<vmem>>, %arg4: memref<1x128xf32, #tpu.memory_space<vmem>>, %arg5: memref<128x128xf32, #tpu.memory_space<vmem>>, %arg6: memref<1x1x128xf32, #tpu.memory_space<vmem>>, %arg7: memref<1x1x128xf32, #tpu.memory_space<vmem>>) attributes {dimension_semantics = [#tpu.dimension_semantics<parallel>, #tpu.dimension_semantics<parallel>], iteration_bounds = array<i64: 2, 2>, scalar_prefetch = 0 : i64, scratch_operands = 0 : i64, tpu.core_type = #tpu.core_type<tc>, window_params = [{transform_indices = @transform_0, window_bounds = array<i64: 1, 18, 18, 128>}, {pipeline_mode = #tpu.pipeline_mode<synchronous>, transform_indices = @transform_1, window_bounds = array<i64: 9, 128, 128>}, {pipeline_mode = #tpu.pipeline_mode<synchronous>, transform_indices = @transform_2, window_bounds = array<i64: 1, 128>}, {transform_indices = @transform_3, window_bounds = array<i64: 128, 128>}, {transform_indices = @transform_4, window_bounds = array<i64: 1, 1, 128>}, {transform_indices = @transform_5, window_bounds = array<i64: 1, 1, 128>}]} {
    %c8_i32 = arith.constant 8 : i32
    %0 = arith.muli %arg1, %c8_i32 : i32
    %c0 = arith.constant 0 : index
    %c0_0 = arith.constant 0 : index
    %1 = vector.load %arg4[%c0, %c0_0] : memref<1x128xf32, #tpu.memory_space<vmem>>, vector<1x128xf32>
    %2 = vector.shape_cast %1 : vector<1x128xf32> to vector<1x128xf32>
    %3 = vector.broadcast %2 : vector<1x128xf32> to vector<128x128xf32>
    %c0_1 = arith.constant 0 : index
    %c0_2 = arith.constant 0 : index
    %4 = vector.load %arg5[%c0_1, %c0_2] : memref<128x128xf32, #tpu.memory_space<vmem>>, vector<128x128xf32>
    tpu.vector_store %arg5[%c0_1, %c0_2], %3 {strides = array<i32>} : memref<128x128xf32, #tpu.memory_space<vmem>>, vector<128x128xf32>,
    %c0_i32 = arith.constant 0 : i32
    %5 = arith.addi %0, %c0_i32 : i32
    %c0_3 = arith.constant 0 : index
    %6 = arith.index_cast %5 : i32 to index
    %c0_4 = arith.constant 0 : index
    %c0_5 = arith.constant 0 : index
    %7 = vector.load %arg2[%c0_3, %6, %c0_4, %c0_5] : memref<1x18x18x128xbf16, #tpu.memory_space<vmem>>, vector<1x8x16x128xbf16>
    %8 = vector.shape_cast %7 : vector<1x8x16x128xbf16> to vector<8x16x128xbf16>
    %9 = vector.shape_cast %8 : vector<8x16x128xbf16> to vector<128x128xbf16>
    %c0_6 = arith.constant 0 : index
    %c0_7 = arith.constant 0 : index
    %10 = vector.load %arg5[%c0_6, %c0_7] : memref<128x128xf32, #tpu.memory_space<vmem>>, vector<128x128xf32>
    %c0_8 = arith.constant 0 : index
    %c0_9 = arith.constant 0 : index
    %c0_10 = arith.constant 0 : index
    %11 = vector.load %arg3[%c0_8, %c0_9, %c0_10] : memref<9x128x128xbf16, #tpu.memory_space<vmem>>, vector<1x128x128xbf16>
    %12 = vector.shape_cast %11 : vector<1x128x128xbf16> to vector<128x128xbf16>
    %cst = arith.constant dense<0.000000e+00> : vector<128x128xf32>
    %13 = tpu.matmul %9, %12, %cst {dimension_numbers = #tpu.dot_dimension_numbers<[1], [0], [0], [1], [0, 0, 1, 1], [], []>} : vector<128x128xbf16>, vector<128x128xbf16>, vector<128x128xf32> -> vector<128x128xf32>
    %14 = arith.addf %10, %13 : vector<128x128xf32>
    %c0_11 = arith.constant 0 : index
    %c0_12 = arith.constant 0 : index
    %15 = vector.load %arg5[%c0_11, %c0_12] : memref<128x128xf32, #tpu.memory_space<vmem>>, vector<128x128xf32>
    tpu.vector_store %arg5[%c0_11, %c0_12], %14 {strides = array<i32>} : memref<128x128xf32, #tpu.memory_space<vmem>>, vector<128x128xf32>,
    %c0_i32_13 = arith.constant 0 : i32
    %16 = arith.addi %0, %c0_i32_13 : i32
    %c0_14 = arith.constant 0 : index
    %17 = arith.index_cast %16 : i32 to index
    %c1 = arith.constant 1 : index
    %c0_15 = arith.constant 0 : index
    %18 = vector.load %arg2[%c0_14, %17, %c1, %c0_15] : memref<1x18x18x128xbf16, #tpu.memory_space<vmem>>, vector<1x8x16x128xbf16>
    %19 = vector.shape_cast %18 : vector<1x8x16x128xbf16> to vector<8x16x128xbf16>
    %20 = vector.shape_cast %19 : vector<8x16x128xbf16> to vector<128x128xbf16>
    %c0_16 = arith.constant 0 : index
    %c0_17 = arith.constant 0 : index
    %21 = vector.load %arg5[%c0_16, %c0_17] : memref<128x128xf32, #tpu.memory_space<vmem>>, vector<128x128xf32>
    %c1_18 = arith.constant 1 : index
    %c0_19 = arith.constant 0 : index
    %c0_20 = arith.constant 0 : index
    %22 = vector.load %arg3[%c1_18, %c0_19, %c0_20] : memref<9x128x128xbf16, #tpu.memory_space<vmem>>, vector<1x128x128xbf16>
    %23 = vector.shape_cast %22 : vector<1x128x128xbf16> to vector<128x128xbf16>
    %cst_21 = arith.constant dense<0.000000e+00> : vector<128x128xf32>
    %24 = tpu.matmul %20, %23, %cst_21 {dimension_numbers = #tpu.dot_dimension_numbers<[1], [0], [0], [1], [0, 0, 1, 1], [], []>} : vector<128x128xbf16>, vector<128x128xbf16>, vector<128x128xf32> -> vector<128x128xf32>
    %25 = arith.addf %21, %24 : vector<128x128xf32>
    %c0_22 = arith.constant 0 : index
    %c0_23 = arith.constant 0 : index
    %26 = vector.load %arg5[%c0_22, %c0_23] : memref<128x128xf32, #tpu.memory_space<vmem>>, vector<128x128xf32>
    tpu.vector_store %arg5[%c0_22, %c0_23], %25 {strides = array<i32>} : memref<128x128xf32, #tpu.memory_space<vmem>>, vector<128x128xf32>,
    %c0_i32_24 = arith.constant 0 : i32
    %27 = arith.addi %0, %c0_i32_24 : i32
    %c0_25 = arith.constant 0 : index
    %28 = arith.index_cast %27 : i32 to index
    %c2 = arith.constant 2 : index
    %c0_26 = arith.constant 0 : index
    %29 = vector.load %arg2[%c0_25, %28, %c2, %c0_26] : memref<1x18x18x128xbf16, #tpu.memory_space<vmem>>, vector<1x8x16x128xbf16>
    %30 = vector.shape_cast %29 : vector<1x8x16x128xbf16> to vector<8x16x128xbf16>
    %31 = vector.shape_cast %30 : vector<8x16x128xbf16> to vector<128x128xbf16>
    %c0_27 = arith.constant 0 : index
    %c0_28 = arith.constant 0 : index
    %32 = vector.load %arg5[%c0_27, %c0_28] : memref<128x128xf32, #tpu.memory_space<vmem>>, vector<128x128xf32>
    %c2_29 = arith.constant 2 : index
    %c0_30 = arith.constant 0 : index
    %c0_31 = arith.constant 0 : index
    %33 = vector.load %arg3[%c2_29, %c0_30, %c0_31] : memref<9x128x128xbf16, #tpu.memory_space<vmem>>, vector<1x128x128xbf16>
    %34 = vector.shape_cast %33 : vector<1x128x128xbf16> to vector<128x128xbf16>
    %cst_32 = arith.constant dense<0.000000e+00> : vector<128x128xf32>
    %35 = tpu.matmul %31, %34, %cst_32 {dimension_numbers = #tpu.dot_dimension_numbers<[1], [0], [0], [1], [0, 0, 1, 1], [], []>} : vector<128x128xbf16>, vector<128x128xbf16>, vector<128x128xf32> -> vector<128x128xf32>
    %36 = arith.addf %32, %35 : vector<128x128xf32>
    %c0_33 = arith.constant 0 : index
    %c0_34 = arith.constant 0 : index
    %37 = vector.load %arg5[%c0_33, %c0_34] : memref<128x128xf32, #tpu.memory_space<vmem>>, vector<128x128xf32>
    tpu.vector_store %arg5[%c0_33, %c0_34], %36 {strides = array<i32>} : memref<128x128xf32, #tpu.memory_space<vmem>>, vector<128x128xf32>,
    %c1_i32 = arith.constant 1 : i32
    %38 = arith.addi %0, %c1_i32 : i32
    %c0_35 = arith.constant 0 : index
    %39 = arith.index_cast %38 : i32 to index
    %c0_36 = arith.constant 0 : index
    %c0_37 = arith.constant 0 : index
    %40 = vector.load %arg2[%c0_35, %39, %c0_36, %c0_37] : memref<1x18x18x128xbf16, #tpu.memory_space<vmem>>, vector<1x8x16x128xbf16>
    %41 = vector.shape_cast %40 : vector<1x8x16x128xbf16> to vector<8x16x128xbf16>
    %42 = vector.shape_cast %41 : vector<8x16x128xbf16> to vector<128x128xbf16>
    %c0_38 = arith.constant 0 : index
    %c0_39 = arith.constant 0 : index
    %43 = vector.load %arg5[%c0_38, %c0_39] : memref<128x128xf32, #tpu.memory_space<vmem>>, vector<128x128xf32>
    %c3 = arith.constant 3 : index
    %c0_40 = arith.constant 0 : index
    %c0_41 = arith.constant 0 : index
    %44 = vector.load %arg3[%c3, %c0_40, %c0_41] : memref<9x128x128xbf16, #tpu.memory_space<vmem>>, vector<1x128x128xbf16>
    %45 = vector.shape_cast %44 : vector<1x128x128xbf16> to vector<128x128xbf16>
    %cst_42 = arith.constant dense<0.000000e+00> : vector<128x128xf32>
    %46 = tpu.matmul %42, %45, %cst_42 {dimension_numbers = #tpu.dot_dimension_numbers<[1], [0], [0], [1], [0, 0, 1, 1], [], []>} : vector<128x128xbf16>, vector<128x128xbf16>, vector<128x128xf32> -> vector<128x128xf32>
    %47 = arith.addf %43, %46 : vector<128x128xf32>
    %c0_43 = arith.constant 0 : index
    %c0_44 = arith.constant 0 : index
    %48 = vector.load %arg5[%c0_43, %c0_44] : memref<128x128xf32, #tpu.memory_space<vmem>>, vector<128x128xf32>
    tpu.vector_store %arg5[%c0_43, %c0_44], %47 {strides = array<i32>} : memref<128x128xf32, #tpu.memory_space<vmem>>, vector<128x128xf32>,
    %c1_i32_45 = arith.constant 1 : i32
    %49 = arith.addi %0, %c1_i32_45 : i32
    %c0_46 = arith.constant 0 : index
    %50 = arith.index_cast %49 : i32 to index
    %c1_47 = arith.constant 1 : index
    %c0_48 = arith.constant 0 : index
    %51 = vector.load %arg2[%c0_46, %50, %c1_47, %c0_48] : memref<1x18x18x128xbf16, #tpu.memory_space<vmem>>, vector<1x8x16x128xbf16>
    %52 = vector.shape_cast %51 : vector<1x8x16x128xbf16> to vector<8x16x128xbf16>
    %53 = vector.shape_cast %52 : vector<8x16x128xbf16> to vector<128x128xbf16>
    %c0_49 = arith.constant 0 : index
    %c0_50 = arith.constant 0 : index
    %54 = vector.load %arg5[%c0_49, %c0_50] : memref<128x128xf32, #tpu.memory_space<vmem>>, vector<128x128xf32>
    %c4 = arith.constant 4 : index
    %c0_51 = arith.constant 0 : index
    %c0_52 = arith.constant 0 : index
    %55 = vector.load %arg3[%c4, %c0_51, %c0_52] : memref<9x128x128xbf16, #tpu.memory_space<vmem>>, vector<1x128x128xbf16>
    %56 = vector.shape_cast %55 : vector<1x128x128xbf16> to vector<128x128xbf16>
    %cst_53 = arith.constant dense<0.000000e+00> : vector<128x128xf32>
    %57 = tpu.matmul %53, %56, %cst_53 {dimension_numbers = #tpu.dot_dimension_numbers<[1], [0], [0], [1], [0, 0, 1, 1], [], []>} : vector<128x128xbf16>, vector<128x128xbf16>, vector<128x128xf32> -> vector<128x128xf32>
    %58 = arith.addf %54, %57 : vector<128x128xf32>
    %c0_54 = arith.constant 0 : index
    %c0_55 = arith.constant 0 : index
    %59 = vector.load %arg5[%c0_54, %c0_55] : memref<128x128xf32, #tpu.memory_space<vmem>>, vector<128x128xf32>
    tpu.vector_store %arg5[%c0_54, %c0_55], %58 {strides = array<i32>} : memref<128x128xf32, #tpu.memory_space<vmem>>, vector<128x128xf32>,
    %c1_i32_56 = arith.constant 1 : i32
    %60 = arith.addi %0, %c1_i32_56 : i32
    %c0_57 = arith.constant 0 : index
    %61 = arith.index_cast %60 : i32 to index
    %c2_58 = arith.constant 2 : index
    %c0_59 = arith.constant 0 : index
    %62 = vector.load %arg2[%c0_57, %61, %c2_58, %c0_59] : memref<1x18x18x128xbf16, #tpu.memory_space<vmem>>, vector<1x8x16x128xbf16>
    %63 = vector.shape_cast %62 : vector<1x8x16x128xbf16> to vector<8x16x128xbf16>
    %64 = vector.shape_cast %63 : vector<8x16x128xbf16> to vector<128x128xbf16>
    %c0_60 = arith.constant 0 : index
    %c0_61 = arith.constant 0 : index
    %65 = vector.load %arg5[%c0_60, %c0_61] : memref<128x128xf32, #tpu.memory_space<vmem>>, vector<128x128xf32>
    %c5 = arith.constant 5 : index
    %c0_62 = arith.constant 0 : index
    %c0_63 = arith.constant 0 : index
    %66 = vector.load %arg3[%c5, %c0_62, %c0_63] : memref<9x128x128xbf16, #tpu.memory_space<vmem>>, vector<1x128x128xbf16>
    %67 = vector.shape_cast %66 : vector<1x128x128xbf16> to vector<128x128xbf16>
    %cst_64 = arith.constant dense<0.000000e+00> : vector<128x128xf32>
    %68 = tpu.matmul %64, %67, %cst_64 {dimension_numbers = #tpu.dot_dimension_numbers<[1], [0], [0], [1], [0, 0, 1, 1], [], []>} : vector<128x128xbf16>, vector<128x128xbf16>, vector<128x128xf32> -> vector<128x128xf32>
    %69 = arith.addf %65, %68 : vector<128x128xf32>
    %c0_65 = arith.constant 0 : index
    %c0_66 = arith.constant 0 : index
    %70 = vector.load %arg5[%c0_65, %c0_66] : memref<128x128xf32, #tpu.memory_space<vmem>>, vector<128x128xf32>
    tpu.vector_store %arg5[%c0_65, %c0_66], %69 {strides = array<i32>} : memref<128x128xf32, #tpu.memory_space<vmem>>, vector<128x128xf32>,
    %c2_i32 = arith.constant 2 : i32
    %71 = arith.addi %0, %c2_i32 : i32
    %c0_67 = arith.constant 0 : index
    %72 = arith.index_cast %71 : i32 to index
    %c0_68 = arith.constant 0 : index
    %c0_69 = arith.constant 0 : index
    %73 = vector.load %arg2[%c0_67, %72, %c0_68, %c0_69] : memref<1x18x18x128xbf16, #tpu.memory_space<vmem>>, vector<1x8x16x128xbf16>
    %74 = vector.shape_cast %73 : vector<1x8x16x128xbf16> to vector<8x16x128xbf16>
    %75 = vector.shape_cast %74 : vector<8x16x128xbf16> to vector<128x128xbf16>
    %c0_70 = arith.constant 0 : index
    %c0_71 = arith.constant 0 : index
    %76 = vector.load %arg5[%c0_70, %c0_71] : memref<128x128xf32, #tpu.memory_space<vmem>>, vector<128x128xf32>
    %c6 = arith.constant 6 : index
    %c0_72 = arith.constant 0 : index
    %c0_73 = arith.constant 0 : index
    %77 = vector.load %arg3[%c6, %c0_72, %c0_73] : memref<9x128x128xbf16, #tpu.memory_space<vmem>>, vector<1x128x128xbf16>
    %78 = vector.shape_cast %77 : vector<1x128x128xbf16> to vector<128x128xbf16>
    %cst_74 = arith.constant dense<0.000000e+00> : vector<128x128xf32>
    %79 = tpu.matmul %75, %78, %cst_74 {dimension_numbers = #tpu.dot_dimension_numbers<[1], [0], [0], [1], [0, 0, 1, 1], [], []>} : vector<128x128xbf16>, vector<128x128xbf16>, vector<128x128xf32> -> vector<128x128xf32>
    %80 = arith.addf %76, %79 : vector<128x128xf32>
    %c0_75 = arith.constant 0 : index
    %c0_76 = arith.constant 0 : index
    %81 = vector.load %arg5[%c0_75, %c0_76] : memref<128x128xf32, #tpu.memory_space<vmem>>, vector<128x128xf32>
    tpu.vector_store %arg5[%c0_75, %c0_76], %80 {strides = array<i32>} : memref<128x128xf32, #tpu.memory_space<vmem>>, vector<128x128xf32>,
    %c2_i32_77 = arith.constant 2 : i32
    %82 = arith.addi %0, %c2_i32_77 : i32
    %c0_78 = arith.constant 0 : index
    %83 = arith.index_cast %82 : i32 to index
    %c1_79 = arith.constant 1 : index
    %c0_80 = arith.constant 0 : index
    %84 = vector.load %arg2[%c0_78, %83, %c1_79, %c0_80] : memref<1x18x18x128xbf16, #tpu.memory_space<vmem>>, vector<1x8x16x128xbf16>
    %85 = vector.shape_cast %84 : vector<1x8x16x128xbf16> to vector<8x16x128xbf16>
    %86 = vector.shape_cast %85 : vector<8x16x128xbf16> to vector<128x128xbf16>
    %c0_81 = arith.constant 0 : index
    %c0_82 = arith.constant 0 : index
    %87 = vector.load %arg5[%c0_81, %c0_82] : memref<128x128xf32, #tpu.memory_space<vmem>>, vector<128x128xf32>
    %c7 = arith.constant 7 : index
    %c0_83 = arith.constant 0 : index
    %c0_84 = arith.constant 0 : index
    %88 = vector.load %arg3[%c7, %c0_83, %c0_84] : memref<9x128x128xbf16, #tpu.memory_space<vmem>>, vector<1x128x128xbf16>
    %89 = vector.shape_cast %88 : vector<1x128x128xbf16> to vector<128x128xbf16>
    %cst_85 = arith.constant dense<0.000000e+00> : vector<128x128xf32>
    %90 = tpu.matmul %86, %89, %cst_85 {dimension_numbers = #tpu.dot_dimension_numbers<[1], [0], [0], [1], [0, 0, 1, 1], [], []>} : vector<128x128xbf16>, vector<128x128xbf16>, vector<128x128xf32> -> vector<128x128xf32>
    %91 = arith.addf %87, %90 : vector<128x128xf32>
    %c0_86 = arith.constant 0 : index
    %c0_87 = arith.constant 0 : index
    %92 = vector.load %arg5[%c0_86, %c0_87] : memref<128x128xf32, #tpu.memory_space<vmem>>, vector<128x128xf32>
    tpu.vector_store %arg5[%c0_86, %c0_87], %91 {strides = array<i32>} : memref<128x128xf32, #tpu.memory_space<vmem>>, vector<128x128xf32>,
    %c2_i32_88 = arith.constant 2 : i32
    %93 = arith.addi %0, %c2_i32_88 : i32
    %c0_89 = arith.constant 0 : index
    %94 = arith.index_cast %93 : i32 to index
    %c2_90 = arith.constant 2 : index
    %c0_91 = arith.constant 0 : index
    %95 = vector.load %arg2[%c0_89, %94, %c2_90, %c0_91] : memref<1x18x18x128xbf16, #tpu.memory_space<vmem>>, vector<1x8x16x128xbf16>
    %96 = vector.shape_cast %95 : vector<1x8x16x128xbf16> to vector<8x16x128xbf16>
    %97 = vector.shape_cast %96 : vector<8x16x128xbf16> to vector<128x128xbf16>
    %c0_92 = arith.constant 0 : index
    %c0_93 = arith.constant 0 : index
    %98 = vector.load %arg5[%c0_92, %c0_93] : memref<128x128xf32, #tpu.memory_space<vmem>>, vector<128x128xf32>
    %c8 = arith.constant 8 : index
    %c0_94 = arith.constant 0 : index
    %c0_95 = arith.constant 0 : index
    %99 = vector.load %arg3[%c8, %c0_94, %c0_95] : memref<9x128x128xbf16, #tpu.memory_space<vmem>>, vector<1x128x128xbf16>
    %100 = vector.shape_cast %99 : vector<1x128x128xbf16> to vector<128x128xbf16>
    %cst_96 = arith.constant dense<0.000000e+00> : vector<128x128xf32>
    %101 = tpu.matmul %97, %100, %cst_96 {dimension_numbers = #tpu.dot_dimension_numbers<[1], [0], [0], [1], [0, 0, 1, 1], [], []>} : vector<128x128xbf16>, vector<128x128xbf16>, vector<128x128xf32> -> vector<128x128xf32>
    %102 = arith.addf %98, %101 : vector<128x128xf32>
    %c0_97 = arith.constant 0 : index
    %c0_98 = arith.constant 0 : index
    %103 = vector.load %arg5[%c0_97, %c0_98] : memref<128x128xf32, #tpu.memory_space<vmem>>, vector<128x128xf32>
    tpu.vector_store %arg5[%c0_97, %c0_98], %102 {strides = array<i32>} : memref<128x128xf32, #tpu.memory_space<vmem>>, vector<128x128xf32>,
    %c0_99 = arith.constant 0 : index
    %c0_100 = arith.constant 0 : index
    %104 = vector.load %arg5[%c0_99, %c0_100] : memref<128x128xf32, #tpu.memory_space<vmem>>, vector<128x128xf32>
    %cst_101 = arith.constant dense<0.000000e+00> : vector<128xf32>
    %105 = vector.multi_reduction <add>, %104, %cst_101 [0] : vector<128x128xf32> to vector<128xf32>
    %106 = vector.shape_cast %105 : vector<128xf32> to vector<1x128xf32>
    %c0_102 = arith.constant 0 : index
    %c0_103 = arith.constant 0 : index
    %c0_104 = arith.constant 0 : index
    %107 = vector.load %arg6[%c0_102, %c0_103, %c0_104] : memref<1x1x128xf32, #tpu.memory_space<vmem>>, vector<1x1x128xf32>
    %108 = vector.shape_cast %107 : vector<1x1x128xf32> to vector<1x128xf32>
    %109 = vector.shape_cast %106 : vector<1x128xf32> to vector<1x1x128xf32>
    tpu.vector_store %arg6[%c0_102, %c0_103, %c0_104], %109 {strides = array<i32>} : memref<1x1x128xf32, #tpu.memory_space<vmem>>, vector<1x1x128xf32>,
    %110 = arith.mulf %104, %104 : vector<128x128xf32>
    %cst_105 = arith.constant dense<0.000000e+00> : vector<128xf32>
    %111 = vector.multi_reduction <add>, %110, %cst_105 [0] : vector<128x128xf32> to vector<128xf32>
    %112 = vector.shape_cast %111 : vector<128xf32> to vector<1x128xf32>
    %c0_106 = arith.constant 0 : index
    %c0_107 = arith.constant 0 : index
    %c0_108 = arith.constant 0 : index
    %113 = vector.load %arg7[%c0_106, %c0_107, %c0_108] : memref<1x1x128xf32, #tpu.memory_space<vmem>>, vector<1x1x128xf32>
    %114 = vector.shape_cast %113 : vector<1x1x128xf32> to vector<1x128xf32>
    %115 = vector.shape_cast %112 : vector<1x128xf32> to vector<1x1x128xf32>
    tpu.vector_store %arg7[%c0_106, %c0_107, %c0_108], %115 {strides = array<i32>} : memref<1x1x128xf32, #tpu.memory_space<vmem>>, vector<1x1x128xf32>,
    return
  }
  func.func @transform_0(%arg0: i32, %arg1: i32) -> (i32, i32, i32, i32) {
    %c0_i32 = arith.constant 0 : i32
    %c0_i32_0 = arith.constant 0 : i32
    %c0_i32_1 = arith.constant 0 : i32
    %c0_i32_2 = arith.constant 0 : i32
    return %arg0, %c0_i32, %c0_i32_0, %c0_i32_1 : i32, i32, i32, i32
  }
  func.func @transform_1(%arg0: i32, %arg1: i32) -> (i32, i32, i32) {
    %c0_i32 = arith.constant 0 : i32
    %c0_i32_0 = arith.constant 0 : i32
    %c0_i32_1 = arith.constant 0 : i32
    %c0_i32_2 = arith.constant 0 : i32
    return %c0_i32, %c0_i32_0, %c0_i32_1 : i32, i32, i32
  }
  func.func @transform_2(%arg0: i32, %arg1: i32) -> (i32, i32) {
    %c0_i32 = arith.constant 0 : i32
    %c0_i32_0 = arith.constant 0 : i32
    %c0_i32_1 = arith.constant 0 : i32
    return %c0_i32, %c0_i32_0 : i32, i32
  }
  func.func @transform_3(%arg0: i32, %arg1: i32) -> (i32, i32) {
    %c2_i32 = arith.constant 2 : i32
    %0 = arith.muli %arg0, %c2_i32 : i32
    %1 = arith.addi %0, %arg1 : i32
    %c0_i32 = arith.constant 0 : i32
    %c0_i32_0 = arith.constant 0 : i32
    return %1, %c0_i32 : i32, i32
  }
  func.func @transform_4(%arg0: i32, %arg1: i32) -> (i32, i32, i32) {
    %c2_i32 = arith.constant 2 : i32
    %0 = arith.muli %arg0, %c2_i32 : i32
    %1 = arith.addi %0, %arg1 : i32
    %c0_i32 = arith.constant 0 : i32
    %c0_i32_0 = arith.constant 0 : i32
    %c0_i32_1 = arith.constant 0 : i32
    return %1, %c0_i32, %c0_i32_0 : i32, i32, i32
  }
  func.func @transform_5(%arg0: i32, %arg1: i32) -> (i32, i32, i32) {
    %c2_i32 = arith.constant 2 : i32
    %0 = arith.muli %arg0, %c2_i32 : i32
    %1 = arith.addi %0, %arg1 : i32
    %c0_i32 = arith.constant 0 : i32
    %c0_i32_0 = arith.constant 0 : i32
    %c0_i32_1 = arith.constant 0 : i32
    return %1, %c0_i32, %c0_i32_0 : i32, i32, i32
  }
}

module attributes {stable_mosaic.version = 11 : i64} {
  func.func @_bn_prelu_kernel(%arg0: i32, %arg1: memref<512x128xf32, #tpu.memory_space<vmem>>, %arg2: memref<1x128xf32, #tpu.memory_space<vmem>>, %arg3: memref<1x128xf32, #tpu.memory_space<vmem>>, %arg4: memref<1x128xf32, #tpu.memory_space<vmem>>, %arg5: memref<512x128xbf16, #tpu.memory_space<vmem>>) attributes {dimension_semantics = [#tpu.dimension_semantics<parallel>], iteration_bounds = array<i64: 1>, scalar_prefetch = 0 : i64, scratch_operands = 0 : i64, tpu.core_type = #tpu.core_type<tc>, window_params = [{transform_indices = @transform_0, window_bounds = array<i64: 512, 128>}, {pipeline_mode = #tpu.pipeline_mode<synchronous>, transform_indices = @transform_1, window_bounds = array<i64: 1, 128>}, {pipeline_mode = #tpu.pipeline_mode<synchronous>, transform_indices = @transform_2, window_bounds = array<i64: 1, 128>}, {pipeline_mode = #tpu.pipeline_mode<synchronous>, transform_indices = @transform_3, window_bounds = array<i64: 1, 128>}, {transform_indices = @transform_4, window_bounds = array<i64: 512, 128>}]} {
    %c0 = arith.constant 0 : index
    %c0_0 = arith.constant 0 : index
    %0 = vector.load %arg1[%c0, %c0_0] : memref<512x128xf32, #tpu.memory_space<vmem>>, vector<512x128xf32>
    %c0_1 = arith.constant 0 : index
    %c0_2 = arith.constant 0 : index
    %1 = vector.load %arg2[%c0_1, %c0_2] : memref<1x128xf32, #tpu.memory_space<vmem>>, vector<1x128xf32>
    %2 = vector.broadcast %1 : vector<1x128xf32> to vector<512x128xf32>
    %3 = arith.mulf %0, %2 : vector<512x128xf32>
    %c0_3 = arith.constant 0 : index
    %c0_4 = arith.constant 0 : index
    %4 = vector.load %arg3[%c0_3, %c0_4] : memref<1x128xf32, #tpu.memory_space<vmem>>, vector<1x128xf32>
    %5 = vector.broadcast %4 : vector<1x128xf32> to vector<512x128xf32>
    %6 = arith.addf %3, %5 : vector<512x128xf32>
    %cst = arith.constant 0.000000e+00 : f32
    %7 = vector.broadcast %cst : f32 to vector<512x128xf32>
    %8 = arith.cmpf ogt, %6, %7 : vector<512x128xf32>
    %c0_5 = arith.constant 0 : index
    %c0_6 = arith.constant 0 : index
    %9 = vector.load %arg4[%c0_5, %c0_6] : memref<1x128xf32, #tpu.memory_space<vmem>>, vector<1x128xf32>
    %cst_7 = arith.constant 1.000000e+00 : f32
    %10 = vector.broadcast %cst_7 : f32 to vector<512x128xf32>
    %11 = vector.shape_cast %9 : vector<1x128xf32> to vector<1x128xf32>
    %12 = vector.broadcast %11 : vector<1x128xf32> to vector<512x128xf32>
    %13 = arith.select %8, %10, %12 : vector<512x128xi1>, vector<512x128xf32>
    %14 = arith.mulf %6, %13 : vector<512x128xf32>
    %15 = arith.truncf %14 : vector<512x128xf32> to vector<512x128xbf16>
    %c0_8 = arith.constant 0 : index
    %c0_9 = arith.constant 0 : index
    %16 = vector.load %arg5[%c0_8, %c0_9] : memref<512x128xbf16, #tpu.memory_space<vmem>>, vector<512x128xbf16>
    tpu.vector_store %arg5[%c0_8, %c0_9], %15 {strides = array<i32>} : memref<512x128xbf16, #tpu.memory_space<vmem>>, vector<512x128xbf16>,
    return
  }
  func.func @transform_0(%arg0: i32) -> (i32, i32) {
    %c0_i32 = arith.constant 0 : i32
    %c0_i32_0 = arith.constant 0 : i32
    return %arg0, %c0_i32 : i32, i32
  }
  func.func @transform_1(%arg0: i32) -> (i32, i32) {
    %c0_i32 = arith.constant 0 : i32
    %c0_i32_0 = arith.constant 0 : i32
    %c0_i32_1 = arith.constant 0 : i32
    return %c0_i32, %c0_i32_0 : i32, i32
  }
  func.func @transform_2(%arg0: i32) -> (i32, i32) {
    %c0_i32 = arith.constant 0 : i32
    %c0_i32_0 = arith.constant 0 : i32
    %c0_i32_1 = arith.constant 0 : i32
    return %c0_i32, %c0_i32_0 : i32, i32
  }
  func.func @transform_3(%arg0: i32) -> (i32, i32) {
    %c0_i32 = arith.constant 0 : i32
    %c0_i32_0 = arith.constant 0 : i32
    %c0_i32_1 = arith.constant 0 : i32
    return %c0_i32, %c0_i32_0 : i32, i32
  }
  func.func @transform_4(%arg0: i32) -> (i32, i32) {
    %c0_i32 = arith.constant 0 : i32
    %c0_i32_0 = arith.constant 0 : i32
    return %arg0, %c0_i32 : i32, i32
  }
}

module attributes {stable_mosaic.version = 11 : i64} {
  func.func @_bn_prelu_kernel(%arg0: i32, %arg1: memref<512x128xf32, #tpu.memory_space<vmem>>, %arg2: memref<1x128xf32, #tpu.memory_space<vmem>>, %arg3: memref<1x128xf32, #tpu.memory_space<vmem>>, %arg4: memref<1x128xf32, #tpu.memory_space<vmem>>, %arg5: memref<512x128xf32, #tpu.memory_space<vmem>>) attributes {dimension_semantics = [#tpu.dimension_semantics<parallel>], iteration_bounds = array<i64: 1>, scalar_prefetch = 0 : i64, scratch_operands = 0 : i64, tpu.core_type = #tpu.core_type<tc>, window_params = [{transform_indices = @transform_0, window_bounds = array<i64: 512, 128>}, {pipeline_mode = #tpu.pipeline_mode<synchronous>, transform_indices = @transform_1, window_bounds = array<i64: 1, 128>}, {pipeline_mode = #tpu.pipeline_mode<synchronous>, transform_indices = @transform_2, window_bounds = array<i64: 1, 128>}, {pipeline_mode = #tpu.pipeline_mode<synchronous>, transform_indices = @transform_3, window_bounds = array<i64: 1, 128>}, {transform_indices = @transform_4, window_bounds = array<i64: 512, 128>}]} {
    %c0 = arith.constant 0 : index
    %c0_0 = arith.constant 0 : index
    %0 = vector.load %arg1[%c0, %c0_0] : memref<512x128xf32, #tpu.memory_space<vmem>>, vector<512x128xf32>
    %c0_1 = arith.constant 0 : index
    %c0_2 = arith.constant 0 : index
    %1 = vector.load %arg2[%c0_1, %c0_2] : memref<1x128xf32, #tpu.memory_space<vmem>>, vector<1x128xf32>
    %2 = vector.broadcast %1 : vector<1x128xf32> to vector<512x128xf32>
    %3 = arith.mulf %0, %2 : vector<512x128xf32>
    %c0_3 = arith.constant 0 : index
    %c0_4 = arith.constant 0 : index
    %4 = vector.load %arg3[%c0_3, %c0_4] : memref<1x128xf32, #tpu.memory_space<vmem>>, vector<1x128xf32>
    %5 = vector.broadcast %4 : vector<1x128xf32> to vector<512x128xf32>
    %6 = arith.addf %3, %5 : vector<512x128xf32>
    %cst = arith.constant 0.000000e+00 : f32
    %7 = vector.broadcast %cst : f32 to vector<512x128xf32>
    %8 = arith.cmpf ogt, %6, %7 : vector<512x128xf32>
    %c0_5 = arith.constant 0 : index
    %c0_6 = arith.constant 0 : index
    %9 = vector.load %arg4[%c0_5, %c0_6] : memref<1x128xf32, #tpu.memory_space<vmem>>, vector<1x128xf32>
    %cst_7 = arith.constant 1.000000e+00 : f32
    %10 = vector.broadcast %cst_7 : f32 to vector<512x128xf32>
    %11 = vector.shape_cast %9 : vector<1x128xf32> to vector<1x128xf32>
    %12 = vector.broadcast %11 : vector<1x128xf32> to vector<512x128xf32>
    %13 = arith.select %8, %10, %12 : vector<512x128xi1>, vector<512x128xf32>
    %14 = arith.mulf %6, %13 : vector<512x128xf32>
    %c0_8 = arith.constant 0 : index
    %c0_9 = arith.constant 0 : index
    %15 = vector.load %arg5[%c0_8, %c0_9] : memref<512x128xf32, #tpu.memory_space<vmem>>, vector<512x128xf32>
    tpu.vector_store %arg5[%c0_8, %c0_9], %14 {strides = array<i32>} : memref<512x128xf32, #tpu.memory_space<vmem>>, vector<512x128xf32>,
    return
  }
  func.func @transform_0(%arg0: i32) -> (i32, i32) {
    %c0_i32 = arith.constant 0 : i32
    %c0_i32_0 = arith.constant 0 : i32
    return %arg0, %c0_i32 : i32, i32
  }
  func.func @transform_1(%arg0: i32) -> (i32, i32) {
    %c0_i32 = arith.constant 0 : i32
    %c0_i32_0 = arith.constant 0 : i32
    %c0_i32_1 = arith.constant 0 : i32
    return %c0_i32, %c0_i32_0 : i32, i32
  }
  func.func @transform_2(%arg0: i32) -> (i32, i32) {
    %c0_i32 = arith.constant 0 : i32
    %c0_i32_0 = arith.constant 0 : i32
    %c0_i32_1 = arith.constant 0 : i32
    return %c0_i32, %c0_i32_0 : i32, i32
  }
  func.func @transform_3(%arg0: i32) -> (i32, i32) {
    %c0_i32 = arith.constant 0 : i32
    %c0_i32_0 = arith.constant 0 : i32
    %c0_i32_1 = arith.constant 0 : i32
    return %c0_i32, %c0_i32_0 : i32, i32
  }
  func.func @transform_4(%arg0: i32) -> (i32, i32) {
    %c0_i32 = arith.constant 0 : i32
    %c0_i32_0 = arith.constant 0 : i32
    return %arg0, %c0_i32 : i32, i32
  }
}

</mosaic_0001>

<bundles_post_ra>
// kernel: double_conv.5
= control target key start
LH: loop header
LB: loop body
LE: loop exit
PB: predicated region body
PF: predicated region fallthrough
CT: control target
= control target key end

     0   :  { %s1259_s0 = inlined_call_operand.vmem [shape: f32[512,128], index: 0, kind: input, shape index: {}]   ;;  %s1260_s1 = inlined_call_operand.vmem [shape: f32[1,128], index: 1, kind: input, shape index: {}]   ;;  %s1261_s2 = inlined_call_operand.vmem [shape: f32[1,128], index: 2, kind: input, shape index: {}]   ;;  %s1262_s3 = inlined_call_operand.vmem [shape: f32[1,128], index: 3, kind: input, shape index: {}]   ;;  %s1263_s4 = inlined_call_operand.vmem [shape: bf16[512,128], index: 4, kind: output, shape index: {}]  }
   0x1   :  { %v17_v0 = vld [vmem:[%s1259_s0] sm:$0xff]  ;;  %v18_v1 = vld [vmem:[%s1259_s0 + $0x8] sm:$0xff]  ;;  %v19_v4 = vld [vmem:[%s1259_s0 + $0x10] sm:$0xff] }
   0x2   :  { %v773_v2 = vld [vmem:[%s1260_s1] ss:$0 sm:$0xff]  ;;  %v20_v7 = vld [vmem:[%s1259_s0 + $0x18] sm:$0xff]  ;;  %v22_v10 = vld [vmem:[%s1259_s0 + $0x28] sm:$0xff] }
   0x3   :  { %v778_v3 = vld [vmem:[%s1261_s2] ss:$0 sm:$0xff]  ;;  %v85_v5 = vmul.f32 %v773_v2, %v17_v0  ;;  %v86_v6 = vmul.f32 %v773_v2, %v18_v1  ;;  %v87_v8 = vmul.f32 %v773_v2, %v19_v4  ;;  %v88_v12 = vmul.f32 %v773_v2, %v20_v7  ;;  %v23_v15 = vld [vmem:[%s1259_s0 + $0x30] sm:$0xff]  ;;  %v24_v16 = vld [vmem:[%s1259_s0 + $0x38] sm:$0xff] }
   0x4   :  { %v21_v9 = vld [vmem:[%s1259_s0 + $0x20] sm:$0xff]  ;;  %v90_v14 = vmul.f32 %v773_v2, %v22_v10  ;;  %v91_v20 = vmul.f32 %v773_v2, %v23_v15  ;;  %v92_v24 = vmul.f32 %v773_v2, %v24_v16  ;;  %v26_v36 = vld [vmem:[%s1259_s0 + $0x48] sm:$0xff]  ;;  %v27_v40 = vld [vmem:[%s1259_s0 + $0x50] sm:$0xff] }
   0x5   :  { %v798_v11 = vld [vmem:[%s1262_s3] ss:$0 sm:$0xff]  ;;  %v89_v13 = vmul.f32 %v773_v2, %v21_v9  ;;  %v153_v17 = vadd.f32 %v778_v3, %v85_v5  ;;  %v154_v18 = vadd.f32 %v778_v3, %v86_v6  ;;  %v155_v19 = vadd.f32 %v778_v3, %v87_v8  ;;  %v28_v44 = vld [vmem:[%s1259_s0 + $0x58] sm:$0xff]  ;;  %v30_v50 = vld [vmem:[%s1259_s0 + $0x68] sm:$0xff] }
   0x6   :  { %v156_v21 = vadd.f32 %v778_v3, %v88_v12  ;;  %v158_v23 = vadd.f32 %v778_v3, %v90_v14  ;;  %v159_v25 = vadd.f32 %v778_v3, %v91_v20  ;;  %v160_v34 = vadd.f32 %v778_v3, %v92_v24  ;;  %v25_v35 = vld [vmem:[%s1259_s0 + $0x40] sm:$0xff]  ;;  %v31_v51 = vld [vmem:[%s1259_s0 + $0x70] sm:$0xff]  ;;  %v32_v10 = vld [vmem:[%s1259_s0 + $0x78] sm:$0xff] }
   0x7   :  { %v157_v22 = vadd.f32 %v778_v3, %v89_v13  ;;  %vm217_vm0 = vcmp.gt.f32.partialorder %v153_v17, 0.0  ;;  %vm218_vm1 = vcmp.gt.f32.partialorder %v154_v18, 0.0  ;;  %vm219_vm2 = vcmp.gt.f32.partialorder %v155_v19, 0.0  ;;  %v29_v45 = vld [vmem:[%s1259_s0 + $0x60] sm:$0xff]  ;;  %v34_v15 = vld [vmem:[%s1259_s0 + $0x88] sm:$0xff]  ;;  %v35_v16 = vld [vmem:[%s1259_s0 + $0x90] sm:$0xff] }
   0x8   :  { %v285_v26 = vsel %vm217_vm0, 1.0, %v798_v11  ;;  %v286_v27 = vsel %vm218_vm1, 1.0, %v798_v11  ;;  %vm220_vm3 = vcmp.gt.f32.partialorder %v156_v21, 0.0  ;;  %v287_v28 = vsel %vm219_vm2, 1.0, %v798_v11  ;;  %v33_v14 = vld [vmem:[%s1259_s0 + $0x80] sm:$0xff] }
   0x9   :  { %v349_v29 = vmul.f32 %v285_v26, %v153_v17  ;;  %v350_v30 = vmul.f32 %v286_v27, %v154_v18  ;;  %v288_v31 = vsel %vm220_vm3, 1.0, %v798_v11  ;;  %v351_v32 = vmul.f32 %v287_v28, %v155_v19 }
   0xa   :  { %v352_v33 = vmul.f32 %v288_v31, %v156_v21  ;;  %vm221_vm4 = vcmp.gt.f32.partialorder %v157_v22, 0.0  ;;  %vm222_vm5 = vcmp.gt.f32.partialorder %v158_v23, 0.0  ;;  %vm223_vm6 = vcmp.gt.f32.partialorder %v159_v25, 0.0  ;;  %v36_v21 = vld [vmem:[%s1259_s0 + $0x98] sm:$0xff] }
   0xb   :  { %v548_v37 = vpack.c.bf16 %v350_v30, %v349_v29  ;;  %v289_v38 = vsel %vm221_vm4, 1.0, %v798_v11  ;;  %v290_v39 = vsel %vm222_vm5, 1.0, %v798_v11  ;;  %vm224_vm7 = vcmp.gt.f32.partialorder %v160_v34, 0.0  ;;  %v37_v30 = vld [vmem:[%s1259_s0 + $0xa0] sm:$0xff] }
   0xc   :  { %v553_v41 = vpack.c.bf16 %v352_v33, %v351_v32  ;;  %v353_v42 = vmul.f32 %v289_v38, %v157_v22  ;;  %v354_v43 = vmul.f32 %v290_v39, %v158_v23  ;;  %v291_v46 = vsel %vm223_vm6, 1.0, %v798_v11 }
   0xd   :  { %549 = vst [vmem:[%s1263_s4] sm:$0xff] %v548_v37   ;;  %v292_v47 = vsel %vm224_vm7, 1.0, %v798_v11  ;;  %v93_v48 = vmul.f32 %v773_v2, %v25_v35  ;;  %v94_v49 = vmul.f32 %v773_v2, %v26_v36  ;;  %v355_v53 = vmul.f32 %v291_v46, %v159_v25  ;;  %v39_v46 = vld [vmem:[%s1259_s0 + $0xb0] sm:$0xff] }
   0xe   :  { %705 = vst [vmem:[%s1263_s4 + $0x8] sm:$0xff] %v553_v41   ;;  %v558_v52 = vpack.c.bf16 %v354_v43, %v353_v42  ;;  %v356_v54 = vmul.f32 %v292_v47, %v160_v34  ;;  %v95_v55 = vmul.f32 %v773_v2, %v27_v40  ;;  %v96_v58 = vmul.f32 %v773_v2, %v28_v44  ;;  %v38_v42 = vld [vmem:[%s1259_s0 + $0xa8] sm:$0xff]  ;;  %v40_v47 = vld [vmem:[%s1259_s0 + $0xb8] sm:$0xff] }
   0xf   :  { %v161_v56 = vadd.f32 %v778_v3, %v93_v48  ;;  %v162_v57 = vadd.f32 %v778_v3, %v94_v49  ;;  %v97_v59 = vmul.f32 %v773_v2, %v29_v45  ;;  %v98_v62 = vmul.f32 %v773_v2, %v30_v50 }
  0x10   :  { %706 = vst [vmem:[%s1263_s4 + $0x10] sm:$0xff] %v558_v52   ;;  %v563_v60 = vpack.c.bf16 %v356_v54, %v355_v53  ;;  %v163_v61 = vadd.f32 %v778_v3, %v95_v55  ;;  %v99_v63 = vmul.f32 %v773_v2, %v31_v51  ;;  %v164_v0 = vadd.f32 %v778_v3, %v96_v58  ;;  %v41_v52 = vld [vmem:[%s1259_s0 + $0xc0] sm:$0xff]  ;;  %v42_v53 = vld [vmem:[%s1259_s0 + $0xc8] sm:$0xff]  ;;  %v43_v58 = vld [vmem:[%s1259_s0 + $0xd0] sm:$0xff] }
  0x11   :  { %vm225_vm8 = vcmp.gt.f32.partialorder %v161_v56, 0.0  ;;  %vm226_vm9 = vcmp.gt.f32.partialorder %v162_v57, 0.0  ;;  %v165_v1 = vadd.f32 %v778_v3, %v97_v59  ;;  %v166_v6 = vadd.f32 %v778_v3, %v98_v62 }
  0x12   :  { %707 = vst [vmem:[%s1263_s4 + $0x18] sm:$0xff] %v563_v60   ;;  %v293_v4 = vsel %vm225_vm8, 1.0, %v798_v11  ;;  %v294_v5 = vsel %vm226_vm9, 1.0, %v798_v11  ;;  %vm227_vm10 = vcmp.gt.f32.partialorder %v163_v61, 0.0  ;;  %vm228_vm11 = vcmp.gt.f32.partialorder %v164_v0, 0.0 }
  0x13   :  { %v357_v7 = vmul.f32 %v293_v4, %v161_v56  ;;  %v358_v8 = vmul.f32 %v294_v5, %v162_v57  ;;  %v295_v9 = vsel %vm227_vm10, 1.0, %v798_v11  ;;  %v296_v12 = vsel %vm228_vm11, 1.0, %v798_v11 }
  0x14   :  { %v359_v13 = vmul.f32 %v295_v9, %v163_v61  ;;  %vm229_vm12 = vcmp.gt.f32.partialorder %v165_v1, 0.0  ;;  %vm230_vm13 = vcmp.gt.f32.partialorder %v166_v6, 0.0  ;;  %v360_v18 = vmul.f32 %v296_v12, %v164_v0 }
  0x15   :  { %v568_v17 = vpack.c.bf16 %v358_v8, %v357_v7  ;;  %v297_v19 = vsel %vm229_vm12, 1.0, %v798_v11  ;;  %v298_v20 = vsel %vm230_vm13, 1.0, %v798_v11  ;;  %v100_v24 = vmul.f32 %v773_v2, %v32_v10 }
  0x16   :  { %v361_v22 = vmul.f32 %v297_v19, %v165_v1  ;;  %v362_v23 = vmul.f32 %v298_v20, %v166_v6  ;;  %v167_v25 = vadd.f32 %v778_v3, %v99_v63  ;;  %v573_v26 = vpack.c.bf16 %v360_v18, %v359_v13  ;;  %v45_v18 = vld [vmem:[%s1259_s0 + $0xe0] sm:$0xff] }
  0x17   :  { %708 = vst [vmem:[%s1263_s4 + $0x20] sm:$0xff] %v568_v17   ;;  %v101_v27 = vmul.f32 %v773_v2, %v33_v14  ;;  %v102_v28 = vmul.f32 %v773_v2, %v34_v15  ;;  %v103_v29 = vmul.f32 %v773_v2, %v35_v16  ;;  %v168_v32 = vadd.f32 %v778_v3, %v100_v24  ;;  %v44_v14 = vld [vmem:[%s1259_s0 + $0xd8] sm:$0xff] }
  0x18   :  { %v578_v31 = vpack.c.bf16 %v362_v23, %v361_v22  ;;  %vm231_vm14 = vcmp.gt.f32.partialorder %v167_v25, 0.0  ;;  %v104_v33 = vmul.f32 %v773_v2, %v36_v21  ;;  %709 = vst [vmem:[%s1263_s4 + $0x28] sm:$0xff] %v573_v26   ;;  %v105_v40 = vmul.f32 %v773_v2, %v37_v30  ;;  %v46_v22 = vld [vmem:[%s1259_s0 + $0xe8] sm:$0xff]  ;;  %v47_v23 = vld [vmem:[%s1259_s0 + $0xf0] sm:$0xff]  ;;  %v48_v24 = vld [vmem:[%s1259_s0 + $0xf8] sm:$0xff] }
  0x19   :  { %v299_v34 = vsel %vm231_vm14, 1.0, %v798_v11  ;;  %v169_v35 = vadd.f32 %v778_v3, %v101_v27  ;;  %v170_v36 = vadd.f32 %v778_v3, %v102_v28  ;;  %v171_v37 = vadd.f32 %v778_v3, %v103_v29  ;;  %v49_v29 = vld [vmem:[%s1259_s0 + $0x100] sm:$0xff] }
  0x1a   :  { %710 = vst [vmem:[%s1263_s4 + $0x30] sm:$0xff] %v578_v31   ;;  %vm232_vm15 = vcmp.gt.f32.partialorder %v168_v32, 0.0  ;;  %v363_v38 = vmul.f32 %v299_v34, %v167_v25  ;;  %v172_v39 = vadd.f32 %v778_v3, %v104_v33  ;;  %v106_v57 = vmul.f32 %v773_v2, %v38_v42 }
  0x1b   :  { %v300_v41 = vsel %vm232_vm15, 1.0, %v798_v11  ;;  %vm233_vm0 = vcmp.gt.f32.partialorder %v169_v35, 0.0  ;;  %vm234_vm1 = vcmp.gt.f32.partialorder %v170_v36, 0.0  ;;  %vm235_vm2 = vcmp.gt.f32.partialorder %v171_v37, 0.0 }
  0x1c   :  { %v364_v43 = vmul.f32 %v300_v41, %v168_v32  ;;  %v301_v44 = vsel %vm233_vm0, 1.0, %v798_v11  ;;  %v302_v45 = vsel %vm234_vm1, 1.0, %v798_v11  ;;  %vm236_vm3 = vcmp.gt.f32.partialorder %v172_v39, 0.0 }
  0x1d   :  { %v365_v48 = vmul.f32 %v301_v44, %v169_v35  ;;  %v366_v49 = vmul.f32 %v302_v45, %v170_v36  ;;  %v303_v50 = vsel %vm235_vm2, 1.0, %v798_v11  ;;  %v304_v51 = vsel %vm236_vm3, 1.0, %v798_v11 }
  0x1e   :  { %v583_v54 = vpack.c.bf16 %v364_v43, %v363_v38  ;;  %v367_v55 = vmul.f32 %v303_v50, %v171_v37  ;;  %v368_v56 = vmul.f32 %v304_v51, %v172_v39  ;;  %v173_v60 = vadd.f32 %v778_v3, %v105_v40  ;;  %v51_v50 = vld [vmem:[%s1259_s0 + $0x110] sm:$0xff] }
  0x1f   :  { %v588_v59 = vpack.c.bf16 %v366_v49, %v365_v48  ;;  %v107_v61 = vmul.f32 %v773_v2, %v39_v46  ;;  %v108_v62 = vmul.f32 %v773_v2, %v40_v47  ;;  %v174_v0 = vadd.f32 %v778_v3, %v106_v57  ;;  %v50_v49 = vld [vmem:[%s1259_s0 + $0x108] sm:$0xff] }
  0x20   :  { %711 = vst [vmem:[%s1263_s4 + $0x38] sm:$0xff] %v583_v54   ;;  %v593_v63 = vpack.c.bf16 %v368_v56, %v367_v55  ;;  %v109_v1 = vmul.f32 %v773_v2, %v41_v52  ;;  %v110_v4 = vmul.f32 %v773_v2, %v42_v53  ;;  %vm237_vm4 = vcmp.gt.f32.partialorder %v173_v60, 0.0  ;;  %v52_v54 = vld [vmem:[%s1259_s0 + $0x118] sm:$0xff]  ;;  %v53_v55 = vld [vmem:[%s1259_s0 + $0x120] sm:$0xff]  ;;  %v54_v56 = vld [vmem:[%s1259_s0 + $0x128] sm:$0xff] }
  0x21   :  { %712 = vst [vmem:[%s1263_s4 + $0x40] sm:$0xff] %v588_v59   ;;  %v175_v5 = vadd.f32 %v778_v3, %v107_v61  ;;  %v176_v6 = vadd.f32 %v778_v3, %v108_v62  ;;  %v111_v7 = vmul.f32 %v773_v2, %v43_v58  ;;  %vm238_vm5 = vcmp.gt.f32.partialorder %v174_v0, 0.0 }
  0x22   :  { %713 = vst [vmem:[%s1263_s4 + $0x48] sm:$0xff] %v593_v63   ;;  %v305_v8 = vsel %vm237_vm4, 1.0, %v798_v11  ;;  %v177_v9 = vadd.f32 %v778_v3, %v109_v1  ;;  %v178_v10 = vadd.f32 %v778_v3, %v110_v4  ;;  %v306_v12 = vsel %vm238_vm5, 1.0, %v798_v11 }
  0x23   :  { %v369_v13 = vmul.f32 %v305_v8, %v173_v60  ;;  %vm239_vm6 = vcmp.gt.f32.partialorder %v175_v5, 0.0  ;;  %vm240_vm7 = vcmp.gt.f32.partialorder %v176_v6, 0.0  ;;  %v370_v15 = vmul.f32 %v306_v12, %v174_v0 }
  0x24   :  { %v307_v16 = vsel %vm239_vm6, 1.0, %v798_v11  ;;  %v308_v17 = vsel %vm240_vm7, 1.0, %v798_v11  ;;  %vm241_vm8 = vcmp.gt.f32.partialorder %v177_v9, 0.0  ;;  %vm242_vm9 = vcmp.gt.f32.partialorder %v178_v10, 0.0 }
  0x25   :  { %v371_v19 = vmul.f32 %v307_v16, %v175_v5  ;;  %v372_v20 = vmul.f32 %v308_v17, %v176_v6  ;;  %v309_v21 = vsel %vm241_vm8, 1.0, %v798_v11  ;;  %v598_v25 = vpack.c.bf16 %v370_v15, %v369_v13  ;;  %v56_v17 = vld [vmem:[%s1259_s0 + $0x138] sm:$0xff] }
  0x26   :  { %v310_v26 = vsel %vm242_vm9, 1.0, %v798_v11  ;;  %v373_v27 = vmul.f32 %v309_v21, %v177_v9  ;;  %v112_v28 = vmul.f32 %v773_v2, %v44_v14  ;;  %v179_v32 = vadd.f32 %v778_v3, %v111_v7  ;;  %v55_v7 = vld [vmem:[%s1259_s0 + $0x130] sm:$0xff] }
  0x27   :  { %v603_v30 = vpack.c.bf16 %v372_v20, %v371_v19  ;;  %v374_v31 = vmul.f32 %v310_v26, %v178_v10  ;;  %v113_v33 = vmul.f32 %v773_v2, %v45_v18  ;;  %714 = vst [vmem:[%s1263_s4 + $0x50] sm:$0xff] %v598_v25   ;;  %v114_v35 = vmul.f32 %v773_v2, %v46_v22  ;;  %v58_v25 = vld [vmem:[%s1259_s0 + $0x148] sm:$0xff] }
  0x28   :  { %v180_v34 = vadd.f32 %v778_v3, %v112_v28  ;;  %v115_v36 = vmul.f32 %v773_v2, %v47_v23  ;;  %v116_v37 = vmul.f32 %v773_v2, %v48_v24  ;;  %vm243_vm10 = vcmp.gt.f32.partialorder %v179_v32, 0.0  ;;  %v57_v24 = vld [vmem:[%s1259_s0 + $0x140] sm:$0xff] }
  0x29   :  { %715 = vst [vmem:[%s1263_s4 + $0x58] sm:$0xff] %v603_v30   ;;  %v608_v38 = vpack.c.bf16 %v374_v31, %v373_v27  ;;  %v181_v39 = vadd.f32 %v778_v3, %v113_v33  ;;  %v117_v40 = vmul.f32 %v773_v2, %v49_v29  ;;  %v311_v41 = vsel %vm243_vm10, 1.0, %v798_v11  ;;  %v59_v30 = vld [vmem:[%s1259_s0 + $0x150] sm:$0xff]  ;;  %v60_v31 = vld [vmem:[%s1259_s0 + $0x158] sm:$0xff] }
  0x2a   :  { %vm244_vm11 = vcmp.gt.f32.partialorder %v180_v34, 0.0  ;;  %v182_v42 = vadd.f32 %v778_v3, %v114_v35  ;;  %v183_v43 = vadd.f32 %v778_v3, %v115_v36  ;;  %v375_v45 = vmul.f32 %v311_v41, %v179_v32 }
  0x2b   :  { %716 = vst [vmem:[%s1263_s4 + $0x60] sm:$0xff] %v608_v38   ;;  %v312_v44 = vsel %vm244_vm11, 1.0, %v798_v11  ;;  %vm245_vm12 = vcmp.gt.f32.partialorder %v181_v39, 0.0  ;;  %v184_v46 = vadd.f32 %v778_v3, %v116_v37  ;;  %v118_v62 = vmul.f32 %v773_v2, %v50_v49 }
  0x2c   :  { %v376_v47 = vmul.f32 %v312_v44, %v180_v34  ;;  %vm246_vm13 = vcmp.gt.f32.partialorder %v182_v42, 0.0  ;;  %v313_v48 = vsel %vm245_vm12, 1.0, %v798_v11  ;;  %vm247_vm14 = vcmp.gt.f32.partialorder %v183_v43, 0.0 }
  0x2d   :  { %v314_v51 = vsel %vm246_vm13, 1.0, %v798_v11  ;;  %v377_v52 = vmul.f32 %v313_v48, %v181_v39  ;;  %vm248_vm15 = vcmp.gt.f32.partialorder %v184_v46, 0.0  ;;  %v315_v53 = vsel %vm247_vm14, 1.0, %v798_v11 }
  0x2e   :  { %v613_v57 = vpack.c.bf16 %v376_v47, %v375_v45  ;;  %v378_v58 = vmul.f32 %v314_v51, %v182_v42  ;;  %v316_v59 = vsel %vm248_vm15, 1.0, %v798_v11  ;;  %v379_v60 = vmul.f32 %v315_v53, %v183_v43  ;;  %v61_v43 = vld [vmem:[%s1259_s0 + $0x160] sm:$0xff] }
  0x2f   :  { %v380_v61 = vmul.f32 %v316_v59, %v184_v46  ;;  %v185_v63 = vadd.f32 %v778_v3, %v117_v40  ;;  %v119_v0 = vmul.f32 %v773_v2, %v51_v50  ;;  %v120_v4 = vmul.f32 %v773_v2, %v52_v54 }
  0x30   :  { %717 = vst [vmem:[%s1263_s4 + $0x68] sm:$0xff] %v613_v57   ;;  %v618_v1 = vpack.c.bf16 %v378_v58, %v377_v52  ;;  %v121_v5 = vmul.f32 %v773_v2, %v53_v55  ;;  %v122_v6 = vmul.f32 %v773_v2, %v54_v56  ;;  %v186_v9 = vadd.f32 %v778_v3, %v118_v62  ;;  %v62_v52 = vld [vmem:[%s1259_s0 + $0x168] sm:$0xff]  ;;  %v63_v56 = vld [vmem:[%s1259_s0 + $0x170] sm:$0xff]  ;;  %v64_v57 = vld [vmem:[%s1259_s0 + $0x178] sm:$0xff] }
  0x31   :  { %v623_v8 = vpack.c.bf16 %v380_v61, %v379_v60  ;;  %vm249_vm0 = vcmp.gt.f32.partialorder %v185_v63, 0.0  ;;  %v187_v10 = vadd.f32 %v778_v3, %v119_v0  ;;  %v188_v13 = vadd.f32 %v778_v3, %v120_v4  ;;  %v65_v62 = vld [vmem:[%s1259_s0 + $0x180] sm:$0xff] }
  0x32   :  { %718 = vst [vmem:[%s1263_s4 + $0x70] sm:$0xff] %v618_v1   ;;  %v317_v12 = vsel %vm249_vm0, 1.0, %v798_v11  ;;  %v189_v14 = vadd.f32 %v778_v3, %v121_v5  ;;  %v190_v15 = vadd.f32 %v778_v3, %v122_v6  ;;  %vm250_vm1 = vcmp.gt.f32.partialorder %v186_v9, 0.0 }
  0x33   :  { %719 = vst [vmem:[%s1263_s4 + $0x78] sm:$0xff] %v623_v8   ;;  %v381_v16 = vmul.f32 %v317_v12, %v185_v63  ;;  %vm251_vm2 = vcmp.gt.f32.partialorder %v187_v10, 0.0  ;;  %v123_v18 = vmul.f32 %v773_v2, %v55_v7  ;;  %v318_v19 = vsel %vm250_vm1, 1.0, %v798_v11  ;;  %v66_v63 = vld [vmem:[%s1259_s0 + $0x188] sm:$0xff] }
  0x34   :  { %vm252_vm3 = vcmp.gt.f32.partialorder %v188_v13, 0.0  ;;  %v319_v20 = vsel %vm251_vm2, 1.0, %v798_v11  ;;  %vm253_vm4 = vcmp.gt.f32.partialorder %v189_v14, 0.0  ;;  %v382_v21 = vmul.f32 %v318_v19, %v186_v9 }
  0x35   :  { %v320_v22 = vsel %vm252_vm3, 1.0, %v798_v11  ;;  %v383_v23 = vmul.f32 %v319_v20, %v187_v10  ;;  %vm254_vm5 = vcmp.gt.f32.partialorder %v190_v15, 0.0  ;;  %v321_v27 = vsel %vm253_vm4, 1.0, %v798_v11 }
  0x36   :  { %v384_v26 = vmul.f32 %v320_v22, %v188_v13  ;;  %v322_v28 = vsel %vm254_vm5, 1.0, %v798_v11  ;;  %v124_v29 = vmul.f32 %v773_v2, %v56_v17  ;;  %v628_v32 = vpack.c.bf16 %v382_v21, %v381_v16 }
  0x37   :  { %v385_v33 = vmul.f32 %v321_v27, %v189_v14  ;;  %v386_v34 = vmul.f32 %v322_v28, %v190_v15  ;;  %v191_v35 = vadd.f32 %v778_v3, %v123_v18  ;;  %v125_v38 = vmul.f32 %v773_v2, %v57_v24  ;;  %v67_v14 = vld [vmem:[%s1259_s0 + $0x190] sm:$0xff]  ;;  %v69_v28 = vld [vmem:[%s1259_s0 + $0x1a0] sm:$0xff] }
  0x38   :  { %v633_v36 = vpack.c.bf16 %v384_v26, %v383_v23  ;;  %v192_v37 = vadd.f32 %v778_v3, %v124_v29  ;;  %v126_v39 = vmul.f32 %v773_v2, %v58_v25  ;;  %720 = vst [vmem:[%s1263_s4 + $0x80] sm:$0xff] %v628_v32   ;;  %v127_v41 = vmul.f32 %v773_v2, %v59_v30  ;;  %v68_v23 = vld [vmem:[%s1259_s0 + $0x198] sm:$0xff]  ;;  %v70_v32 = vld [vmem:[%s1259_s0 + $0x1a8] sm:$0xff] }
  0x39   :  { %v638_v40 = vpack.c.bf16 %v386_v34, %v385_v33  ;;  %vm255_vm6 = vcmp.gt.f32.partialorder %v191_v35, 0.0  ;;  %v128_v42 = vmul.f32 %v773_v2, %v60_v31  ;;  %v193_v45 = vadd.f32 %v778_v3, %v125_v38  ;;  %v71_v33 = vld [vmem:[%s1259_s0 + $0x1b0] sm:$0xff]  ;;  %v72_v34 = vld [vmem:[%s1259_s0 + $0x1b8] sm:$0xff] }
  0x3a   :  { %721 = vst [vmem:[%s1263_s4 + $0x88] sm:$0xff] %v633_v36   ;;  %vm256_vm7 = vcmp.gt.f32.partialorder %v192_v37, 0.0  ;;  %v323_v44 = vsel %vm255_vm6, 1.0, %v798_v11  ;;  %v194_v46 = vadd.f32 %v778_v3, %v126_v39  ;;  %v195_v49 = vadd.f32 %v778_v3, %v127_v41  ;;  %v73_v39 = vld [vmem:[%s1259_s0 + $0x1c0] sm:$0xff] }
  0x3b   :  { %722 = vst [vmem:[%s1263_s4 + $0x90] sm:$0xff] %v638_v40   ;;  %v324_v47 = vsel %vm256_vm7, 1.0, %v798_v11  ;;  %v387_v48 = vmul.f32 %v323_v44, %v191_v35  ;;  %v196_v50 = vadd.f32 %v778_v3, %v128_v42  ;;  %vm257_vm8 = vcmp.gt.f32.partialorder %v193_v45, 0.0 }
  0x3c   :  { %v388_v51 = vmul.f32 %v324_v47, %v192_v37  ;;  %vm258_vm9 = vcmp.gt.f32.partialorder %v194_v46, 0.0  ;;  %v129_v53 = vmul.f32 %v773_v2, %v61_v43  ;;  %v325_v54 = vsel %vm257_vm8, 1.0, %v798_v11 }
  0x3d   :  { %v326_v55 = vsel %vm258_vm9, 1.0, %v798_v11  ;;  %vm259_vm10 = vcmp.gt.f32.partialorder %v195_v49, 0.0  ;;  %vm260_vm11 = vcmp.gt.f32.partialorder %v196_v50, 0.0  ;;  %v389_v59 = vmul.f32 %v325_v54, %v193_v45 }
  0x3e   :  { %v643_v58 = vpack.c.bf16 %v388_v51, %v387_v48  ;;  %v390_v60 = vmul.f32 %v326_v55, %v194_v46  ;;  %v327_v61 = vsel %vm259_vm10, 1.0, %v798_v11  ;;  %v328_v0 = vsel %vm260_vm11, 1.0, %v798_v11 }
  0x3f   :  { %v391_v1 = vmul.f32 %v327_v61, %v195_v49  ;;  %v130_v4 = vmul.f32 %v773_v2, %v62_v52  ;;  %v197_v5 = vadd.f32 %v778_v3, %v129_v53  ;;  %v392_v7 = vmul.f32 %v328_v0, %v196_v50  ;;  %v76_v0 = vld [vmem:[%s1259_s0 + $0x1d8] sm:$0xff] }
  0x40   :  { %723 = vst [vmem:[%s1263_s4 + $0x98] sm:$0xff] %v643_v58   ;;  %v648_v6 = vpack.c.bf16 %v390_v60, %v389_v59  ;;  %v131_v8 = vmul.f32 %v773_v2, %v63_v56  ;;  %v132_v9 = vmul.f32 %v773_v2, %v64_v57  ;;  %v133_v12 = vmul.f32 %v773_v2, %v65_v62  ;;  %v74_v59 = vld [vmem:[%s1259_s0 + $0x1c8] sm:$0xff]  ;;  %v75_v60 = vld [vmem:[%s1259_s0 + $0x1d0] sm:$0xff] }
  0x41   :  { %v198_v10 = vadd.f32 %v778_v3, %v130_v4  ;;  %vm261_vm12 = vcmp.gt.f32.partialorder %v197_v5, 0.0  ;;  %v134_v13 = vmul.f32 %v773_v2, %v66_v63  ;;  %v653_v15 = vpack.c.bf16 %v392_v7, %v391_v1  ;;  %v77_v1 = vld [vmem:[%s1259_s0 + $0x1e0] sm:$0xff]  ;;  %v78_v4 = vld [vmem:[%s1259_s0 + $0x1e8] sm:$0xff] }
  0x42   :  { %724 = vst [vmem:[%s1263_s4 + $0xa0] sm:$0xff] %v648_v6   ;;  %v329_v16 = vsel %vm261_vm12, 1.0, %v798_v11  ;;  %v199_v17 = vadd.f32 %v778_v3, %v131_v8  ;;  %v200_v18 = vadd.f32 %v778_v3, %v132_v9  ;;  %v201_v20 = vadd.f32 %v778_v3, %v133_v12 }
  0x43   :  { %vm262_vm13 = vcmp.gt.f32.partialorder %v198_v10, 0.0  ;;  %v393_v19 = vmul.f32 %v329_v16, %v197_v5  ;;  %v202_v21 = vadd.f32 %v778_v3, %v134_v13  ;;  %725 = vst [vmem:[%s1263_s4 + $0xa8] sm:$0xff] %v653_v15   ;;  %v135_v24 = vmul.f32 %v773_v2, %v67_v14 }
  0x44   :  { %v330_v22 = vsel %vm262_vm13, 1.0, %v798_v11  ;;  %vm263_vm14 = vcmp.gt.f32.partialorder %v199_v17, 0.0  ;;  %vm264_vm15 = vcmp.gt.f32.partialorder %v200_v18, 0.0  ;;  %vm265_vm0 = vcmp.gt.f32.partialorder %v201_v20, 0.0 }
  0x45   :  { %v394_v25 = vmul.f32 %v330_v22, %v198_v10  ;;  %v331_v26 = vsel %vm263_vm14, 1.0, %v798_v11  ;;  %v332_v27 = vsel %vm264_vm15, 1.0, %v798_v11  ;;  %vm266_vm1 = vcmp.gt.f32.partialorder %v202_v21, 0.0 }
  0x46   :  { %v395_v29 = vmul.f32 %v331_v26, %v199_v17  ;;  %v396_v30 = vmul.f32 %v332_v27, %v200_v18  ;;  %v333_v31 = vsel %vm265_vm0, 1.0, %v798_v11  ;;  %v334_v36 = vsel %vm266_vm1, 1.0, %v798_v11  ;;  %v79_v18 = vld [vmem:[%s1259_s0 + $0x1f0] sm:$0xff]  ;;  %v80_v27 = vld [vmem:[%s1259_s0 + $0x1f8] sm:$0xff] }
  0x47   :  { %v658_v35 = vpack.c.bf16 %v394_v25, %v393_v19  ;;  %v397_v37 = vmul.f32 %v333_v31, %v201_v20  ;;  %v136_v38 = vmul.f32 %v773_v2, %v68_v23  ;;  %v398_v41 = vmul.f32 %v334_v36, %v202_v21 }
  0x48   :  { %v663_v40 = vpack.c.bf16 %v396_v30, %v395_v29  ;;  %v203_v42 = vadd.f32 %v778_v3, %v135_v24  ;;  %v137_v43 = vmul.f32 %v773_v2, %v69_v28  ;;  %v138_v45 = vmul.f32 %v773_v2, %v70_v32 }
  0x49   :  { %726 = vst [vmem:[%s1263_s4 + $0xb0] sm:$0xff] %v658_v35   ;;  %v204_v44 = vadd.f32 %v778_v3, %v136_v38  ;;  %v139_v46 = vmul.f32 %v773_v2, %v71_v33  ;;  %v140_v47 = vmul.f32 %v773_v2, %v72_v34  ;;  %v668_v48 = vpack.c.bf16 %v398_v41, %v397_v37 }
  0x4a   :  { %727 = vst [vmem:[%s1263_s4 + $0xb8] sm:$0xff] %v663_v40   ;;  %vm267_vm2 = vcmp.gt.f32.partialorder %v203_v42, 0.0  ;;  %v205_v49 = vadd.f32 %v778_v3, %v137_v43  ;;  %v141_v50 = vmul.f32 %v773_v2, %v73_v39  ;;  %v206_v52 = vadd.f32 %v778_v3, %v138_v45 }
  0x4b   :  { %vm268_vm3 = vcmp.gt.f32.partialorder %v204_v44, 0.0  ;;  %v335_v51 = vsel %vm267_vm2, 1.0, %v798_v11  ;;  %v207_v53 = vadd.f32 %v778_v3, %v139_v46  ;;  %728 = vst [vmem:[%s1263_s4 + $0xc0] sm:$0xff] %v668_v48   ;;  %v208_v56 = vadd.f32 %v778_v3, %v140_v47 }
  0x4c   :  { %v336_v54 = vsel %vm268_vm3, 1.0, %v798_v11  ;;  %v399_v55 = vmul.f32 %v335_v51, %v203_v42  ;;  %vm269_vm4 = vcmp.gt.f32.partialorder %v205_v49, 0.0  ;;  %vm270_vm5 = vcmp.gt.f32.partialorder %v206_v52, 0.0 }
  0x4d   :  { %v400_v57 = vmul.f32 %v336_v54, %v204_v44  ;;  %v337_v58 = vsel %vm269_vm4, 1.0, %v798_v11  ;;  %vm271_vm6 = vcmp.gt.f32.partialorder %v207_v53, 0.0  ;;  %v338_v61 = vsel %vm270_vm5, 1.0, %v798_v11 }
  0x4e   :  { %v401_v62 = vmul.f32 %v337_v58, %v205_v49  ;;  %vm272_vm7 = vcmp.gt.f32.partialorder %v208_v56, 0.0  ;;  %v339_v63 = vsel %vm271_vm6, 1.0, %v798_v11  ;;  %v402_v6 = vmul.f32 %v338_v61, %v206_v52 }
  0x4f   :  { %v673_v5 = vpack.c.bf16 %v400_v57, %v399_v55  ;;  %v340_v7 = vsel %vm272_vm7, 1.0, %v798_v11  ;;  %v403_v8 = vmul.f32 %v339_v63, %v207_v53  ;;  %v142_v10 = vmul.f32 %v773_v2, %v74_v59 }
  0x50   :  { %v404_v9 = vmul.f32 %v340_v7, %v208_v56  ;;  %v209_v12 = vadd.f32 %v778_v3, %v141_v50  ;;  %v143_v13 = vmul.f32 %v773_v2, %v75_v60  ;;  %v678_v14 = vpack.c.bf16 %v402_v6, %v401_v62 }
  0x51   :  { %729 = vst [vmem:[%s1263_s4 + $0xc8] sm:$0xff] %v673_v5   ;;  %v144_v15 = vmul.f32 %v773_v2, %v76_v0  ;;  %v145_v16 = vmul.f32 %v773_v2, %v77_v1  ;;  %v146_v17 = vmul.f32 %v773_v2, %v78_v4  ;;  %v210_v20 = vadd.f32 %v778_v3, %v142_v10 }
  0x52   :  { %v683_v19 = vpack.c.bf16 %v404_v9, %v403_v8  ;;  %vm273_vm8 = vcmp.gt.f32.partialorder %v209_v12, 0.0  ;;  %v211_v21 = vadd.f32 %v778_v3, %v143_v13  ;;  %730 = vst [vmem:[%s1263_s4 + $0xd0] sm:$0xff] %v678_v14   ;;  %v147_v28 = vmul.f32 %v773_v2, %v79_v18 }
  0x53   :  { %v341_v22 = vsel %vm273_vm8, 1.0, %v798_v11  ;;  %v212_v23 = vadd.f32 %v778_v3, %v144_v15  ;;  %v213_v24 = vadd.f32 %v778_v3, %v145_v16  ;;  %v214_v25 = vadd.f32 %v778_v3, %v146_v17 }
  0x54   :  { %731 = vst [vmem:[%s1263_s4 + $0xd8] sm:$0xff] %v683_v19   ;;  %vm274_vm9 = vcmp.gt.f32.partialorder %v210_v20, 0.0  ;;  %v405_v26 = vmul.f32 %v341_v22, %v209_v12  ;;  %vm275_vm10 = vcmp.gt.f32.partialorder %v211_v21, 0.0  ;;  %v148_v37 = vmul.f32 %v773_v2, %v80_v27 }
  0x55   :  { %v342_v29 = vsel %vm274_vm9, 1.0, %v798_v11  ;;  %vm276_vm11 = vcmp.gt.f32.partialorder %v212_v23, 0.0  ;;  %v343_v30 = vsel %vm275_vm10, 1.0, %v798_v11  ;;  %vm277_vm12 = vcmp.gt.f32.partialorder %v213_v24, 0.0 }
  0x56   :  { %v406_v31 = vmul.f32 %v342_v29, %v210_v20  ;;  %v344_v32 = vsel %vm276_vm11, 1.0, %v798_v11  ;;  %v407_v33 = vmul.f32 %v343_v30, %v211_v21  ;;  %vm278_vm13 = vcmp.gt.f32.partialorder %v214_v25, 0.0 }
  0x57   :  { %v408_v34 = vmul.f32 %v344_v32, %v212_v23  ;;  %v345_v35 = vsel %vm277_vm12, 1.0, %v798_v11  ;;  %v346_v36 = vsel %vm278_vm13, 1.0, %v798_v11  ;;  %v215_v41 = vadd.f32 %v778_v3, %v147_v28 }
  0x58   :  { %v688_v38 = vpack.c.bf16 %v406_v31, %v405_v26  ;;  %v409_v39 = vmul.f32 %v345_v35, %v213_v24  ;;  %v410_v40 = vmul.f32 %v346_v36, %v214_v25  ;;  %v216_v43 = vadd.f32 %v778_v3, %v148_v37 }
  0x59   :  { %v693_v42 = vpack.c.bf16 %v408_v34, %v407_v33  ;;  %vm279_vm14 = vcmp.gt.f32.partialorder %v215_v41, 0.0 }
  0x5a   :  { %732 = vst [vmem:[%s1263_s4 + $0xe0] sm:$0xff] %v688_v38   ;;  %v698_v44 = vpack.c.bf16 %v410_v40, %v409_v39  ;;  %vm280_vm15 = vcmp.gt.f32.partialorder %v216_v43, 0.0  ;;  %v347_v2 = vsel %vm279_vm14, 1.0, %v798_v11 }
  0x5b   :  { %733 = vst [vmem:[%s1263_s4 + $0xe8] sm:$0xff] %v693_v42   ;;  %v348_v45 = vsel %vm280_vm15, 1.0, %v798_v11  ;;  %v411_v3 = vmul.f32 %v347_v2, %v215_v41 }
  0x5c   :  { %734 = vst [vmem:[%s1263_s4 + $0xf0] sm:$0xff] %v698_v44   ;;  %v412_v46 = vmul.f32 %v348_v45, %v216_v43 }
  0x5e   :  { %v703_v47 = vpack.c.bf16 %v412_v46, %v411_v3 }
  0x60   :  { %735 = vst [vmem:[%s1263_s4 + $0xf8] sm:$0xff] %v703_v47  }

// kernel: double_conv.7
= control target key start
LH: loop header
LB: loop body
LE: loop exit
PB: predicated region body
PF: predicated region fallthrough
CT: control target
= control target key end

     0   :  { %s1100_s0 = inlined_call_operand.vmem [shape: f32[512,128], index: 0, kind: input, shape index: {}]   ;;  %s1101_s1 = inlined_call_operand.vmem [shape: f32[1,128], index: 1, kind: input, shape index: {}]   ;;  %s1102_s2 = inlined_call_operand.vmem [shape: f32[1,128], index: 2, kind: input, shape index: {}]   ;;  %s1103_s3 = inlined_call_operand.vmem [shape: f32[1,128], index: 3, kind: input, shape index: {}]   ;;  %s1104_s4 = inlined_call_operand.vmem [shape: f32[512,128], index: 4, kind: output, shape index: {}]  }
   0x1   :  { %v17_v0 = vld [vmem:[%s1100_s0] sm:$0xff]  ;;  %v18_v5 = vld [vmem:[%s1100_s0 + $0x8] sm:$0xff]  ;;  %v19_v6 = vld [vmem:[%s1100_s0 + $0x10] sm:$0xff] }
   0x2   :  { %v515_v1 = vld [vmem:[%s1101_s1] ss:$0 sm:$0xff]  ;;  %v20_v9 = vld [vmem:[%s1100_s0 + $0x18] sm:$0xff]  ;;  %v22_v11 = vld [vmem:[%s1100_s0 + $0x28] sm:$0xff] }
   0x3   :  { %v520_v2 = vld [vmem:[%s1102_s2] ss:$0 sm:$0xff]  ;;  %v85_v3 = vmul.f32 %v515_v1, %v17_v0  ;;  %v86_v7 = vmul.f32 %v515_v1, %v18_v5  ;;  %v87_v8 = vmul.f32 %v515_v1, %v19_v6  ;;  %v88_v13 = vmul.f32 %v515_v1, %v20_v9  ;;  %v23_v16 = vld [vmem:[%s1100_s0 + $0x30] sm:$0xff]  ;;  %v24_v17 = vld [vmem:[%s1100_s0 + $0x38] sm:$0xff] }
   0x4   :  { %v526_v4 = vld [vmem:[%s1103_s3] ss:$0 sm:$0xff]  ;;  %v90_v15 = vmul.f32 %v515_v1, %v22_v11  ;;  %v91_v20 = vmul.f32 %v515_v1, %v23_v16  ;;  %v92_v21 = vmul.f32 %v515_v1, %v24_v17  ;;  %v26_v34 = vld [vmem:[%s1100_s0 + $0x48] sm:$0xff]  ;;  %v27_v37 = vld [vmem:[%s1100_s0 + $0x50] sm:$0xff] }
   0x5   :  { %v21_v10 = vld [vmem:[%s1100_s0 + $0x20] sm:$0xff]  ;;  %v153_v12 = vadd.f32 %v520_v2, %v85_v3  ;;  %v154_v18 = vadd.f32 %v520_v2, %v86_v7  ;;  %v155_v19 = vadd.f32 %v520_v2, %v87_v8  ;;  %v156_v22 = vadd.f32 %v520_v2, %v88_v13  ;;  %v28_v38 = vld [vmem:[%s1100_s0 + $0x58] sm:$0xff]  ;;  %v30_v44 = vld [vmem:[%s1100_s0 + $0x68] sm:$0xff] }
   0x6   :  { %v89_v14 = vmul.f32 %v515_v1, %v21_v10  ;;  %v158_v24 = vadd.f32 %v520_v2, %v90_v15  ;;  %v159_v26 = vadd.f32 %v520_v2, %v91_v20  ;;  %v25_v33 = vld [vmem:[%s1100_s0 + $0x40] sm:$0xff]  ;;  %v160_v43 = vadd.f32 %v520_v2, %v92_v21  ;;  %v31_v52 = vld [vmem:[%s1100_s0 + $0x70] sm:$0xff]  ;;  %v32_v3 = vld [vmem:[%s1100_s0 + $0x78] sm:$0xff] }
   0x7   :  { %vm217_vm0 = vcmp.gt.f32.partialorder %v153_v12, 0.0  ;;  %vm218_vm1 = vcmp.gt.f32.partialorder %v154_v18, 0.0  ;;  %vm219_vm2 = vcmp.gt.f32.partialorder %v155_v19, 0.0  ;;  %vm220_vm3 = vcmp.gt.f32.partialorder %v156_v22, 0.0  ;;  %v29_v39 = vld [vmem:[%s1100_s0 + $0x60] sm:$0xff]  ;;  %v34_v10 = vld [vmem:[%s1100_s0 + $0x88] sm:$0xff] }
   0x8   :  { %v157_v23 = vadd.f32 %v520_v2, %v89_v14  ;;  %v285_v25 = vsel %vm217_vm0, 1.0, %v526_v4  ;;  %v286_v28 = vsel %vm218_vm1, 1.0, %v526_v4  ;;  %v287_v29 = vsel %vm219_vm2, 1.0, %v526_v4  ;;  %v33_v9 = vld [vmem:[%s1100_s0 + $0x80] sm:$0xff]  ;;  %v35_v13 = vld [vmem:[%s1100_s0 + $0x90] sm:$0xff]  ;;  %v36_v14 = vld [vmem:[%s1100_s0 + $0x98] sm:$0xff] }
   0x9   :  { %v349_v27 = vmul.f32 %v285_v25, %v153_v12  ;;  %v350_v30 = vmul.f32 %v286_v28, %v154_v18  ;;  %v351_v31 = vmul.f32 %v287_v29, %v155_v19  ;;  %v288_v32 = vsel %vm220_vm3, 1.0, %v526_v4  ;;  %v37_v19 = vld [vmem:[%s1100_s0 + $0xa0] sm:$0xff] }
   0xa   :  { %vm221_vm4 = vcmp.gt.f32.partialorder %v157_v23, 0.0  ;;  %v352_v35 = vmul.f32 %v288_v32, %v156_v22  ;;  %vm222_vm5 = vcmp.gt.f32.partialorder %v158_v24, 0.0  ;;  %vm223_vm6 = vcmp.gt.f32.partialorder %v159_v26, 0.0 }
   0xb   :  { %413 = vst [vmem:[%s1104_s4] sm:$0xff] %v349_v27  ;;  %v289_v36 = vsel %vm221_vm4, 1.0, %v526_v4  ;;  %v290_v41 = vsel %vm222_vm5, 1.0, %v526_v4  ;;  %v291_v42 = vsel %vm223_vm6, 1.0, %v526_v4  ;;  %v93_v47 = vmul.f32 %v515_v1, %v25_v33 }
   0xc   :  { %414 = vst [vmem:[%s1104_s4 + $0x8] sm:$0xff] %v350_v30  ;;  %v353_v40 = vmul.f32 %v289_v36, %v157_v23  ;;  %v354_v45 = vmul.f32 %v290_v41, %v158_v24  ;;  %v355_v46 = vmul.f32 %v291_v42, %v159_v26  ;;  %v94_v48 = vmul.f32 %v515_v1, %v26_v34  ;;  %v38_v36 = vld [vmem:[%s1100_s0 + $0xa8] sm:$0xff]  ;;  %v40_v41 = vld [vmem:[%s1100_s0 + $0xb8] sm:$0xff] }
   0xd   :  { %415 = vst [vmem:[%s1104_s4 + $0x10] sm:$0xff] %v351_v31  ;;  %vm224_vm7 = vcmp.gt.f32.partialorder %v160_v43, 0.0  ;;  %v95_v49 = vmul.f32 %v515_v1, %v27_v37  ;;  %v96_v50 = vmul.f32 %v515_v1, %v28_v38  ;;  %v97_v51 = vmul.f32 %v515_v1, %v29_v39 }
   0xe   :  { %416 = vst [vmem:[%s1104_s4 + $0x18] sm:$0xff] %v352_v35  ;;  %v292_v53 = vsel %vm224_vm7, 1.0, %v526_v4  ;;  %v161_v54 = vadd.f32 %v520_v2, %v93_v47  ;;  %v162_v55 = vadd.f32 %v520_v2, %v94_v48  ;;  %v98_v56 = vmul.f32 %v515_v1, %v30_v44 }
   0xf   :  { %417 = vst [vmem:[%s1104_s4 + $0x20] sm:$0xff] %v353_v40  ;;  %v356_v57 = vmul.f32 %v292_v53, %v160_v43  ;;  %v163_v58 = vadd.f32 %v520_v2, %v95_v49  ;;  %v164_v59 = vadd.f32 %v520_v2, %v96_v50  ;;  %v165_v60 = vadd.f32 %v520_v2, %v97_v51  ;;  %v39_v40 = vld [vmem:[%s1100_s0 + $0xb0] sm:$0xff]  ;;  %v44_v51 = vld [vmem:[%s1100_s0 + $0xd8] sm:$0xff] }
  0x10   :  { %418 = vst [vmem:[%s1104_s4 + $0x28] sm:$0xff] %v354_v45  ;;  %vm225_vm8 = vcmp.gt.f32.partialorder %v161_v54, 0.0  ;;  %vm226_vm9 = vcmp.gt.f32.partialorder %v162_v55, 0.0  ;;  %v166_v61 = vadd.f32 %v520_v2, %v98_v56  ;;  %v99_v62 = vmul.f32 %v515_v1, %v31_v52  ;;  %v41_v45 = vld [vmem:[%s1100_s0 + $0xc0] sm:$0xff]  ;;  %v43_v50 = vld [vmem:[%s1100_s0 + $0xd0] sm:$0xff] }
  0x11   :  { %419 = vst [vmem:[%s1104_s4 + $0x30] sm:$0xff] %v355_v46  ;;  %v293_v63 = vsel %vm225_vm8, 1.0, %v526_v4  ;;  %v294_v0 = vsel %vm226_vm9, 1.0, %v526_v4  ;;  %vm227_vm10 = vcmp.gt.f32.partialorder %v163_v58, 0.0  ;;  %vm228_vm11 = vcmp.gt.f32.partialorder %v164_v59, 0.0  ;;  %v42_v46 = vld [vmem:[%s1100_s0 + $0xc8] sm:$0xff] }
  0x12   :  { %420 = vst [vmem:[%s1104_s4 + $0x38] sm:$0xff] %v356_v57  ;;  %v357_v5 = vmul.f32 %v293_v63, %v161_v54  ;;  %v358_v6 = vmul.f32 %v294_v0, %v162_v55  ;;  %v295_v7 = vsel %vm227_vm10, 1.0, %v526_v4  ;;  %v296_v8 = vsel %vm228_vm11, 1.0, %v526_v4  ;;  %v45_v56 = vld [vmem:[%s1100_s0 + $0xe0] sm:$0xff] }
  0x13   :  { %v359_v11 = vmul.f32 %v295_v7, %v163_v58  ;;  %v360_v12 = vmul.f32 %v296_v8, %v164_v59  ;;  %vm229_vm12 = vcmp.gt.f32.partialorder %v165_v60, 0.0  ;;  %vm230_vm13 = vcmp.gt.f32.partialorder %v166_v61, 0.0 }
  0x14   :  { %421 = vst [vmem:[%s1104_s4 + $0x40] sm:$0xff] %v357_v5  ;;  %v297_v15 = vsel %vm229_vm12, 1.0, %v526_v4  ;;  %v298_v16 = vsel %vm230_vm13, 1.0, %v526_v4  ;;  %v167_v17 = vadd.f32 %v520_v2, %v99_v62  ;;  %v100_v18 = vmul.f32 %v515_v1, %v32_v3 }
  0x15   :  { %422 = vst [vmem:[%s1104_s4 + $0x48] sm:$0xff] %v358_v6  ;;  %v361_v20 = vmul.f32 %v297_v15, %v165_v60  ;;  %v362_v21 = vmul.f32 %v298_v16, %v166_v61  ;;  %v101_v22 = vmul.f32 %v515_v1, %v33_v9  ;;  %v102_v23 = vmul.f32 %v515_v1, %v34_v10  ;;  %v47_v16 = vld [vmem:[%s1100_s0 + $0xf0] sm:$0xff] }
  0x16   :  { %423 = vst [vmem:[%s1104_s4 + $0x50] sm:$0xff] %v359_v11  ;;  %vm231_vm14 = vcmp.gt.f32.partialorder %v167_v17, 0.0  ;;  %v168_v24 = vadd.f32 %v520_v2, %v100_v18  ;;  %v103_v25 = vmul.f32 %v515_v1, %v35_v13  ;;  %v104_v26 = vmul.f32 %v515_v1, %v36_v14 }
  0x17   :  { %424 = vst [vmem:[%s1104_s4 + $0x58] sm:$0xff] %v360_v12  ;;  %v299_v27 = vsel %vm231_vm14, 1.0, %v526_v4  ;;  %v169_v28 = vadd.f32 %v520_v2, %v101_v22  ;;  %v170_v29 = vadd.f32 %v520_v2, %v102_v23  ;;  %v105_v30 = vmul.f32 %v515_v1, %v37_v19  ;;  %v46_v12 = vld [vmem:[%s1100_s0 + $0xe8] sm:$0xff] }
  0x18   :  { %425 = vst [vmem:[%s1104_s4 + $0x60] sm:$0xff] %v361_v20  ;;  %v363_v31 = vmul.f32 %v299_v27, %v167_v17  ;;  %vm232_vm15 = vcmp.gt.f32.partialorder %v168_v24, 0.0  ;;  %v171_v32 = vadd.f32 %v520_v2, %v103_v25  ;;  %v172_v33 = vadd.f32 %v520_v2, %v104_v26  ;;  %v48_v17 = vld [vmem:[%s1100_s0 + $0xf8] sm:$0xff] }
  0x19   :  { %426 = vst [vmem:[%s1104_s4 + $0x68] sm:$0xff] %v362_v21  ;;  %v300_v34 = vsel %vm232_vm15, 1.0, %v526_v4  ;;  %vm233_vm0 = vcmp.gt.f32.partialorder %v169_v28, 0.0  ;;  %vm234_vm1 = vcmp.gt.f32.partialorder %v170_v29, 0.0  ;;  %v173_v35 = vadd.f32 %v520_v2, %v105_v30  ;;  %v49_v21 = vld [vmem:[%s1100_s0 + $0x100] sm:$0xff] }
  0x1a   :  { %427 = vst [vmem:[%s1104_s4 + $0x70] sm:$0xff] %v363_v31  ;;  %v364_v37 = vmul.f32 %v300_v34, %v168_v24  ;;  %v301_v38 = vsel %vm233_vm0, 1.0, %v526_v4  ;;  %v302_v39 = vsel %vm234_vm1, 1.0, %v526_v4  ;;  %vm235_vm2 = vcmp.gt.f32.partialorder %v171_v32, 0.0 }
  0x1b   :  { %v365_v42 = vmul.f32 %v301_v38, %v169_v28  ;;  %v366_v43 = vmul.f32 %v302_v39, %v170_v29  ;;  %v303_v44 = vsel %vm235_vm2, 1.0, %v526_v4  ;;  %vm236_vm3 = vcmp.gt.f32.partialorder %v172_v33, 0.0  ;;  %v50_v29 = vld [vmem:[%s1100_s0 + $0x108] sm:$0xff] }
  0x1c   :  { %428 = vst [vmem:[%s1104_s4 + $0x78] sm:$0xff] %v364_v37  ;;  %v367_v47 = vmul.f32 %v303_v44, %v171_v32  ;;  %v304_v48 = vsel %vm236_vm3, 1.0, %v526_v4  ;;  %vm237_vm4 = vcmp.gt.f32.partialorder %v173_v35, 0.0  ;;  %v106_v49 = vmul.f32 %v515_v1, %v38_v36  ;;  %v53_v44 = vld [vmem:[%s1100_s0 + $0x120] sm:$0xff] }
  0x1d   :  { %429 = vst [vmem:[%s1104_s4 + $0x80] sm:$0xff] %v365_v42  ;;  %v368_v52 = vmul.f32 %v304_v48, %v172_v33  ;;  %v305_v53 = vsel %vm237_vm4, 1.0, %v526_v4  ;;  %v107_v54 = vmul.f32 %v515_v1, %v39_v40  ;;  %v108_v55 = vmul.f32 %v515_v1, %v40_v41  ;;  %v51_v33 = vld [vmem:[%s1100_s0 + $0x110] sm:$0xff]  ;;  %v52_v41 = vld [vmem:[%s1100_s0 + $0x118] sm:$0xff] }
  0x1e   :  { %430 = vst [vmem:[%s1104_s4 + $0x88] sm:$0xff] %v366_v43  ;;  %v369_v57 = vmul.f32 %v305_v53, %v173_v35  ;;  %v174_v58 = vadd.f32 %v520_v2, %v106_v49  ;;  %v109_v59 = vmul.f32 %v515_v1, %v41_v45  ;;  %v110_v60 = vmul.f32 %v515_v1, %v42_v46  ;;  %v54_v45 = vld [vmem:[%s1100_s0 + $0x128] sm:$0xff]  ;;  %v55_v49 = vld [vmem:[%s1100_s0 + $0x130] sm:$0xff] }
  0x1f   :  { %431 = vst [vmem:[%s1104_s4 + $0x90] sm:$0xff] %v367_v47  ;;  %v175_v61 = vadd.f32 %v520_v2, %v107_v54  ;;  %v176_v62 = vadd.f32 %v520_v2, %v108_v55  ;;  %v111_v63 = vmul.f32 %v515_v1, %v43_v50  ;;  %v112_v0 = vmul.f32 %v515_v1, %v44_v51  ;;  %v56_v50 = vld [vmem:[%s1100_s0 + $0x138] sm:$0xff] }
  0x20   :  { %432 = vst [vmem:[%s1104_s4 + $0x98] sm:$0xff] %v368_v52  ;;  %vm238_vm5 = vcmp.gt.f32.partialorder %v174_v58, 0.0  ;;  %v177_v3 = vadd.f32 %v520_v2, %v109_v59  ;;  %v178_v5 = vadd.f32 %v520_v2, %v110_v60  ;;  %v113_v6 = vmul.f32 %v515_v1, %v45_v56 }
  0x21   :  { %433 = vst [vmem:[%s1104_s4 + $0xa0] sm:$0xff] %v369_v57  ;;  %v306_v7 = vsel %vm238_vm5, 1.0, %v526_v4  ;;  %vm239_vm6 = vcmp.gt.f32.partialorder %v175_v61, 0.0  ;;  %vm240_vm7 = vcmp.gt.f32.partialorder %v176_v62, 0.0  ;;  %v179_v8 = vadd.f32 %v520_v2, %v111_v63 }
  0x22   :  { %v370_v9 = vmul.f32 %v306_v7, %v174_v58  ;;  %v307_v10 = vsel %vm239_vm6, 1.0, %v526_v4  ;;  %v308_v11 = vsel %vm240_vm7, 1.0, %v526_v4  ;;  %vm241_vm8 = vcmp.gt.f32.partialorder %v177_v3, 0.0 }
  0x23   :  { %v371_v13 = vmul.f32 %v307_v10, %v175_v61  ;;  %v372_v14 = vmul.f32 %v308_v11, %v176_v62  ;;  %v309_v15 = vsel %vm241_vm8, 1.0, %v526_v4  ;;  %vm242_vm9 = vcmp.gt.f32.partialorder %v178_v5, 0.0  ;;  %v57_v10 = vld [vmem:[%s1100_s0 + $0x140] sm:$0xff]  ;;  %v58_v11 = vld [vmem:[%s1100_s0 + $0x148] sm:$0xff] }
  0x24   :  { %434 = vst [vmem:[%s1104_s4 + $0xa8] sm:$0xff] %v370_v9  ;;  %v373_v18 = vmul.f32 %v309_v15, %v177_v3  ;;  %v310_v19 = vsel %vm242_vm9, 1.0, %v526_v4  ;;  %vm243_vm10 = vcmp.gt.f32.partialorder %v179_v8, 0.0  ;;  %v180_v20 = vadd.f32 %v520_v2, %v112_v0  ;;  %v60_v15 = vld [vmem:[%s1100_s0 + $0x158] sm:$0xff] }
  0x25   :  { %435 = vst [vmem:[%s1104_s4 + $0xb0] sm:$0xff] %v371_v13  ;;  %v374_v22 = vmul.f32 %v310_v19, %v178_v5  ;;  %v311_v23 = vsel %vm243_vm10, 1.0, %v526_v4  ;;  %v181_v24 = vadd.f32 %v520_v2, %v113_v6  ;;  %v114_v25 = vmul.f32 %v515_v1, %v46_v12  ;;  %v59_v12 = vld [vmem:[%s1100_s0 + $0x150] sm:$0xff] }
  0x26   :  { %436 = vst [vmem:[%s1104_s4 + $0xb8] sm:$0xff] %v372_v14  ;;  %v375_v26 = vmul.f32 %v311_v23, %v179_v8  ;;  %vm244_vm11 = vcmp.gt.f32.partialorder %v180_v20, 0.0  ;;  %v115_v27 = vmul.f32 %v515_v1, %v47_v16  ;;  %v116_v28 = vmul.f32 %v515_v1, %v48_v17 }
  0x27   :  { %437 = vst [vmem:[%s1104_s4 + $0xc0] sm:$0xff] %v373_v18  ;;  %v312_v30 = vsel %vm244_vm11, 1.0, %v526_v4  ;;  %vm245_vm12 = vcmp.gt.f32.partialorder %v181_v24, 0.0  ;;  %v182_v31 = vadd.f32 %v520_v2, %v114_v25  ;;  %v117_v32 = vmul.f32 %v515_v1, %v49_v21  ;;  %v62_v21 = vld [vmem:[%s1100_s0 + $0x168] sm:$0xff]  ;;  %v63_v25 = vld [vmem:[%s1100_s0 + $0x170] sm:$0xff] }
  0x28   :  { %438 = vst [vmem:[%s1104_s4 + $0xc8] sm:$0xff] %v374_v22  ;;  %v376_v34 = vmul.f32 %v312_v30, %v180_v20  ;;  %v313_v35 = vsel %vm245_vm12, 1.0, %v526_v4  ;;  %v183_v36 = vadd.f32 %v520_v2, %v115_v27  ;;  %v184_v37 = vadd.f32 %v520_v2, %v116_v28  ;;  %v61_v20 = vld [vmem:[%s1100_s0 + $0x160] sm:$0xff]  ;;  %v64_v30 = vld [vmem:[%s1100_s0 + $0x178] sm:$0xff] }
  0x29   :  { %439 = vst [vmem:[%s1104_s4 + $0xd0] sm:$0xff] %v375_v26  ;;  %v377_v38 = vmul.f32 %v313_v35, %v181_v24  ;;  %vm246_vm13 = vcmp.gt.f32.partialorder %v182_v31, 0.0  ;;  %v185_v39 = vadd.f32 %v520_v2, %v117_v32  ;;  %v118_v40 = vmul.f32 %v515_v1, %v50_v29 }
  0x2a   :  { %440 = vst [vmem:[%s1104_s4 + $0xd8] sm:$0xff] %v376_v34  ;;  %v314_v42 = vsel %vm246_vm13, 1.0, %v526_v4  ;;  %vm247_vm14 = vcmp.gt.f32.partialorder %v183_v36, 0.0  ;;  %vm248_vm15 = vcmp.gt.f32.partialorder %v184_v37, 0.0  ;;  %v119_v43 = vmul.f32 %v515_v1, %v51_v33 }
  0x2b   :  { %441 = vst [vmem:[%s1104_s4 + $0xe0] sm:$0xff] %v377_v38  ;;  %v378_v46 = vmul.f32 %v314_v42, %v182_v31  ;;  %v315_v47 = vsel %vm247_vm14, 1.0, %v526_v4  ;;  %v316_v48 = vsel %vm248_vm15, 1.0, %v526_v4  ;;  %vm249_vm0 = vcmp.gt.f32.partialorder %v185_v39, 0.0 }
  0x2c   :  { %v379_v51 = vmul.f32 %v315_v47, %v183_v36  ;;  %v380_v52 = vmul.f32 %v316_v48, %v184_v37  ;;  %v317_v53 = vsel %vm249_vm0, 1.0, %v526_v4  ;;  %v186_v54 = vadd.f32 %v520_v2, %v118_v40  ;;  %v65_v47 = vld [vmem:[%s1100_s0 + $0x180] sm:$0xff]  ;;  %v66_v48 = vld [vmem:[%s1100_s0 + $0x188] sm:$0xff] }
  0x2d   :  { %442 = vst [vmem:[%s1104_s4 + $0xe8] sm:$0xff] %v378_v46  ;;  %v381_v55 = vmul.f32 %v317_v53, %v185_v39  ;;  %v187_v56 = vadd.f32 %v520_v2, %v119_v43  ;;  %v120_v57 = vmul.f32 %v515_v1, %v52_v41  ;;  %v121_v58 = vmul.f32 %v515_v1, %v53_v44 }
  0x2e   :  { %443 = vst [vmem:[%s1104_s4 + $0xf0] sm:$0xff] %v379_v51  ;;  %vm250_vm1 = vcmp.gt.f32.partialorder %v186_v54, 0.0  ;;  %v122_v59 = vmul.f32 %v515_v1, %v54_v45  ;;  %v123_v60 = vmul.f32 %v515_v1, %v55_v49  ;;  %v124_v61 = vmul.f32 %v515_v1, %v56_v50 }
  0x2f   :  { %444 = vst [vmem:[%s1104_s4 + $0xf8] sm:$0xff] %v380_v52  ;;  %v318_v62 = vsel %vm250_vm1, 1.0, %v526_v4  ;;  %vm251_vm2 = vcmp.gt.f32.partialorder %v187_v56, 0.0  ;;  %v188_v63 = vadd.f32 %v520_v2, %v120_v57  ;;  %v189_v0 = vadd.f32 %v520_v2, %v121_v58  ;;  %v67_v52 = vld [vmem:[%s1100_s0 + $0x190] sm:$0xff] }
  0x30   :  { %445 = vst [vmem:[%s1104_s4 + $0x100] sm:$0xff] %v381_v55  ;;  %v382_v3 = vmul.f32 %v318_v62, %v186_v54  ;;  %v319_v5 = vsel %vm251_vm2, 1.0, %v526_v4  ;;  %v190_v6 = vadd.f32 %v520_v2, %v122_v59  ;;  %v191_v7 = vadd.f32 %v520_v2, %v123_v60  ;;  %v68_v60 = vld [vmem:[%s1100_s0 + $0x198] sm:$0xff] }
  0x31   :  { %v383_v8 = vmul.f32 %v319_v5, %v187_v56  ;;  %vm252_vm3 = vcmp.gt.f32.partialorder %v188_v63, 0.0  ;;  %vm253_vm4 = vcmp.gt.f32.partialorder %v189_v0, 0.0  ;;  %v192_v9 = vadd.f32 %v520_v2, %v124_v61 }
  0x32   :  { %446 = vst [vmem:[%s1104_s4 + $0x108] sm:$0xff] %v382_v3  ;;  %v320_v13 = vsel %vm252_vm3, 1.0, %v526_v4  ;;  %v321_v14 = vsel %vm253_vm4, 1.0, %v526_v4  ;;  %vm254_vm5 = vcmp.gt.f32.partialorder %v190_v6, 0.0  ;;  %vm255_vm6 = vcmp.gt.f32.partialorder %v191_v7, 0.0 }
  0x33   :  { %447 = vst [vmem:[%s1104_s4 + $0x110] sm:$0xff] %v383_v8  ;;  %v384_v16 = vmul.f32 %v320_v13, %v188_v63  ;;  %v385_v17 = vmul.f32 %v321_v14, %v189_v0  ;;  %v322_v18 = vsel %vm254_vm5, 1.0, %v526_v4  ;;  %v323_v19 = vsel %vm255_vm6, 1.0, %v526_v4  ;;  %v69_v63 = vld [vmem:[%s1100_s0 + $0x1a0] sm:$0xff]  ;;  %v70_v0 = vld [vmem:[%s1100_s0 + $0x1a8] sm:$0xff]  ;;  %v71_v14 = vld [vmem:[%s1100_s0 + $0x1b0] sm:$0xff] }
  0x34   :  { %v386_v22 = vmul.f32 %v322_v18, %v190_v6  ;;  %v387_v23 = vmul.f32 %v323_v19, %v191_v7  ;;  %vm256_vm7 = vcmp.gt.f32.partialorder %v192_v9, 0.0  ;;  %v125_v24 = vmul.f32 %v515_v1, %v57_v10  ;;  %v72_v18 = vld [vmem:[%s1100_s0 + $0x1b8] sm:$0xff]  ;;  %v73_v19 = vld [vmem:[%s1100_s0 + $0x1c0] sm:$0xff] }
  0x35   :  { %448 = vst [vmem:[%s1104_s4 + $0x118] sm:$0xff] %v384_v16  ;;  %v324_v26 = vsel %vm256_vm7, 1.0, %v526_v4  ;;  %v126_v27 = vmul.f32 %v515_v1, %v58_v11  ;;  %v127_v28 = vmul.f32 %v515_v1, %v59_v12  ;;  %v128_v29 = vmul.f32 %v515_v1, %v60_v15 }
  0x36   :  { %449 = vst [vmem:[%s1104_s4 + $0x120] sm:$0xff] %v385_v17  ;;  %v388_v31 = vmul.f32 %v324_v26, %v192_v9  ;;  %v193_v32 = vadd.f32 %v520_v2, %v125_v24  ;;  %v129_v33 = vmul.f32 %v515_v1, %v61_v20  ;;  %v130_v34 = vmul.f32 %v515_v1, %v62_v21 }
  0x37   :  { %450 = vst [vmem:[%s1104_s4 + $0x128] sm:$0xff] %v386_v22  ;;  %v194_v35 = vadd.f32 %v520_v2, %v126_v27  ;;  %v195_v36 = vadd.f32 %v520_v2, %v127_v28  ;;  %v196_v37 = vadd.f32 %v520_v2, %v128_v29  ;;  %v131_v38 = vmul.f32 %v515_v1, %v63_v25 }
  0x38   :  { %451 = vst [vmem:[%s1104_s4 + $0x130] sm:$0xff] %v387_v23  ;;  %vm257_vm8 = vcmp.gt.f32.partialorder %v193_v32, 0.0  ;;  %v197_v39 = vadd.f32 %v520_v2, %v129_v33  ;;  %v198_v40 = vadd.f32 %v520_v2, %v130_v34  ;;  %v132_v41 = vmul.f32 %v515_v1, %v64_v30  ;;  %v74_v30 = vld [vmem:[%s1100_s0 + $0x1c8] sm:$0xff] }
  0x39   :  { %452 = vst [vmem:[%s1104_s4 + $0x138] sm:$0xff] %v388_v31  ;;  %v325_v42 = vsel %vm257_vm8, 1.0, %v526_v4  ;;  %vm258_vm9 = vcmp.gt.f32.partialorder %v194_v35, 0.0  ;;  %vm259_vm10 = vcmp.gt.f32.partialorder %v195_v36, 0.0  ;;  %vm260_vm11 = vcmp.gt.f32.partialorder %v196_v37, 0.0  ;;  %v75_v31 = vld [vmem:[%s1100_s0 + $0x1d0] sm:$0xff] }
  0x3a   :  { %v389_v43 = vmul.f32 %v325_v42, %v193_v32  ;;  %v326_v44 = vsel %vm258_vm9, 1.0, %v526_v4  ;;  %v327_v45 = vsel %vm259_vm10, 1.0, %v526_v4  ;;  %v328_v46 = vsel %vm260_vm11, 1.0, %v526_v4 }
  0x3b   :  { %v390_v49 = vmul.f32 %v326_v44, %v194_v35  ;;  %v391_v50 = vmul.f32 %v327_v45, %v195_v36  ;;  %v392_v51 = vmul.f32 %v328_v46, %v196_v37  ;;  %vm261_vm12 = vcmp.gt.f32.partialorder %v197_v39, 0.0  ;;  %v76_v35 = vld [vmem:[%s1100_s0 + $0x1d8] sm:$0xff]  ;;  %v78_v46 = vld [vmem:[%s1100_s0 + $0x1e8] sm:$0xff] }
  0x3c   :  { %453 = vst [vmem:[%s1104_s4 + $0x140] sm:$0xff] %v389_v43  ;;  %v329_v53 = vsel %vm261_vm12, 1.0, %v526_v4  ;;  %vm262_vm13 = vcmp.gt.f32.partialorder %v198_v40, 0.0  ;;  %v199_v54 = vadd.f32 %v520_v2, %v131_v38  ;;  %v200_v55 = vadd.f32 %v520_v2, %v132_v41  ;;  %v77_v43 = vld [vmem:[%s1100_s0 + $0x1e0] sm:$0xff] }
  0x3d   :  { %454 = vst [vmem:[%s1104_s4 + $0x148] sm:$0xff] %v390_v49  ;;  %v393_v56 = vmul.f32 %v329_v53, %v197_v39  ;;  %v330_v57 = vsel %vm262_vm13, 1.0, %v526_v4  ;;  %v133_v58 = vmul.f32 %v515_v1, %v65_v47  ;;  %v134_v59 = vmul.f32 %v515_v1, %v66_v48  ;;  %v79_v47 = vld [vmem:[%s1100_s0 + $0x1f0] sm:$0xff] }
  0x3e   :  { %455 = vst [vmem:[%s1104_s4 + $0x150] sm:$0xff] %v391_v50  ;;  %v394_v61 = vmul.f32 %v330_v57, %v198_v40  ;;  %vm263_vm14 = vcmp.gt.f32.partialorder %v199_v54, 0.0  ;;  %vm264_vm15 = vcmp.gt.f32.partialorder %v200_v55, 0.0  ;;  %v135_v62 = vmul.f32 %v515_v1, %v67_v52  ;;  %v80_v52 = vld [vmem:[%s1100_s0 + $0x1f8] sm:$0xff] }
  0x3f   :  { %456 = vst [vmem:[%s1104_s4 + $0x158] sm:$0xff] %v392_v51  ;;  %v331_v3 = vsel %vm263_vm14, 1.0, %v526_v4  ;;  %v332_v5 = vsel %vm264_vm15, 1.0, %v526_v4  ;;  %v201_v6 = vadd.f32 %v520_v2, %v133_v58  ;;  %v202_v7 = vadd.f32 %v520_v2, %v134_v59 }
  0x40   :  { %457 = vst [vmem:[%s1104_s4 + $0x160] sm:$0xff] %v393_v56  ;;  %v395_v8 = vmul.f32 %v331_v3, %v199_v54  ;;  %v396_v9 = vmul.f32 %v332_v5, %v200_v55  ;;  %v203_v10 = vadd.f32 %v520_v2, %v135_v62  ;;  %v136_v11 = vmul.f32 %v515_v1, %v68_v60 }
  0x41   :  { %458 = vst [vmem:[%s1104_s4 + $0x168] sm:$0xff] %v394_v61  ;;  %vm265_vm0 = vcmp.gt.f32.partialorder %v201_v6, 0.0  ;;  %vm266_vm1 = vcmp.gt.f32.partialorder %v202_v7, 0.0  ;;  %v137_v12 = vmul.f32 %v515_v1, %v69_v63  ;;  %v138_v13 = vmul.f32 %v515_v1, %v70_v0 }
  0x42   :  { %459 = vst [vmem:[%s1104_s4 + $0x170] sm:$0xff] %v395_v8  ;;  %v333_v15 = vsel %vm265_vm0, 1.0, %v526_v4  ;;  %v334_v16 = vsel %vm266_vm1, 1.0, %v526_v4  ;;  %vm267_vm2 = vcmp.gt.f32.partialorder %v203_v10, 0.0  ;;  %v204_v17 = vadd.f32 %v520_v2, %v136_v11 }
  0x43   :  { %460 = vst [vmem:[%s1104_s4 + $0x178] sm:$0xff] %v396_v9  ;;  %v397_v20 = vmul.f32 %v333_v15, %v201_v6  ;;  %v398_v21 = vmul.f32 %v334_v16, %v202_v7  ;;  %v335_v22 = vsel %vm267_vm2, 1.0, %v526_v4  ;;  %v205_v23 = vadd.f32 %v520_v2, %v137_v12 }
  0x44   :  { %v399_v24 = vmul.f32 %v335_v22, %v203_v10  ;;  %vm268_vm3 = vcmp.gt.f32.partialorder %v204_v17, 0.0  ;;  %v206_v25 = vadd.f32 %v520_v2, %v138_v13  ;;  %v139_v26 = vmul.f32 %v515_v1, %v71_v14 }
  0x45   :  { %461 = vst [vmem:[%s1104_s4 + $0x180] sm:$0xff] %v397_v20  ;;  %v336_v27 = vsel %vm268_vm3, 1.0, %v526_v4  ;;  %vm269_vm4 = vcmp.gt.f32.partialorder %v205_v23, 0.0  ;;  %v140_v28 = vmul.f32 %v515_v1, %v72_v18  ;;  %v141_v29 = vmul.f32 %v515_v1, %v73_v19 }
  0x46   :  { %462 = vst [vmem:[%s1104_s4 + $0x188] sm:$0xff] %v398_v21  ;;  %v400_v32 = vmul.f32 %v336_v27, %v204_v17  ;;  %v337_v33 = vsel %vm269_vm4, 1.0, %v526_v4  ;;  %vm270_vm5 = vcmp.gt.f32.partialorder %v206_v25, 0.0  ;;  %v207_v34 = vadd.f32 %v520_v2, %v139_v26 }
  0x47   :  { %463 = vst [vmem:[%s1104_s4 + $0x190] sm:$0xff] %v399_v24  ;;  %v401_v36 = vmul.f32 %v337_v33, %v205_v23  ;;  %v338_v37 = vsel %vm270_vm5, 1.0, %v526_v4  ;;  %v208_v38 = vadd.f32 %v520_v2, %v140_v28  ;;  %v209_v39 = vadd.f32 %v520_v2, %v141_v29 }
  0x48   :  { %464 = vst [vmem:[%s1104_s4 + $0x198] sm:$0xff] %v400_v32  ;;  %v402_v40 = vmul.f32 %v338_v37, %v206_v25  ;;  %vm271_vm6 = vcmp.gt.f32.partialorder %v207_v34, 0.0  ;;  %v142_v41 = vmul.f32 %v515_v1, %v74_v30  ;;  %v143_v42 = vmul.f32 %v515_v1, %v75_v31 }
  0x49   :  { %465 = vst [vmem:[%s1104_s4 + $0x1a0] sm:$0xff] %v401_v36  ;;  %v339_v44 = vsel %vm271_vm6, 1.0, %v526_v4  ;;  %vm272_vm7 = vcmp.gt.f32.partialorder %v208_v38, 0.0  ;;  %vm273_vm8 = vcmp.gt.f32.partialorder %v209_v39, 0.0  ;;  %v144_v45 = vmul.f32 %v515_v1, %v76_v35 }
  0x4a   :  { %466 = vst [vmem:[%s1104_s4 + $0x1a8] sm:$0xff] %v402_v40  ;;  %v403_v48 = vmul.f32 %v339_v44, %v207_v34  ;;  %v340_v49 = vsel %vm272_vm7, 1.0, %v526_v4  ;;  %v341_v50 = vsel %vm273_vm8, 1.0, %v526_v4  ;;  %v210_v51 = vadd.f32 %v520_v2, %v142_v41 }
  0x4b   :  { %v404_v53 = vmul.f32 %v340_v49, %v208_v38  ;;  %v405_v54 = vmul.f32 %v341_v50, %v209_v39  ;;  %v211_v55 = vadd.f32 %v520_v2, %v143_v42  ;;  %v212_v56 = vadd.f32 %v520_v2, %v144_v45 }
  0x4c   :  { %467 = vst [vmem:[%s1104_s4 + $0x1b0] sm:$0xff] %v403_v48  ;;  %vm274_vm9 = vcmp.gt.f32.partialorder %v210_v51, 0.0  ;;  %v145_v57 = vmul.f32 %v515_v1, %v77_v43  ;;  %v146_v58 = vmul.f32 %v515_v1, %v78_v46  ;;  %v147_v59 = vmul.f32 %v515_v1, %v79_v47 }
  0x4d   :  { %468 = vst [vmem:[%s1104_s4 + $0x1b8] sm:$0xff] %v404_v53  ;;  %v342_v60 = vsel %vm274_vm9, 1.0, %v526_v4  ;;  %vm275_vm10 = vcmp.gt.f32.partialorder %v211_v55, 0.0  ;;  %vm276_vm11 = vcmp.gt.f32.partialorder %v212_v56, 0.0  ;;  %v148_v61 = vmul.f32 %v515_v1, %v80_v52 }
  0x4e   :  { %469 = vst [vmem:[%s1104_s4 + $0x1c0] sm:$0xff] %v405_v54  ;;  %v406_v62 = vmul.f32 %v342_v60, %v210_v51  ;;  %v343_v63 = vsel %vm275_vm10, 1.0, %v526_v4  ;;  %v344_v0 = vsel %vm276_vm11, 1.0, %v526_v4  ;;  %v213_v3 = vadd.f32 %v520_v2, %v145_v57 }
  0x4f   :  { %v407_v5 = vmul.f32 %v343_v63, %v211_v55  ;;  %v408_v6 = vmul.f32 %v344_v0, %v212_v56  ;;  %v214_v7 = vadd.f32 %v520_v2, %v146_v58  ;;  %v215_v8 = vadd.f32 %v520_v2, %v147_v59 }
  0x50   :  { %470 = vst [vmem:[%s1104_s4 + $0x1c8] sm:$0xff] %v406_v62  ;;  %vm277_vm12 = vcmp.gt.f32.partialorder %v213_v3, 0.0  ;;  %v216_v1 = vadd.f32 %v520_v2, %v148_v61 }
  0x51   :  { %471 = vst [vmem:[%s1104_s4 + $0x1d0] sm:$0xff] %v407_v5  ;;  %v345_v9 = vsel %vm277_vm12, 1.0, %v526_v4  ;;  %vm278_vm13 = vcmp.gt.f32.partialorder %v214_v7, 0.0  ;;  %vm279_vm14 = vcmp.gt.f32.partialorder %v215_v8, 0.0 }
  0x52   :  { %472 = vst [vmem:[%s1104_s4 + $0x1d8] sm:$0xff] %v408_v6  ;;  %v409_v10 = vmul.f32 %v345_v9, %v213_v3  ;;  %v346_v11 = vsel %vm278_vm13, 1.0, %v526_v4  ;;  %v347_v12 = vsel %vm279_vm14, 1.0, %v526_v4  ;;  %vm280_vm15 = vcmp.gt.f32.partialorder %v216_v1, 0.0 }
  0x53   :  { %v410_v13 = vmul.f32 %v346_v11, %v214_v7  ;;  %v411_v2 = vmul.f32 %v347_v12, %v215_v8  ;;  %v348_v14 = vsel %vm280_vm15, 1.0, %v526_v4 }
  0x54   :  { %473 = vst [vmem:[%s1104_s4 + $0x1e0] sm:$0xff] %v409_v10  ;;  %v412_v15 = vmul.f32 %v348_v14, %v216_v1 }
  0x55   :  { %474 = vst [vmem:[%s1104_s4 + $0x1e8] sm:$0xff] %v410_v13 }
  0x56   :  { %475 = vst [vmem:[%s1104_s4 + $0x1f0] sm:$0xff] %v411_v2 }
  0x57   :  { %476 = vst [vmem:[%s1104_s4 + $0x1f8] sm:$0xff] %v412_v15 }

// kernel: double_conv.4
= control target key start
LH: loop header
LB: loop body
LE: loop exit
PB: predicated region body
PF: predicated region fallthrough
CT: control target
= control target key end

     0   :  { %s4269_s18 = smov 0   ;;  %s4271_s19 = smov 0   ;;  %s5163_s0 = inlined_call_operand.vmem [shape: bf16[2,18,18,128], index: 0, kind: input, shape index: {}]   ;;  %s5164_s1 = inlined_call_operand.vmem [shape: bf16[9,128,128], index: 1, kind: input, shape index: {}]   ;;  %s5165_s2 = inlined_call_operand.vmem [shape: f32[1,128], index: 2, kind: input, shape index: {}]   ;;  %s5166_s3 = inlined_call_operand.vmem [shape: f32[512,128], index: 3, kind: output, shape index: {0}]   ;;  %s5167_s4 = inlined_call_operand.vmem [shape: f32[4,1,128], index: 4, kind: output, shape index: {1}]   ;;  %s5168_s5 = inlined_call_operand.vmem [shape: f32[4,1,128], index: 5, kind: output, shape index: {2}]  }
   0x1   :  { %s4273_s20 = smov 0   ;;  %s4275_s21 = smov 0  }
   0x2   :  { %s4277_s22 = smov 0  }
   0x3 LB: > { %s25_s23 = sadd.s32 1, %s4229_s20  ;;  %s28_s24 = sadd.s32 1, %s4233_s21  ;;  %s4237_s22 = sphi %s4277_s22, %s16_s22   ;;  %s4233_s21 = sphi %s4275_s21, %s5177_s21   ;;  %s4229_s20 = sphi %s4273_s20, %s5176_s20   ;;  %s4225_s19 = sphi %s4271_s19, %s5175_s19   ;;  %s4221_s18 = sphi %s4269_s18, %s5174_s18  }
   0x4   : > { %p26_p0 = scmp.ge.s32.totalorder %s25_s23, 2  ;;  %p3356_p1 = scmp.ge.s32.totalorder %s4237_s22, 1 }
   0x5   : > { %p216_p2 = scmp.lt.s32.totalorder %s4237_s22, 5 }
   0x6   : > { %s5179_s23 = smov (%p26_p0, %s25_s23), 0  ;;  %s5181_s24 = smov (!%p26_p0, %s28_s24), %s4233_s21 }
   0x7   : > { %p217_p3 = pnand %p3356_p1, %p216_p2  ;;  %p30_p4 = scmp.ge.s32.totalorder %s5181_s24, 2 }
   0x8   : > { %p256_p5 = scmp.lt.s32.totalorder (!%p217_p3), %s4225_s19, 1  ;;  %s4036_s16 = smul.u32 (!%p217_p3), 96, %s4221_s18 }
   0x9   : > { %s5183_s24 = smov (%p30_p4, %s5181_s24), 0  ;;  %220 = sbr.rel (%p217_p3) target bundleno = 482 (0x1e2), region = 32 }
   0xa   : > { %s3358_s28 = sshll.u32 (!%p217_p3), %s4225_s19, 1 }
   0xe   : > { %v4052_v0 = vld [vmem:[%s5164_s1 + $0x38] sm:$0xff]  ;;  %v4051_v1 = vld [vmem:[%s5164_s1 + $0x30] sm:$0xff]  ;;  %v4050_v2 = vld [vmem:[%s5164_s1 + $0x28] sm:$0xff]  ;;  %s257_s10 = scalar_select %p256_p5, %s4225_s19, 1  ;;  %vm558_vm0 = vsmask.f32 3328 }
   0xf   : > { %4133 = vmatpush.bf16.msra.mxu1 %v4052_v0  ;;  %4134 = vmatpush.bf16.msra.mxu2 %v4052_v0  ;;  %v4049_v3 = vld [vmem:[%s5164_s1 + $0x20] sm:$0xff]  ;;  %v4048_v4 = vld [vmem:[%s5164_s1 + $0x18] sm:$0xff]  ;;  %v4047_v5 = vld [vmem:[%s5164_s1 + $0x10] sm:$0xff]  ;;  %vm559_vm1 = vsmask.f32 7440  ;;  %vm995_vm2 = vcmask 1042432   ;;  %s4739_s19 = sadd.s32 %s4221_s18, %s3358_s28 }
  0x10   : > { %4135 = vmatpush.bf16.msra.mxu3 %v4052_v0  ;;  %453 = vmatpush.bf16.msra.mxu0 %v4052_v0  ;;  %s4157_s13 = smul.u32 216, %s257_s10  ;;  %v4046_v6 = vld [vmem:[%s5164_s1 + $0x8] sm:$0xff]  ;;  %v4045_v7 = vld [vmem:[%s5164_s1] sm:$0xff]  ;;  %v4060_v8 = vld [vmem:[%s5164_s1 + $0x78] sm:$0xff]  ;;  %vm996_vm3 = vcmask 1046532   ;;  %s3359_s8 = sshll.u32 %s4739_s19, 4 }
  0x11   : > { %v4068_v9 = vld [vmem:[%s5164_s1 + $0xb8] sm:$0xff]  ;;  %v4059_v14 = vld [vmem:[%s5164_s1 + $0x70] sm:$0xff]  ;;  %v4058_v24 = vld [vmem:[%s5164_s1 + $0x68] sm:$0xff]  ;;  %p4767_p6 = scmp.lt.s32.totalorder %s3359_s8, 63  ;;  %p273_p7 = scmp.lt.s32.totalorder %s4739_s19, 3 }
  0x12   : > { %s260_s26 = scalar_lea.vmem %s5163_s0, %s4157_s13  ;;  %v4084_v12 = vld [vmem:[%s5164_s1 + $0xf8] sm:$0xff]  ;;  %v4067_v15 = vld [vmem:[%s5164_s1 + $0xb0] sm:$0xff]  ;;  %v4066_v25 = vld [vmem:[%s5164_s1 + $0xa8] sm:$0xff] }
  0x13   : > { %4136 = vmatpush.bf16.msra.mxu1 %v4051_v1  ;;  %4137 = vmatpush.bf16.msra.mxu2 %v4051_v1  ;;  %s4333_s29 = scalar_lea.vmem %s260_s26, %s4036_s16  ;;  %v4092_v13 = vld [vmem:[%s5164_s1 + $0x138] sm:$0xff]  ;;  %v4083_v20 = vld [vmem:[%s5164_s1 + $0xf0] sm:$0xff]  ;;  %v4082_v29 = vld [vmem:[%s5164_s1 + $0xe8] sm:$0xff]  ;;  %s5185_s8 = smov (!%p4767_p6, %s3359_s8), 63 }
  0x14   : > { %4138 = vmatpush.bf16.msra.mxu3 %v4051_v1  ;;  %454 = vmatpush.bf16.msra.mxu0 %v4051_v1  ;;  %v4039_v10 = vld [vmem:[%s4333_s29 + $0x18] sm:$0xff]  ;;  %v4041_v11 = vld [vmem:[%s4333_s29 + $0x30] sm:$0xff]  ;;  %v534_v16 = vld [vmem:[%s4333_s29] sm:$0xf]  ;;  %s3360_s16 = sshll.u32 %s5185_s8, 3  ;;  %s5187_s19 = smov (!%p273_p7, %s4739_s19), 3 }
  0x15   : > { %v4043_v17 = vld [vmem:[%s4333_s29 + $0x48] sm:$0xff]  ;;  %v4037_v18 = vld [vmem:[%s4333_s29] sm:$0xff]  ;;  %v4091_v21 = vld [vmem:[%s5164_s1 + $0x130] sm:$0xff]  ;;  %v562_v22 = vshrl.u32 %v534_v16, 16  ;;  %v565_v23 = vshll.u32 %v534_v16, 16  ;;  %s4819_s28 = scalar_lea.vmem %s5166_s3, %s3360_s16  ;;  %s275_s6 = scalar_lea.vmem %s5167_s4, %s5187_s19 }
  0x16   : > { %v535_v19 = vld [vmem:[%s4333_s29 + $0x4] sm:$0xf]  ;;  %v3632_v28 = vld [vmem:[%s4333_s29 + $0xc] sm:$0xf]  ;;  %v3633_v33 = vld [vmem:[%s4333_s29 + $0x10] sm:$0xf]  ;;  %s282_s8 = scalar_lea.vmem %s5168_s5, %s5187_s19 }
  0x17   : > { %4139 = vmatpush.bf16.msra.mxu1 %v4050_v2  ;;  %4140 = vmatpush.bf16.msra.mxu2 %v4050_v2  ;;  %v571_v26 = vshll.u32 %v535_v19, 16  ;;  %v575_v27 = vshrl.u32 %v535_v19, 16  ;;  %v4090_v30 = vld [vmem:[%s5164_s1 + $0x128] sm:$0xff]  ;;  %v564_v31 = vrot.slane %v562_v22, 4  ;;  %v567_v32 = vrot.slane %v565_v23, 5  ;;  %v4057_v34 = vld [vmem:[%s5164_s1 + $0x60] sm:$0xff]  ;;  %vm4427_vm4 = vmor %vm558_vm0, %vm559_vm1 }
  0x18   : > { %4141 = vmatpush.bf16.msra.mxu3 %v4050_v2  ;;  %455 = vmatpush.bf16.msra.mxu0 %v4050_v2  ;;  %v4065_v35 = vld [vmem:[%s5164_s1 + $0xa0] sm:$0xff]  ;;  %v536_v38 = vld [vmem:[%s4333_s29 + $0x8] sm:$0x1]  ;;  %v1503_v39 = vshrl.u32 %v3632_v28, 16  ;;  %v1506_v40 = vshll.u32 %v3632_v28, 16  ;;  %v1512_v42 = vshll.u32 %v3633_v33, 16  ;;  %vm4433_vm5 = vmor %vm995_vm2, %vm996_vm3 }
  0x19   : > { %v4385_v36 = vrot.slane %v571_v26, 5  ;;  %v577_v37 = vrot.slane %v575_v27, 4  ;;  %v4389_v41 = vld [vmem:[%s4333_s29 + $0x4] sm:$0xf]  ;;  %v1516_v43 = vshrl.u32 %v3633_v33, 16  ;;  %v4056_v44 = vld [vmem:[%s5164_s1 + $0x58] sm:$0xff]  ;;  %v568_v46 = vor.u32 %v567_v32, %v564_v31 }
  0x1a   : > { %v4081_v45 = vld [vmem:[%s5164_s1 + $0xe0] sm:$0xff]  ;;  %v4064_v49 = vld [vmem:[%s5164_s1 + $0x98] sm:$0xff]  ;;  %v581_v51 = vshll.u32 %v536_v38, 16  ;;  %v1000_v54 = vrot.slane %v4389_v41, 5  ;;  %v1505_v55 = vrot.slane %v1503_v39, 4  ;;  %v1508_v56 = vrot.slane %v1506_v40, 5 }
  0x1b   : > { %4142 = vmatpush.bf16.msra.mxu1 %v4049_v3  ;;  %4143 = vmatpush.bf16.msra.mxu2 %v4049_v3  ;;  %v4089_v47 = vld [vmem:[%s5164_s1 + $0x120] sm:$0xff]  ;;  %v578_v50 = vor.u32 %v577_v37, %v4385_v36  ;;  %v4055_v57 = vld [vmem:[%s5164_s1 + $0x50] sm:$0xff]  ;;  %v949_v58 = vld [vmem:[%s4333_s29 + $0x8] sm:$0x1]  ;;  %v4412_v59 = vrot.slane %v1512_v42, 5  ;;  %v1518_v60 = vrot.slane %v1516_v43, 4 }
  0x1c   : > { %4144 = vmatpush.bf16.msra.mxu3 %v4049_v3  ;;  %456 = vmatpush.bf16.msra.mxu0 %v4049_v3  ;;  %v4040_v48 = vld [vmem:[%s4333_s29 + $0x24] sm:$0xff]  ;;  %v4042_v52 = vld [vmem:[%s4333_s29 + $0x3c] sm:$0xff]  ;;  %v569_v62 = vrot.slane %v568_v46, 4  ;;  %v3634_v0 = vld [vmem:[%s4333_s29 + $0x14] sm:$0x1] }
  0x1d   : > { %v947_v53 = vld [vmem:[%s4333_s29] sm:$0xe]  ;;  %v4080_v61 = vld [vmem:[%s5164_s1 + $0xd8] sm:$0xff]  ;;  %v4063_v1 = vld [vmem:[%s5164_s1 + $0x90] sm:$0xff] }
  0x1e   : > { %v4088_v63 = vld [vmem:[%s5164_s1 + $0x118] sm:$0xff]  ;;  %v4079_v16 = vld [vmem:[%s5164_s1 + $0xd0] sm:$0xff]  ;;  %v4054_v19 = vld [vmem:[%s5164_s1 + $0x48] sm:$0xff] }
  0x1f   : > { %4145 = vmatpush.bf16.msra.mxu1 %v4048_v4  ;;  %4146 = vmatpush.bf16.msra.mxu2 %v4048_v4  ;;  %v4044_v2 = vld [vmem:[%s4333_s29 + $0x54] sm:$0xff]  ;;  %v4078_v32 = vld [vmem:[%s5164_s1 + $0xc8] sm:$0xff]  ;;  %v4053_v37 = vld [vmem:[%s5164_s1 + $0x40] sm:$0xff] }
  0x20   : > { %4147 = vmatpush.bf16.msra.mxu3 %v4048_v4  ;;  %457 = vmatpush.bf16.msra.mxu0 %v4048_v4  ;;  %v579_v4 = vrot.slane %v578_v50, 4  ;;  %v3635_v31 = vld [vmem:[%s4333_s29 + $0x18] sm:$0xf]  ;;  %v4061_v38 = vld [vmem:[%s5164_s1 + $0x80] sm:$0xff]  ;;  %v4491_v50 = vld [vmem:[%s4333_s29 + $0x10] sm:$0xf] }
  0x21   : > { %v4100_v41 = vld [vmem:[%s5164_s1 + $0x178] sm:$0xff] }
  0x23   : > { %4148 = vmatpush.bf16.msra.mxu1 %v4047_v5  ;;  %4149 = vmatpush.bf16.msra.mxu2 %v4047_v5 }
  0x24   : > { %4150 = vmatpush.bf16.msra.mxu3 %v4047_v5  ;;  %458 = vmatpush.bf16.msra.mxu0 %v4047_v5  ;;  %v583_v5 = vrot.slane %v581_v51, 5 }
  0x27   : > { %4151 = vmatpush.bf16.msra.mxu1 %v4046_v6  ;;  %4152 = vmatpush.bf16.msra.mxu2 %v4046_v6 }
  0x28   : > { %4153 = vmatpush.bf16.msra.mxu3 %v4046_v6  ;;  %459 = vmatpush.bf16.msra.mxu0 %v4046_v6  ;;  %v3478_v6 = vrot.slane %v947_v53, 9 }
  0x2a   : > { %v1001_v22 = vsel %vm4433_vm5, %v3478_v6, %v1000_v54  ;;  %v950_v6 = vld [vmem:[%s4333_s29 + $0xc] sm:$0xe] }
  0x2b   : > { %4154 = vmatpush.bf16.msra.mxu1 %v4045_v7  ;;  %4155 = vmatpush.bf16.msra.mxu2 %v4045_v7 }
  0x2c   : > { %4156 = vmatpush.bf16.msra.mxu3 %v4045_v7  ;;  %460 = vmatpush.bf16.msra.mxu0 %v4045_v7 }
  0x2e   : > { %471 = vmatmul.bf16.vlgmr.msra.gmra.mxu1 %v4039_v10  ;;  %481 = vmatmul.bf16.vlgmr.msra.gmra.mxu2 %v4041_v11  ;;  %v4038_v10 = vld [vmem:[%s4333_s29 + $0xc] sm:$0xff] }
  0x2f   : > { %866 = vmatpush.bf16.msrb.mxu1 %v4060_v8  ;;  %1167 = vmatpush.bf16.msrb.mxu2 %v4068_v9  ;;  %v1002_v8 = vrot.slane %v1000_v54, 4  ;;  %v1003_v9 = vrot.slane %v949_v58, 5  ;;  %v537_v11 = vld [vmem:[%s4333_s29 + $0xc] sm:$0xf] }
  0x30   : > { %1397 = vmatpush.bf16.msrb.mxu3 %v4084_v12  ;;  %1807 = vmatpush.bf16.msrb.mxu0 %v4092_v13  ;;  %v1509_v12 = vor.u32 %v1508_v56, %v1505_v55  ;;  %v538_v13 = vld [vmem:[%s4333_s29 + $0x10] sm:$0xf]  ;;  %v586_v23 = vshrl.u32 %v537_v11, 16  ;;  %v4077_v55 = vld [vmem:[%s5164_s1 + $0xc0] sm:$0xff] }
  0x31   : > { %491 = vmatmul.bf16.vlgmr.msra.gmra.mxu3 %v4043_v17  ;;  %461 = vmatmul.bf16.vlgmr.msra.gmra.mxu0 %v4037_v18  ;;  %v574_v17 = vsel %vm4427_vm4, %v569_v62, %v4385_v36  ;;  %v4087_v18 = vld [vmem:[%s5164_s1 + $0x110] sm:$0xff]  ;;  %v595_v26 = vshll.u32 %v538_v13, 16  ;;  %v599_v27 = vshrl.u32 %v538_v13, 16  ;;  %v3636_v36 = vld [vmem:[%s4333_s29 + $0x1c] sm:$0xf]  ;;  %v4085_v56 = vld [vmem:[%s5164_s1 + $0x100] sm:$0xff] }
  0x32   : > { %v1510_v28 = vrot.slane %v1509_v12, 4  ;;  %v4466_v33 = vunpack.c.l.b16 %v574_v17  ;;  %v588_v42 = vrot.slane %v586_v23, 4  ;;  %v1536_v53 = vshll.u32 %v3636_v36, 16  ;;  %v4132_v62 = vld [vmem:[%s5164_s1 + $0x238] sm:$0xff]  ;;  %v952_v12 = vld [vmem:[%s4333_s29 + $0x14] sm:$0x1] }
  0x33   : > { %867 = vmatpush.bf16.msrb.mxu1 %v4059_v14  ;;  %1168 = vmatpush.bf16.msrb.mxu2 %v4067_v15  ;;  %v1519_v14 = vor.u32 %v1518_v60, %v4412_v59  ;;  %v1522_v15 = vshll.u32 %v3634_v0, 16  ;;  %v4485_v46 = vrot.slane %v595_v26, 5  ;;  %v1540_v54 = vshrl.u32 %v3636_v36, 16  ;;  %v3637_v13 = vld [vmem:[%s4333_s29 + $0x20] sm:$0x1]  ;;  %v4114_v26 = vld [vmem:[%s5164_s1 + $0x1a8] sm:$0xff] }
  0x34   : > { %1398 = vmatpush.bf16.msrb.mxu3 %v4083_v20  ;;  %1808 = vmatpush.bf16.msrb.mxu0 %v4091_v21  ;;  %v4062_v20 = vld [vmem:[%s5164_s1 + $0x88] sm:$0xff]  ;;  %v584_v21 = vsel %vm4427_vm4, %v579_v4, %v583_v5  ;;  %v1007_v0 = vrot.slane %v4491_v50, 5  ;;  %v540_v17 = vld [vmem:[%s4333_s29 + $0x18] sm:$0xf]  ;;  %v541_v23 = vld [vmem:[%s4333_s29 + $0x1c] sm:$0xf] }
  0x35   : > { %v787_v39 = vunpack.c.l.b16 %v584_v21 }
  0x36   : > { %v1009_v21 = vrot.slane %v1007_v0, 4 }
  0x37   : > { %868 = vmatpush.bf16.msrb.mxu1 %v4058_v24  ;;  %1169 = vmatpush.bf16.msrb.mxu2 %v4066_v25  ;;  %v589_v24 = vshll.u32 %v537_v11, 16  ;;  %v1004_v25 = vsel %vm4433_vm5, %v1002_v8, %v1003_v9  ;;  %v1542_v11 = vrot.slane %v1540_v54, 4 }
  0x38   : > { %1399 = vmatpush.bf16.msrb.mxu3 %v4082_v29  ;;  %1809 = vmatpush.bf16.msrb.mxu0 %v4090_v30  ;;  %v1520_v29 = vrot.slane %v1519_v14, 4  ;;  %v1524_v30 = vrot.slane %v1522_v15, 5  ;;  %v1088_v40 = vunpack.c.l.b16 %v1004_v25  ;;  %v4098_v25 = vld [vmem:[%s5164_s1 + $0x168] sm:$0xff] }
  0x39   : > { %v591_v43 = vrot.slane %v589_v24, 5  ;;  %v1010_v24 = vrot.slane %v952_v12, 5 }
  0x3a   : > { %v1525_v51 = vsel %vm4427_vm4, %v1520_v29, %v1524_v30  ;;  %v1546_v29 = vshll.u32 %v3637_v13, 16  ;;  %v610_v30 = vshrl.u32 %v540_v17, 16  ;;  %v3640_v13 = vld [vmem:[%s4333_s29 + $0x2c] sm:$0x1] }
  0x3b   : > { %869 = vmatpush.bf16.msrb.mxu1 %v4057_v34  ;;  %1170 = vmatpush.bf16.msrb.mxu2 %v4065_v35  ;;  %v1087_v34 = vunpack.c.l.b16 %v1001_v22  ;;  %v4086_v35 = vld [vmem:[%s5164_s1 + $0x108] sm:$0xff]  ;;  %v592_v60 = vor.u32 %v591_v43, %v588_v42  ;;  %v1728_v5 = vunpack.c.l.b16 %v1525_v51 }
  0x3c   : > { %1400 = vmatpush.bf16.msrb.mxu3 %v4081_v45  ;;  %1810 = vmatpush.bf16.msrb.mxu0 %v4089_v47  ;;  %v539_v45 = vld [vmem:[%s4333_s29 + $0x14] sm:$0x1]  ;;  %v601_v47 = vrot.slane %v599_v27, 4  ;;  %v1548_v43 = vrot.slane %v1546_v29, 5 }
  0x3d   : > { %v1103_v58 = vpack.c.b16 %v1088_v40, %v1087_v34  ;;  %v593_v14 = vrot.slane %v592_v60, 4  ;;  %v1011_v40 = vsel %vm4433_vm5, %v1009_v21, %v1010_v24  ;;  %v4097_v24 = vld [vmem:[%s5164_s1 + $0x160] sm:$0xff] }
  0x3e   : > { %476 = vmatmul.bf16.gmra.mxu1 %v4040_v48  ;;  %486 = vmatmul.bf16.gmra.mxu2 %v4042_v52  ;;  %v1515_v48 = vsel %vm4427_vm4, %v1510_v28, %v4412_v59  ;;  %v1530_v52 = vshll.u32 %v3635_v31, 16  ;;  %v4124_v59 = vld [vmem:[%s5164_s1 + $0x1f8] sm:$0xff] }
  0x3f   : > { %870 = vmatpush.bf16.msrb.mxu1 %v4056_v44  ;;  %1171 = vmatpush.bf16.msrb.mxu2 %v4064_v49  ;;  %v4116_v44 = vld [vmem:[%s5164_s1 + $0x1b8] sm:$0xff]  ;;  %v1527_v49 = vshrl.u32 %v3635_v31, 16  ;;  %v1727_v4 = vunpack.c.l.b16 %v1515_v48  ;;  %v613_v31 = vshll.u32 %v540_v17, 16  ;;  %v598_v34 = vsel %vm4427_vm4, %v593_v14, %v4485_v46 }
  0x40   : > { %1401 = vmatpush.bf16.msrb.mxu3 %v4080_v61  ;;  %1811 = vmatpush.bf16.msrb.mxu0 %v4088_v63  ;;  %v605_v61 = vshll.u32 %v539_v45, 16  ;;  %v602_v63 = vor.u32 %v601_v47, %v4485_v46  ;;  %v1532_v9 = vrot.slane %v1530_v52, 5  ;;  %v3639_v46 = vld [vmem:[%s4333_s29 + $0x28] sm:$0xf]  ;;  %v542_v47 = vld [vmem:[%s4333_s29 + $0x20] sm:$0x1]  ;;  %v788_v52 = vunpack.c.l.b16 %v598_v34 }
  0x41   : > { %496 = vmatmul.bf16.gmra.mxu3 %v4044_v2  ;;  %466 = vmatmul.bf16.gmra.mxu0 %v4038_v10  ;;  %v4115_v2 = vld [vmem:[%s5164_s1 + $0x1b0] sm:$0xff]  ;;  %v1529_v8 = vrot.slane %v1527_v49, 4  ;;  %v4517_v10 = vrot.slane %v1536_v53, 5  ;;  %v1743_v22 = vpack.c.b16 %v1728_v5, %v1727_v4  ;;  %v615_v45 = vrot.slane %v613_v31, 5 }
  0x42   : > { %v607_v15 = vrot.slane %v605_v61, 5  ;;  %v1564_v60 = vshrl.u32 %v3639_v46, 16  ;;  %v629_v61 = vshll.u32 %v542_v47, 16 }
  0x43   : > { %871 = vmatpush.bf16.msrb.mxu1 %v4055_v57  ;;  %1172 = vmatpush.bf16.msrb.mxu2 %v4063_v1  ;;  %v802_v57 = vpack.c.b16 %v787_v39, %v4466_v33  ;;  %v4099_v1 = vld [vmem:[%s5164_s1 + $0x170] sm:$0xff]  ;;  %v1533_v27 = vor.u32 %v1532_v9, %v1529_v8  ;;  %v1543_v28 = vor.u32 %v1542_v11, %v4517_v10  ;;  %v623_v33 = vshrl.u32 %v541_v23, 16  ;;  %v3638_v39 = vld [vmem:[%s4333_s29 + $0x24] sm:$0xf]  ;;  %v953_v9 = vld [vmem:[%s4333_s29 + $0x18] sm:$0xe] }
  0x44   : > { %1402 = vmatpush.bf16.msrb.mxu3 %v4079_v16  ;;  %1812 = vmatpush.bf16.msrb.mxu0 %v4087_v18  ;;  %v4123_v16 = vld [vmem:[%s5164_s1 + $0x1f0] sm:$0xff]  ;;  %v1551_v50 = vshrl.u32 %v3638_v39, 16  ;;  %v1554_v51 = vshll.u32 %v3638_v39, 16  ;;  %v1566_v12 = vrot.slane %v1564_v60, 4 }
  0x45   : > { %v4069_v18 = vld [vmem:[%s4333_s29 + $0xc] sm:$0xff]  ;;  %v1544_v42 = vrot.slane %v1543_v28, 4  ;;  %v625_v49 = vrot.slane %v623_v33, 4  ;;  %v544_v28 = vld [vmem:[%s4333_s29 + $0x28] sm:$0xf] }
  0x46   : > { %v3642_v39 = vld [vmem:[%s4333_s29 + $0x34] sm:$0xf] }
  0x47   : > { %872 = vmatpush.bf16.msrb.mxu1 %v4054_v19  ;;  %1173 = vmatpush.bf16.msrb.mxu2 %v4062_v20  ;;  %v603_v19 = vrot.slane %v602_v63, 4  ;;  %v3479_v20 = vrot.slane %v950_v6, 9 }
  0x48   : > { %1403 = vmatpush.bf16.msrb.mxu3 %v4078_v32  ;;  %1813 = vmatpush.bf16.msrb.mxu0 %v4086_v35  ;;  %v619_v32 = vshll.u32 %v541_v23, 16  ;;  %v543_v23 = vld [vmem:[%s4333_s29 + $0x24] sm:$0xf] }
  0x49   : > { %v608_v35 = vsel %vm4427_vm4, %v603_v19, %v607_v15  ;;  %v1008_v36 = vsel %vm4433_vm5, %v3479_v20, %v1007_v0  ;;  %v1553_v0 = vrot.slane %v1551_v50, 4  ;;  %v3480_v19 = vrot.slane %v953_v9, 9 }
  0x4a   : > { %v4552_v48 = vrot.slane %v619_v32, 5  ;;  %v789_v53 = vunpack.c.l.b16 %v608_v35  ;;  %v1089_v54 = vunpack.c.l.b16 %v1008_v36  ;;  %v3641_v32 = vld [vmem:[%s4333_s29 + $0x30] sm:$0xf]  ;;  %v634_v35 = vshrl.u32 %v543_v23, 16 }
  0x4b   : > { %873 = vmatpush.bf16.msrb.mxu1 %v4053_v37  ;;  %1174 = vmatpush.bf16.msrb.mxu2 %v4061_v38  ;;  %v4122_v37 = vld [vmem:[%s5164_s1 + $0x1e8] sm:$0xff]  ;;  %v4131_v38 = vld [vmem:[%s5164_s1 + $0x230] sm:$0xff]  ;;  %v637_v36 = vshll.u32 %v543_v23, 16  ;;  %v1578_v47 = vshll.u32 %v3641_v32, 16 }
  0x4c   : > { %1404 = vmatpush.bf16.msrb.mxu3 %v4077_v55  ;;  %1814 = vmatpush.bf16.msrb.mxu0 %v4085_v56  ;;  %v1090_v55 = vunpack.c.l.b16 %v1011_v40  ;;  %v954_v56 = vld [vmem:[%s4333_s29 + $0x1c] sm:$0xf]  ;;  %v626_v63 = vor.u32 %v625_v49, %v4552_v48  ;;  %v803_v6 = vpack.c.b16 %v789_v53, %v788_v52  ;;  %v643_v40 = vshll.u32 %v544_v28, 16 }
  0x4d   : > { %v1588_v49 = vshrl.u32 %v3642_v39, 16  ;;  %v636_v52 = vrot.slane %v634_v35, 4  ;;  %v639_v53 = vrot.slane %v637_v36, 5  ;;  %v4120_v36 = vld [vmem:[%s5164_s1 + $0x1d8] sm:$0xff] }
  0x4e   : > { %874 = vmatmul.bf16.vlgmr.msrb.gmra.mxu1 %v802_v57  ;;  %1175 = vmatmul.bf16.vlgmr.msrb.gmra.mxu2 %v1103_v58  ;;  %v1549_v58 = vsel %vm4427_vm4, %v1544_v42, %v1548_v43  ;;  %v1104_v8 = vpack.c.b16 %v1090_v55, %v1089_v54  ;;  %v627_v15 = vrot.slane %v626_v63, 4  ;;  %v545_v54 = vld [vmem:[%s4333_s29 + $0x2c] sm:$0x1]  ;;  %v4594_v55 = vrot.slane %v643_v40, 5 }
  0x4f   : > { %2105 = vmatpush.bf16.msra.mxu1 %v4100_v41  ;;  %2335 = vmatpush.bf16.msra.mxu2 %v4116_v44  ;;  %v1534_v41 = vrot.slane %v1533_v27, 4  ;;  %v612_v44 = vrot.slane %v610_v30, 4  ;;  %v1730_v5 = vunpack.c.l.b16 %v1549_v58  ;;  %v1570_v27 = vshll.u32 %v3640_v13, 16  ;;  %v546_v13 = vld [vmem:[%s4333_s29 + $0x30] sm:$0xf] }
  0x50   : > { %2745 = vmatpush.bf16.msra.mxu3 %v4124_v59  ;;  %3043 = vmatpush.bf16.msra.mxu0 %v4132_v62  ;;  %v1560_v59 = vshll.u32 %v3639_v46, 16  ;;  %v1575_v46 = vshrl.u32 %v3641_v32, 16  ;;  %v1590_v63 = vrot.slane %v1588_v49, 4 }
  0x51   : > { %1405 = vmatmul.bf16.vlgmr.msrb.gmra.mxu3 %v4069_v18  ;;  %1815 = vmatmul.bf16.vlgmr.msrb.gmra.mxu0 %v1743_v22  ;;  %v1539_v57 = vsel %vm4427_vm4, %v1534_v41, %v4517_v10  ;;  %v616_v62 = vor.u32 %v615_v45, %v612_v44  ;;  %v955_v10 = vld [vmem:[%s4333_s29 + $0x20] sm:$0x1]  ;;  %v4070_v18 = vld [vmem:[%s4333_s29 + $0x18] sm:$0xff]  ;;  %v647_v41 = vshrl.u32 %v544_v28, 16  ;;  %v1572_v43 = vrot.slane %v1570_v27, 5 }
  0x52   : > { %v1729_v4 = vunpack.c.l.b16 %v1539_v57  ;;  %v4563_v11 = vrot.slane %v1560_v59, 5  ;;  %v1017_v21 = vrot.slane %v955_v10, 5  ;;  %v957_v59 = vld [vmem:[%s4333_s29 + $0x28] sm:$0xf]  ;;  %v1577_v60 = vrot.slane %v1575_v46, 4  ;;  %v4112_v27 = vld [vmem:[%s5164_s1 + $0x198] sm:$0xff] }
  0x53   : > { %2106 = vmatpush.bf16.msra.mxu1 %v4099_v1  ;;  %2336 = vmatpush.bf16.msra.mxu2 %v4115_v2  ;;  %v1556_v1 = vrot.slane %v1554_v51, 5  ;;  %v1014_v2 = vrot.slane %v954_v56, 5  ;;  %v617_v14 = vrot.slane %v616_v62, 4  ;;  %v649_v56 = vrot.slane %v647_v41, 4  ;;  %v3644_v41 = vld [vmem:[%s4333_s29 + $0x3c] sm:$0xf] }
  0x54   : > { %2746 = vmatpush.bf16.msra.mxu3 %v4123_v16  ;;  %3044 = vmatpush.bf16.msra.mxu0 %v4131_v38  ;;  %v631_v16 = vrot.slane %v629_v61, 5  ;;  %v1744_v22 = vpack.c.b16 %v1730_v5, %v1729_v4  ;;  %v4130_v38 = vld [vmem:[%s5164_s1 + $0x228] sm:$0xff]  ;;  %v1580_v61 = vrot.slane %v1578_v47, 5  ;;  %v3643_v5 = vld [vmem:[%s4333_s29 + $0x38] sm:$0x1]  ;;  %v1021_v10 = vrot.slane %v957_v59, 5 }
  0x55   : > { %v1557_v17 = vor.u32 %v1556_v1, %v1553_v0  ;;  %v1016_v20 = vrot.slane %v1014_v2, 4  ;;  %v622_v29 = vsel %vm4427_vm4, %v617_v14, %v4552_v48  ;;  %v1015_v33 = vsel %vm4433_vm5, %v3480_v19, %v1014_v2  ;;  %v547_v14 = vld [vmem:[%s4333_s29 + $0x34] sm:$0xf] }
  0x56   : > { %v632_v30 = vsel %vm4427_vm4, %v627_v15, %v631_v16  ;;  %v790_v44 = vunpack.c.l.b16 %v622_v29  ;;  %v1584_v48 = vshll.u32 %v3642_v39, 16  ;;  %v1091_v50 = vunpack.c.l.b16 %v1015_v33 }
  0x57   : > { %2107 = vmatpush.bf16.msra.mxu1 %v4098_v25  ;;  %2337 = vmatpush.bf16.msra.mxu2 %v4114_v26  ;;  %v4113_v25 = vld [vmem:[%s5164_s1 + $0x1a0] sm:$0xff]  ;;  %v1567_v26 = vor.u32 %v1566_v12, %v4563_v11  ;;  %v1558_v31 = vrot.slane %v1557_v17, 4  ;;  %v1018_v34 = vsel %vm4433_vm5, %v1016_v20, %v1017_v21  ;;  %v791_v45 = vunpack.c.l.b16 %v632_v30  ;;  %v958_v12 = vld [vmem:[%s4333_s29 + $0x2c] sm:$0x1] }
  0x58   : > { %2747 = vmatpush.bf16.msra.mxu3 %v4122_v37  ;;  %v4121_v37 = vld [vmem:[%s5164_s1 + $0x1e0] sm:$0xff]  ;;  %3045 = vmatpush.bf16.msra.mxu0 %v4130_v38  ;;  %v1092_v51 = vunpack.c.l.b16 %v1018_v34  ;;  %v4602_v62 = vrot.slane %v1584_v48, 5  ;;  %v640_v0 = vor.u32 %v639_v53, %v636_v52  ;;  %v653_v1 = vshll.u32 %v545_v54, 16 }
  0x59   : > { %v1568_v42 = vrot.slane %v1567_v26, 4  ;;  %v1563_v57 = vsel %vm4427_vm4, %v1558_v31, %v4563_v11  ;;  %v650_v9 = vor.u32 %v649_v56, %v4594_v55  ;;  %v956_v11 = vld [vmem:[%s4333_s29 + $0x24] sm:$0xe]  ;;  %v1581_v15 = vor.u32 %v1580_v61, %v1577_v60  ;;  %v4096_v26 = vld [vmem:[%s5164_s1 + $0x158] sm:$0xff]  ;;  %v960_v61 = vld [vmem:[%s4333_s29 + $0x34] sm:$0xf] }
  0x5a   : > { %v1731_v2 = vunpack.c.l.b16 %v1563_v57  ;;  %v1591_v16 = vor.u32 %v1590_v63, %v4602_v62  ;;  %v1594_v17 = vshll.u32 %v3643_v5, 16  ;;  %v641_v19 = vrot.slane %v640_v0, 4 }
  0x5b   : > { %2108 = vmatpush.bf16.msra.mxu1 %v4097_v24  ;;  %2338 = vmatpush.bf16.msra.mxu2 %v4113_v25  ;;  %v1573_v58 = vsel %vm4427_vm4, %v1568_v42, %v1572_v43  ;;  %v655_v20 = vrot.slane %v653_v1, 5  ;;  %v3481_v23 = vrot.slane %v956_v11, 9  ;;  %v1023_v24 = vrot.slane %v1021_v10, 4  ;;  %v3645_v42 = vld [vmem:[%s4333_s29 + $0x40] sm:$0xf] }
  0x5c   : > { %2748 = vmatpush.bf16.msra.mxu3 %v4121_v37  ;;  %v1732_v4 = vunpack.c.l.b16 %v1573_v58  ;;  %v1024_v25 = vrot.slane %v958_v12, 5  ;;  %v658_v28 = vshrl.u32 %v546_v13, 16  ;;  %v661_v29 = vshll.u32 %v546_v13, 16  ;;  %v4129_v37 = vld [vmem:[%s5164_s1 + $0x220] sm:$0xff]  ;;  %v548_v43 = vld [vmem:[%s4333_s29 + $0x38] sm:$0x1] }
  0x5d   : > { %v667_v30 = vshll.u32 %v547_v14, 16  ;;  %v671_v31 = vshrl.u32 %v547_v14, 16  ;;  %v1582_v32 = vrot.slane %v1581_v15, 4  ;;  %v1592_v33 = vrot.slane %v1591_v16, 4  ;;  %3046 = vmatpush.bf16.msra.mxu0 %v4129_v37  ;;  %v959_v13 = vld [vmem:[%s4333_s29 + $0x30] sm:$0xe] }
  0x5e   : > { %879 = vmatmul.bf16.gmra.mxu1 %v803_v6  ;;  %1180 = vmatmul.bf16.gmra.mxu2 %v1104_v8  ;;  %v804_v6 = vpack.c.b16 %v791_v45, %v790_v44  ;;  %v1105_v8 = vpack.c.b16 %v1092_v51, %v1091_v50  ;;  %v1745_v21 = vpack.c.b16 %v1732_v4, %v1731_v2  ;;  %v1596_v34 = vrot.slane %v1594_v17, 5  ;;  %v961_v14 = vld [vmem:[%s4333_s29 + $0x38] sm:$0x1]  ;;  %v4072_v15 = vld [vmem:[%s4333_s29 + $0x30] sm:$0xff]  ;;  %v549_v17 = vld [vmem:[%s4333_s29 + $0x3c] sm:$0xf] }
  0x5f   : > { %2109 = vmatpush.bf16.msra.mxu1 %v4096_v26  ;;  %2339 = vmatpush.bf16.msra.mxu2 %v4112_v27  ;;  %v646_v35 = vsel %vm4427_vm4, %v641_v19, %v4594_v55  ;;  %v1022_v39 = vsel %vm4433_vm5, %v3481_v23, %v1021_v10  ;;  %v1025_v40 = vsel %vm4433_vm5, %v1023_v24, %v1024_v25  ;;  %v660_v44 = vrot.slane %v658_v28, 4  ;;  %v3646_v10 = vld [vmem:[%s4333_s29 + $0x44] sm:$0x1]  ;;  %v4095_v25 = vld [vmem:[%s5164_s1 + $0x150] sm:$0xff] }
  0x60   : > { %v663_v45 = vrot.slane %v661_v29, 5  ;;  %v4636_v46 = vrot.slane %v667_v30, 5  ;;  %v673_v47 = vrot.slane %v671_v31, 4  ;;  %2749 = vmatpush.bf16.msra.mxu3 %v4120_v36  ;;  %v792_v48 = vunpack.c.l.b16 %v646_v35  ;;  %v4111_v26 = vld [vmem:[%s5164_s1 + $0x190] sm:$0xff] }
  0x61   : > { %1410 = vmatmul.bf16.gmra.mxu3 %v4070_v18  ;;  %1820 = vmatmul.bf16.gmra.mxu0 %v1744_v22  ;;  %v4071_v18 = vld [vmem:[%s4333_s29 + $0x24] sm:$0xff]  ;;  %v651_v22 = vrot.slane %v650_v9, 4  ;;  %v1587_v49 = vsel %vm4427_vm4, %v1582_v32, %v4602_v62  ;;  %v1597_v50 = vsel %vm4427_vm4, %v1592_v33, %v1596_v34  ;;  %v1599_v51 = vshrl.u32 %v3644_v41, 16 }
  0x62   : > { %v1602_v52 = vshll.u32 %v3644_v41, 16  ;;  %v1608_v53 = vshll.u32 %v3645_v42, 16  ;;  %v1612_v54 = vshrl.u32 %v3645_v42, 16  ;;  %v1093_v56 = vunpack.c.l.b16 %v1022_v39  ;;  %v3648_v41 = vld [vmem:[%s4333_s29 + $0x4c] sm:$0xf] }
  0x63   : > { %v656_v38 = vsel %vm4427_vm4, %v651_v22, %v655_v20  ;;  %v1094_v57 = vunpack.c.l.b16 %v1025_v40  ;;  %v677_v58 = vshll.u32 %v548_v43, 16  ;;  %v664_v59 = vor.u32 %v663_v45, %v660_v44  ;;  %2110 = vmatpush.bf16.msra.mxu1 %v4095_v25  ;;  %2340 = vmatpush.bf16.msra.mxu2 %v4111_v26  ;;  %v3647_v40 = vld [vmem:[%s4333_s29 + $0x48] sm:$0xf]  ;;  %v551_v42 = vld [vmem:[%s4333_s29 + $0x44] sm:$0x1] }
  0x64   : > { %v793_v55 = vunpack.c.l.b16 %v656_v38  ;;  %v674_v60 = vor.u32 %v673_v47, %v4636_v46  ;;  %v1733_v62 = vunpack.c.l.b16 %v1587_v49  ;;  %v1734_v63 = vunpack.c.l.b16 %v1597_v50 }
  0x65   : > { %v1601_v0 = vrot.slane %v1599_v51, 4  ;;  %v1604_v1 = vrot.slane %v1602_v52, 5  ;;  %v4645_v2 = vrot.slane %v1608_v53, 5  ;;  %v1614_v4 = vrot.slane %v1612_v54, 4 }
  0x66   : > { %v805_v5 = vpack.c.b16 %v793_v55, %v792_v48  ;;  %v1028_v9 = vrot.slane %v960_v61, 5  ;;  %v665_v11 = vrot.slane %v664_v59, 4  ;;  %v675_v12 = vrot.slane %v674_v60, 4 }
  0x67   : > { %v1746_v16 = vpack.c.b16 %v1734_v63, %v1733_v62  ;;  %v1605_v19 = vor.u32 %v1604_v1, %v1601_v0  ;;  %v1615_v20 = vor.u32 %v1614_v4, %v4645_v2  ;;  %v3482_v22 = vrot.slane %v959_v13, 9  ;;  %v4128_v13 = vld [vmem:[%s5164_s1 + $0x218] sm:$0xff] }
  0x68   : > { %v1030_v23 = vrot.slane %v1028_v9, 4  ;;  %v1031_v24 = vrot.slane %v961_v14, 5  ;;  %v670_v27 = vsel %vm4427_vm4, %v665_v11, %v4636_v46  ;;  %v682_v29 = vshrl.u32 %v549_v17, 16  ;;  %v964_v11 = vld [vmem:[%s4333_s29 + $0x44] sm:$0x1]  ;;  %v4073_v14 = vld [vmem:[%s4333_s29 + $0x3c] sm:$0xff]  ;;  %3047 = vmatpush.bf16.msra.mxu0 %v4128_v13 }
  0x69   : > { %v685_v30 = vshll.u32 %v549_v17, 16  ;;  %v1606_v33 = vrot.slane %v1605_v19, 4  ;;  %v1616_v34 = vrot.slane %v1615_v20, 4  ;;  %v1029_v36 = vsel %vm4433_vm5, %v3482_v22, %v1028_v9  ;;  %v553_v17 = vld [vmem:[%s4333_s29 + $0x4c] sm:$0xf] }
  0x6a   : > { %v1032_v37 = vsel %vm4433_vm5, %v1030_v23, %v1031_v24  ;;  %v794_v38 = vunpack.c.l.b16 %v670_v27  ;;  %v684_v43 = vrot.slane %v682_v29, 4  ;;  %v1095_v47 = vunpack.c.l.b16 %v1029_v36 }
  0x6b   : > { %v687_v44 = vrot.slane %v685_v30, 5  ;;  %v1096_v48 = vunpack.c.l.b16 %v1032_v37  ;;  %v1611_v49 = vsel %vm4427_vm4, %v1606_v33, %v4645_v2  ;;  %v1623_v51 = vshrl.u32 %v3647_v40, 16 }
  0x6c   : > { %v1626_v52 = vshll.u32 %v3647_v40, 16  ;;  %v1632_v53 = vshll.u32 %v3648_v41, 16  ;;  %v1636_v54 = vshrl.u32 %v3648_v41, 16  ;;  %v701_v55 = vshll.u32 %v551_v42, 16  ;;  %v4110_v40 = vld [vmem:[%s5164_s1 + $0x188] sm:$0xff] }
  0x6d   : > { %v1107_v60 = vpack.c.b16 %v1096_v48, %v1095_v47  ;;  %v1735_v61 = vunpack.c.l.b16 %v1611_v49  ;;  %v1625_v63 = vrot.slane %v1623_v51, 4  ;;  %v1038_v24 = vrot.slane %v964_v11, 5  ;;  %2341 = vmatpush.bf16.msra.mxu2 %v4110_v40  ;;  %v556_v11 = vld [vmem:[%s4333_s29 + $0x58] sm:$0xf] }
  0x6e   : > { %884 = vmatmul.bf16.gmra.mxu1 %v804_v6  ;;  %1185 = vmatmul.bf16.gmra.mxu2 %v1105_v8  ;;  %v1106_v6 = vpack.c.b16 %v1094_v57, %v1093_v56  ;;  %v679_v8 = vrot.slane %v677_v58, 5  ;;  %v688_v56 = vor.u32 %v687_v44, %v684_v43  ;;  %v963_v58 = vld [vmem:[%s4333_s29 + $0x40] sm:$0xf]  ;;  %v1628_v0 = vrot.slane %v1626_v52, 5 }
  0x6f   : > { %v4678_v1 = vrot.slane %v1632_v53, 5  ;;  %v1638_v2 = vrot.slane %v1636_v54, 4  ;;  %v703_v4 = vrot.slane %v701_v55, 5  ;;  %v715_v29 = vshll.u32 %v553_v17, 16  ;;  %v554_v53 = vld [vmem:[%s4333_s29 + $0x50] sm:$0x1] }
  0x70   : > { %v680_v28 = vsel %vm4427_vm4, %v675_v12, %v679_v8  ;;  %v3649_v8 = vld [vmem:[%s4333_s29 + $0x50] sm:$0x1]  ;;  %v689_v9 = vrot.slane %v688_v56, 4  ;;  %v1629_v19 = vor.u32 %v1628_v0, %v1625_v63  ;;  %v719_v30 = vshrl.u32 %v553_v17, 16  ;;  %v966_v54 = vld [vmem:[%s4333_s29 + $0x4c] sm:$0xf] }
  0x71   : > { %1415 = vmatmul.bf16.gmra.mxu3 %v4071_v18  ;;  %1825 = vmatmul.bf16.gmra.mxu0 %v1745_v21  ;;  %v550_v18 = vld [vmem:[%s4333_s29 + $0x40] sm:$0xf]  ;;  %v1618_v21 = vshll.u32 %v3646_v10, 16  ;;  %v795_v39 = vunpack.c.l.b16 %v680_v28  ;;  %v4119_v12 = vld [vmem:[%s5164_s1 + $0x1d0] sm:$0xff]  ;;  %v1639_v20 = vor.u32 %v1638_v2, %v4678_v1  ;;  %v4709_v47 = vrot.slane %v715_v29, 5 }
  0x72   : > { %v691_v31 = vshll.u32 %v550_v18, 16  ;;  %v695_v32 = vshrl.u32 %v550_v18, 16  ;;  %v4094_v18 = vld [vmem:[%s5164_s1 + $0x148] sm:$0xff]  ;;  %2750 = vmatpush.bf16.msra.mxu3 %v4119_v12  ;;  %v1630_v33 = vrot.slane %v1629_v19, 4  ;;  %v721_v48 = vrot.slane %v719_v30, 4 }
  0x73   : > { %v1620_v35 = vrot.slane %v1618_v21, 5  ;;  %v806_v59 = vpack.c.b16 %v795_v39, %v794_v38  ;;  %v1642_v21 = vshll.u32 %v3649_v8, 16  ;;  %2111 = vmatpush.bf16.msra.mxu1 %v4094_v18  ;;  %v3652_v63 = vld [vmem:[%s4333_s29 + $0x5c] sm:$0x1]  ;;  %v725_v2 = vshll.u32 %v554_v53, 16 }
  0x74   : > { %v693_v45 = vrot.slane %v691_v31, 5  ;;  %v697_v46 = vrot.slane %v695_v32, 4  ;;  %v3650_v31 = vld [vmem:[%s4333_s29 + $0x54] sm:$0xf]  ;;  %v3651_v32 = vld [vmem:[%s4333_s29 + $0x58] sm:$0xf]  ;;  %v1635_v51 = vsel %vm4427_vm4, %v1630_v33, %v4678_v1 }
  0x75   : > { %v1621_v50 = vsel %vm4427_vm4, %v1616_v34, %v1620_v35  ;;  %v1640_v34 = vrot.slane %v1639_v20, 4  ;;  %v1644_v35 = vrot.slane %v1642_v21, 5  ;;  %v1647_v41 = vshrl.u32 %v3650_v31, 16  ;;  %v555_v8 = vld [vmem:[%s4333_s29 + $0x54] sm:$0xf] }
  0x76   : > { %v698_v57 = vor.u32 %v697_v46, %v693_v45  ;;  %v1736_v62 = vunpack.c.l.b16 %v1621_v50  ;;  %v694_v25 = vsel %vm4427_vm4, %v689_v9, %v693_v45  ;;  %v1650_v42 = vshll.u32 %v3650_v31, 16  ;;  %v4118_v9 = vld [vmem:[%s5164_s1 + $0x1c8] sm:$0xff] }
  0x77   : > { %v796_v36 = vunpack.c.l.b16 %v694_v25  ;;  %v1656_v43 = vshll.u32 %v3651_v32, 16  ;;  %v1660_v44 = vshrl.u32 %v3651_v32, 16  ;;  %v1645_v52 = vsel %vm4427_vm4, %v1640_v34, %v1644_v35  ;;  %2751 = vmatpush.bf16.msra.mxu3 %v4118_v9  ;;  %v4109_v35 = vld [vmem:[%s5164_s1 + $0x180] sm:$0xff] }
  0x78   : > { %v699_v10 = vrot.slane %v698_v57, 4  ;;  %v1649_v55 = vrot.slane %v1647_v41, 4  ;;  %v1652_v56 = vrot.slane %v1650_v42, 5  ;;  %v727_v19 = vrot.slane %v725_v2, 5  ;;  %v557_v42 = vld [vmem:[%s4333_s29 + $0x5c] sm:$0x1]  ;;  %2342 = vmatpush.bf16.msra.mxu2 %v4109_v35 }
  0x79   : > { %v4718_v57 = vrot.slane %v1656_v43, 5  ;;  %v733_v25 = vshll.u32 %v555_v8, 16 }
  0x7a   : > { %v704_v26 = vsel %vm4427_vm4, %v699_v10, %v703_v4  ;;  %v1042_v4 = vrot.slane %v966_v54, 5  ;;  %v4127_v10 = vld [vmem:[%s5164_s1 + $0x210] sm:$0xff]  ;;  %v1653_v12 = vor.u32 %v1652_v56, %v1649_v55  ;;  %v749_v56 = vshll.u32 %v557_v42, 16 }
  0x7b   : > { %v797_v37 = vunpack.c.l.b16 %v704_v26  ;;  %3048 = vmatpush.bf16.msra.mxu0 %v4127_v10  ;;  %v739_v26 = vshll.u32 %v556_v11, 16 }
  0x7c   : > { %v1044_v21 = vrot.slane %v1042_v4, 4 }
  0x7d   : > { %v807_v0 = vpack.c.b16 %v797_v37, %v796_v36  ;;  %v3653_v36 = vld [vmem:[%s4333_s29 + $0x60] sm:$0xf]  ;;  %v3654_v37 = vld [vmem:[%s4333_s29 + $0x64] sm:$0xf]  ;;  %v4756_v40 = vrot.slane %v739_v26, 5 }
  0x7e   : > { %889 = vmatmul.bf16.gmra.mxu1 %v805_v5  ;;  %1190 = vmatmul.bf16.gmra.mxu2 %v1106_v6  ;;  %v962_v5 = vld [vmem:[%s4333_s29 + $0x3c] sm:$0xe]  ;;  %v1035_v6 = vrot.slane %v963_v58, 5  ;;  %v1662_v58 = vrot.slane %v1660_v44, 4 }
  0x7f   : > { %v3483_v22 = vrot.slane %v962_v5, 9  ;;  %v965_v5 = vld [vmem:[%s4333_s29 + $0x48] sm:$0xe]  ;;  %v3883_v26 = vld [vmem:[%s4333_s29 + $0x1c] sm:$0xf] }
  0x80   : > { %v1037_v23 = vrot.slane %v1035_v6, 4  ;;  %v1663_v13 = vor.u32 %v1662_v58, %v4718_v57  ;;  %v3484_v20 = vrot.slane %v965_v5, 9  ;;  %v968_v58 = vld [vmem:[%s4333_s29 + $0x54] sm:$0xe] }
  0x81   : > { %1420 = vmatmul.bf16.gmra.mxu3 %v4072_v15  ;;  %1830 = vmatmul.bf16.gmra.mxu0 %v1746_v16  ;;  %v1747_v15 = vpack.c.b16 %v1736_v62, %v1735_v61  ;;  %v552_v16 = vld [vmem:[%s4333_s29 + $0x48] sm:$0xf]  ;;  %v1036_v38 = vsel %vm4433_vm5, %v3483_v22, %v1035_v6  ;;  %v1737_v61 = vunpack.c.l.b16 %v1635_v51  ;;  %v1738_v62 = vunpack.c.l.b16 %v1645_v52  ;;  %v967_v6 = vld [vmem:[%s4333_s29 + $0x50] sm:$0x1] }
  0x82   : > { %v706_v27 = vshrl.u32 %v552_v16, 16  ;;  %v709_v28 = vshll.u32 %v552_v16, 16  ;;  %v1039_v39 = vsel %vm4433_vm5, %v1037_v23, %v1038_v24  ;;  %v1097_v49 = vunpack.c.l.b16 %v1036_v38  ;;  %v4093_v23 = vld [vmem:[%s5164_s1 + $0x140] sm:$0xff] }
  0x83   : > { %v1098_v50 = vunpack.c.l.b16 %v1039_v39  ;;  %v1748_v18 = vpack.c.b16 %v1738_v62, %v1737_v61  ;;  %v1045_v22 = vrot.slane %v967_v6, 5  ;;  %v730_v24 = vshrl.u32 %v555_v8, 16  ;;  %2112 = vmatpush.bf16.msra.mxu1 %v4093_v23  ;;  %v970_v62 = vld [vmem:[%s4333_s29 + $0x5c] sm:$0x1]  ;;  %v4126_v6 = vld [vmem:[%s5164_s1 + $0x208] sm:$0xff] }
  0x84   : > { %v708_v45 = vrot.slane %v706_v27, 4  ;;  %v711_v46 = vrot.slane %v709_v28, 5  ;;  %v743_v27 = vshrl.u32 %v556_v11, 16  ;;  %v1654_v28 = vrot.slane %v1653_v12, 4  ;;  %v3655_v8 = vld [vmem:[%s4333_s29 + $0x68] sm:$0x1]  ;;  %3049 = vmatpush.bf16.msra.mxu0 %v4126_v6 }
  0x85   : > { %v1108_v1 = vpack.c.b16 %v1098_v50, %v1097_v49  ;;  %v1664_v29 = vrot.slane %v1663_v13, 4  ;;  %v1043_v33 = vsel %vm4433_vm5, %v3484_v20, %v1042_v4  ;;  %v1046_v34 = vsel %vm4433_vm5, %v1044_v21, %v1045_v22 }
  0x86   : > { %v732_v38 = vrot.slane %v730_v24, 4  ;;  %v735_v39 = vrot.slane %v733_v25, 5  ;;  %v745_v41 = vrot.slane %v743_v27, 4  ;;  %v1659_v43 = vsel %vm4427_vm4, %v1654_v28, %v4718_v57  ;;  %v4775_v57 = vld [vmem:[%s5165_s2] ss:$0 sm:$0xff] }
  0x87   : > { %v1684_v49 = vshrl.u32 %v3654_v37, 16  ;;  %v1099_v52 = vunpack.c.l.b16 %v1043_v33  ;;  %v1100_v53 = vunpack.c.l.b16 %v1046_v34  ;;  %v751_v12 = vrot.slane %v749_v56, 5  ;;  %v3882_v24 = vld [vmem:[%s4333_s29 + $0x18] sm:$0xf]  ;;  %v4125_v25 = vld [vmem:[%s5164_s1 + $0x200] sm:$0xff] }
  0x88   : > { %v736_v54 = vor.u32 %v735_v39, %v732_v38  ;;  %v746_v55 = vor.u32 %v745_v41, %v4756_v40  ;;  %v1690_v22 = vshll.u32 %v3655_v8, 16  ;;  %3050 = vmatpush.bf16.msra.mxu0 %v4125_v25  ;;  %v2441_v35 = vshrl.u32 %v3882_v24, 16  ;;  %v3884_v56 = vld [vmem:[%s4333_s29 + $0x20] sm:$0x1]  ;;  %v3706_v8 = vld [vmem:[%s4333_s29 + $0x14] sm:$0x1] }
  0x89   : > { %v1686_v2 = vrot.slane %v1684_v49, 4  ;;  %v1109_v5 = vpack.c.b16 %v1100_v53, %v1099_v52  ;;  %v2450_v38 = vshll.u32 %v3883_v26, 16  ;;  %v2454_v39 = vshrl.u32 %v3883_v26, 16 }
  0x8a   : > { %v737_v10 = vrot.slane %v736_v54, 4  ;;  %v747_v11 = vrot.slane %v746_v55, 4  ;;  %v1692_v34 = vrot.slane %v1690_v22, 5  ;;  %v3705_v55 = vld [vmem:[%s4333_s29 + $0x10] sm:$0xf] }
  0x8b   : > { %v2452_v53 = vrot.slane %v2450_v38, 5  ;;  %v2456_v54 = vrot.slane %v2454_v39, 4 }
  0x8c   : > { %v742_v27 = vsel %vm4427_vm4, %v737_v10, %v4756_v40  ;;  %v752_v28 = vsel %vm4427_vm4, %v747_v11, %v751_v12 }
  0x8e   : > { %894 = vmatmul.bf16.gmra.mxu1 %v806_v59  ;;  %1195 = vmatmul.bf16.gmra.mxu2 %v1107_v60  ;;  %v712_v59 = vor.u32 %v711_v46, %v708_v45  ;;  %v722_v60 = vor.u32 %v721_v48, %v4709_v47  ;;  %v969_v45 = vld [vmem:[%s4333_s29 + $0x58] sm:$0xf]  ;;  %v1671_v46 = vshrl.u32 %v3653_v36, 16  ;;  %v1680_v48 = vshll.u32 %v3654_v37, 16 }
  0x8f   : > { %v2444_v37 = vshll.u32 %v3882_v24, 16 }
  0x90   : > { %v713_v16 = vrot.slane %v712_v59, 4  ;;  %v723_v17 = vrot.slane %v722_v60, 4  ;;  %v1049_v59 = vrot.slane %v969_v45, 5  ;;  %v1739_v60 = vunpack.c.l.b16 %v1659_v43 }
  0x91   : > { %1425 = vmatmul.bf16.gmra.mxu3 %v4073_v14  ;;  %1835 = vmatmul.bf16.gmra.mxu0 %v1747_v15  ;;  %v1666_v14 = vshll.u32 %v3652_v63, 16  ;;  %v4074_v15 = vld [vmem:[%s4333_s29 + $0x48] sm:$0xff]  ;;  %v1673_v63 = vrot.slane %v1671_v46, 4  ;;  %v800_v43 = vunpack.c.l.b16 %v742_v27  ;;  %v2446_v52 = vrot.slane %v2444_v37, 5 }
  0x92   : > { %v718_v31 = vsel %vm4427_vm4, %v713_v16, %v4709_v47  ;;  %v728_v32 = vsel %vm4427_vm4, %v723_v17, %v727_v19  ;;  %v1674_v47 = vshll.u32 %v3653_v36, 16  ;;  %v1052_v16 = vrot.slane %v970_v62, 5  ;;  %v4117_v17 = vld [vmem:[%s5164_s1 + $0x1c0] sm:$0xff] }
  0x93   : > { %v1668_v30 = vrot.slane %v1666_v14, 5  ;;  %v798_v50 = vunpack.c.l.b16 %v718_v31  ;;  %v799_v51 = vunpack.c.l.b16 %v728_v32  ;;  %v3485_v14 = vrot.slane %v968_v58, 9  ;;  %2752 = vmatpush.bf16.msra.mxu3 %v4117_v17  ;;  %v3955_v58 = vld [vmem:[%s4333_s29 + $0x1c] sm:$0xf]  ;;  %v4076_v17 = vld [vmem:[%s4333_s29 + $0x60] sm:$0xff] }
  0x94   : > { %v2876_v10 = vrot.slane %v3955_v58, 5 }
  0x95   : > { %v1669_v44 = vsel %vm4427_vm4, %v1664_v29, %v1668_v30  ;;  %v808_v4 = vpack.c.b16 %v799_v51, %v798_v50  ;;  %v1050_v29 = vsel %vm4433_vm5, %v3485_v14, %v1049_v59  ;;  %v2443_v51 = vrot.slane %v2441_v35, 4  ;;  %v3954_v14 = vld [vmem:[%s4333_s29 + $0x18] sm:$0xe] }
  0x96   : > { %v1740_v61 = vunpack.c.l.b16 %v1669_v44  ;;  %v801_v44 = vunpack.c.l.b16 %v752_v28  ;;  %v1101_v45 = vunpack.c.l.b16 %v1050_v29  ;;  %v3978_v27 = vrot.slane %v3954_v14, 9 }
  0x97   : > { %v2878_v28 = vrot.slane %v2876_v10, 4 }
  0x98   : > { %v1749_v19 = vpack.c.b16 %v1740_v61, %v1739_v60  ;;  %v809_v60 = vpack.c.b16 %v801_v44, %v800_v43 }
  0x9e   : > { %899 = vmatmul.bf16.gmra.mxu1 %v807_v0  ;;  %1200 = vmatmul.bf16.gmra.mxu2 %v1108_v1  ;;  %v1676_v0 = vrot.slane %v1674_v47, 5  ;;  %v4779_v1 = vrot.slane %v1680_v48, 5 }
  0xa0   : > { %v1677_v20 = vor.u32 %v1676_v0, %v1673_v63  ;;  %v1687_v21 = vor.u32 %v1686_v2, %v4779_v1  ;;  %v1938_v2 = vrot.slane %v3705_v55, 5 }
  0xa1   : > { %1430 = vmatmul.bf16.gmra.mxu3 %v4074_v15  ;;  %1840 = vmatmul.bf16.gmra.mxu0 %v1748_v18  ;;  %v1051_v15 = vrot.slane %v1049_v59, 4  ;;  %v4075_v18 = vld [vmem:[%s4333_s29 + $0x54] sm:$0xff] }
  0xa2   : > { %v1678_v32 = vrot.slane %v1677_v20, 4  ;;  %v1688_v33 = vrot.slane %v1687_v21, 4  ;;  %v1940_v20 = vrot.slane %v1938_v2, 4  ;;  %v1941_v21 = vrot.slane %v3706_v8, 5  ;;  %v4101_v8 = vld [vmem:[%s4333_s29 + $0x18] sm:$0xff] }
  0xa3   : > { %v1053_v30 = vsel %vm4433_vm5, %v1051_v15, %v1052_v16  ;;  %v3956_v15 = vld [vmem:[%s4333_s29 + $0x20] sm:$0x1] }
  0xa4   : > { %v1102_v47 = vunpack.c.l.b16 %v1053_v30  ;;  %v1683_v48 = vsel %vm4427_vm4, %v1678_v32, %v4779_v1  ;;  %v1693_v49 = vsel %vm4427_vm4, %v1688_v33, %v1692_v34  ;;  %v3704_v1 = vld [vmem:[%s4333_s29 + $0xc] sm:$0xe]  ;;  %v2879_v29 = vrot.slane %v3956_v15, 5  ;;  %v3885_v30 = vld [vmem:[%s4333_s29 + $0x24] sm:$0xf] }
  0xa5   : > { %v1741_v62 = vunpack.c.l.b16 %v1683_v48  ;;  %v1742_v63 = vunpack.c.l.b16 %v1693_v49  ;;  %v3886_v32 = vld [vmem:[%s4333_s29 + $0x28] sm:$0xf]  ;;  %v1942_v35 = vsel %vm4433_vm5, %v1940_v20, %v1941_v21  ;;  %v2465_v39 = vshrl.u32 %v3885_v30, 16 }
  0xa6   : > { %v1110_v61 = vpack.c.b16 %v1102_v47, %v1101_v45  ;;  %v2468_v45 = vshll.u32 %v3885_v30, 16  ;;  %v2478_v47 = vshrl.u32 %v3886_v32, 16  ;;  %v3958_v15 = vld [vmem:[%s4333_s29 + $0x28] sm:$0xf] }
  0xa7   : > { %v2883_v30 = vrot.slane %v3958_v15, 5 }
  0xab   : > { %v472_v9 = vpop.f32.mrf.mxu1 }
  0xac   : > { %v4792_v13 = vadd.f32 %v4775_v57, %v472_v9  ;;  %v2460_v9 = vshll.u32 %v3884_v56, 16 }
  0xae   : > { %904 = vmatmul.bf16.gmra.mxu1 %v808_v4  ;;  %1205 = vmatmul.bf16.gmra.mxu2 %v1109_v5  ;;  %v4800_v23 = vpop.f32.mrf.mxu0  ;;  %v2447_v4 = vor.u32 %v2446_v52, %v2443_v51  ;;  %v2457_v5 = vor.u32 %v2456_v54, %v2452_v53  ;;  %v2462_v26 = vrot.slane %v2460_v9, 5  ;;  %v2026_v51 = vunpack.c.l.b16 %v1942_v35  ;;  %v3708_v54 = vld [vmem:[%s4333_s29 + $0x1c] sm:$0xf]  ;;  %v3707_v9 = vld [vmem:[%s4333_s29 + $0x18] sm:$0xe] }
  0xb0   : > { %v2448_v24 = vrot.slane %v2447_v4, 4  ;;  %v2458_v25 = vrot.slane %v2457_v5, 4  ;;  %v3887_v4 = vld [vmem:[%s4333_s29 + $0x2c] sm:$0x1] }
  0xb1   : > { %v482_v31 = vpop.f32.mrf.mxu2  ;;  %1435 = vmatmul.bf16.gmra.mxu3 %v4075_v18  ;;  %1845 = vmatmul.bf16.gmra.mxu0 %v1749_v19  ;;  %v3728_v18 = vrot.slane %v3704_v1, 9  ;;  %v1750_v19 = vpack.c.b16 %v1742_v63, %v1741_v62  ;;  %v2480_v63 = vrot.slane %v2478_v47, 4 }
  0xb2   : > { %v510_v36 = vadd.f32 %v4775_v57, %v482_v31  ;;  %v2463_v38 = vsel %vm4427_vm4, %v2458_v25, %v2462_v26 }
  0xb3   : > { %v474_v40 = vpop.f32.mrf.mxu1  ;;  %v1939_v34 = vsel %vm4433_vm5, %v3728_v18, %v1938_v2  ;;  %v2666_v55 = vunpack.c.l.b16 %v2463_v38  ;;  %v1945_v2 = vrot.slane %v3708_v54, 5 }
  0xb4   : > { %526 = vst [vmem:[%s4819_s28 + $0x40] sm:$0xff] %v510_v36  ;;  %v4824_v41 = vadd.f32 %v4775_v57, %v474_v40  ;;  %v492_v42 = vpop.f32.mrf.mxu3  ;;  %v2453_v36 = vsel %vm4427_vm4, %v2448_v24, %v2452_v53  ;;  %v2877_v40 = vsel %vm4433_vm5, %v3978_v27, %v2876_v10  ;;  %v2025_v49 = vunpack.c.l.b16 %v1939_v34  ;;  %v3709_v10 = vld [vmem:[%s4333_s29 + $0x20] sm:$0x1] }
  0xb5   : > { %v514_v46 = vadd.f32 %v4775_v57, %v492_v42  ;;  %v2880_v42 = vsel %vm4433_vm5, %v2878_v28, %v2879_v29  ;;  %v2665_v52 = vunpack.c.l.b16 %v2453_v36  ;;  %v2963_v58 = vunpack.c.l.b16 %v2877_v40  ;;  %v3957_v29 = vld [vmem:[%s4333_s29 + $0x24] sm:$0xe] }
  0xb6   : > { %v4832_v50 = vpop.f32.mrf.mxu0  ;;  %v3729_v24 = vrot.slane %v3707_v9, 9  ;;  %v1947_v25 = vrot.slane %v1945_v2, 4  ;;  %v1948_v26 = vrot.slane %v3709_v10, 5  ;;  %v502_v27 = vadd.f32 %v4775_v57, %v4800_v23 }
  0xb7   : > { %530 = vst [vmem:[%s4819_s28 + $0x60] sm:$0xff] %v514_v46  ;;  %v2474_v46 = vshll.u32 %v3886_v32, 16  ;;  %v2681_v14 = vpack.c.b16 %v2666_v55, %v2665_v52  ;;  %v3959_v32 = vld [vmem:[%s4333_s29 + $0x2c] sm:$0x1] }
  0xb8   : > { %v1949_v23 = vsel %vm4433_vm5, %v1947_v25, %v1948_v26  ;;  %v2886_v47 = vrot.slane %v3959_v32, 5  ;;  %v4102_v26 = vld [vmem:[%s4333_s29 + $0x24] sm:$0xff] }
  0xb9   : > { %v484_v59 = vpop.f32.mrf.mxu2  ;;  %v4879_v62 = vrot.slane %v2474_v46, 5  ;;  %v2885_v46 = vrot.slane %v2883_v30, 4 }
  0xba   : > { %v4839_v0 = vadd.f32 %v4775_v57, %v484_v59  ;;  %v2964_v59 = vunpack.c.l.b16 %v2880_v42  ;;  %v3979_v42 = vrot.slane %v3957_v29, 9 }
  0xbb   : > { %v477_v6 = vpop.f32.mrf.mxu1  ;;  %v2481_v18 = vor.u32 %v2480_v63, %v4879_v62 }
  0xbc   : > { %v4844_v11 = vadd.f32 %v4775_v57, %v477_v6  ;;  %v494_v12 = vpop.f32.mrf.mxu3  ;;  %v2041_v6 = vpack.c.b16 %v2026_v51, %v2025_v49  ;;  %v2979_v20 = vpack.c.b16 %v2964_v59, %v2963_v58  ;;  %v2028_v59 = vunpack.c.l.b16 %v1949_v23 }
  0xbd   : > { %v515_v16 = vadd.f32 %v4775_v57, %v494_v12  ;;  %v2482_v36 = vrot.slane %v2481_v18, 4  ;;  %v3712_v18 = vld [vmem:[%s4333_s29 + $0x2c] sm:$0x1] }
  0xbe   : > { %909 = vmatmul.bf16.gmra.mxu1 %v809_v60  ;;  %1210 = vmatmul.bf16.gmra.mxu2 %v1110_v61  ;;  %v4850_v22 = vpop.f32.mrf.mxu0  ;;  %v2467_v60 = vrot.slane %v2465_v39, 4  ;;  %v2470_v61 = vrot.slane %v2468_v45, 5  ;;  %v1946_v39 = vsel %vm4433_vm5, %v3729_v24, %v1945_v2 }
  0xbf   : > { %531 = vst [vmem:[%s4819_s28 + $0x68] sm:$0xff] %v515_v16  ;;  %v2027_v58 = vunpack.c.l.b16 %v1946_v39 }
  0xc1   : > { %v487_v31 = vpop.f32.mrf.mxu2  ;;  %1440 = vmatmul.bf16.gmra.mxu3 %v4076_v17  ;;  %1850 = vmatmul.bf16.gmra.mxu0 %v1750_v19  ;;  %v2471_v17 = vor.u32 %v2470_v61, %v2467_v60  ;;  %v2484_v19 = vshll.u32 %v3887_v4, 16  ;;  %v3711_v61 = vld [vmem:[%s4333_s29 + $0x28] sm:$0xf]  ;;  %v2887_v4 = vsel %vm4433_vm5, %v2885_v46, %v2886_v47  ;;  %v2042_v25 = vpack.c.b16 %v2028_v59, %v2027_v58  ;;  %v3962_v46 = vld [vmem:[%s4333_s29 + $0x38] sm:$0x1] }
  0xc2   : > { %v4856_v33 = vadd.f32 %v4775_v57, %v487_v31  ;;  %v3888_v31 = vld [vmem:[%s4333_s29 + $0x30] sm:$0xf] }
  0xc3   : > { %v479_v37 = vpop.f32.mrf.mxu1  ;;  %v2472_v35 = vrot.slane %v2471_v17, 4  ;;  %v2486_v40 = vrot.slane %v2484_v19, 5  ;;  %v2489_v45 = vshrl.u32 %v3888_v31, 16  ;;  %v2492_v49 = vshll.u32 %v3888_v31, 16  ;;  %v3710_v17 = vld [vmem:[%s4333_s29 + $0x24] sm:$0xe] }
  0xc4   : > { %v4871_v43 = vadd.f32 %v4775_v57, %v479_v37  ;;  %v497_v44 = vpop.f32.mrf.mxu3  ;;  %v3889_v37 = vld [vmem:[%s4333_s29 + $0x34] sm:$0xf]  ;;  %v3890_v19 = vld [vmem:[%s4333_s29 + $0x38] sm:$0x1]  ;;  %v3730_v32 = vrot.slane %v3710_v17, 9 }
  0xc5   : > { %v516_v48 = vadd.f32 %v4775_v57, %v497_v44  ;;  %v2498_v51 = vshll.u32 %v3889_v37, 16  ;;  %v2502_v52 = vshrl.u32 %v3889_v37, 16  ;;  %v2477_v60 = vsel %vm4427_vm4, %v2472_v35, %v4879_v62  ;;  %v3714_v17 = vld [vmem:[%s4333_s29 + $0x34] sm:$0xf] }
  0xc6   : > { %v469_v53 = vpop.f32.mrf.mxu0  ;;  %v2487_v63 = vsel %vm4427_vm4, %v2482_v36, %v2486_v40  ;;  %v2491_v2 = vrot.slane %v2489_v45, 4  ;;  %v2667_v15 = vunpack.c.l.b16 %v2477_v60  ;;  %v1955_v35 = vrot.slane %v3712_v18, 5  ;;  %v3960_v45 = vld [vmem:[%s4333_s29 + $0x30] sm:$0xe] }
  0xc7   : > { %532 = vst [vmem:[%s4819_s28 + $0x70] sm:$0xff] %v516_v48  ;;  %v4877_v56 = vadd.f32 %v4775_v57, %v469_v53  ;;  %v503_v53 = vadd.f32 %v4775_v57, %v4832_v50  ;;  %v2884_v50 = vsel %vm4433_vm5, %v3979_v42, %v2883_v30  ;;  %v4914_v9 = vrot.slane %v2498_v51, 5  ;;  %v3892_v51 = vld [vmem:[%s4333_s29 + $0x40] sm:$0xf] }
  0xc8   : > { %v2504_v62 = vrot.slane %v2502_v52, 4  ;;  %v2508_v36 = vshll.u32 %v3890_v19, 16  ;;  %v504_v40 = vadd.f32 %v4775_v57, %v4850_v22  ;;  %v3980_v58 = vrot.slane %v3960_v45, 9 }
  0xc9   : > { %v489_v1 = vpop.f32.mrf.mxu2  ;;  %v2893_v60 = vrot.slane %v3962_v46, 5 }
  0xca   : > { %v4883_v5 = vadd.f32 %v4775_v57, %v489_v1  ;;  %v2505_v30 = vor.u32 %v2504_v62, %v4914_v9 }
  0xcb   : > { %v875_v12 = vpop.f32.mrf.mxu1 }
  0xcc   : > { %v499_v16 = vpop.f32.mrf.mxu3  ;;  %v915_v34 = vadd.f32 %v875_v12, %v502_v27  ;;  %v1952_v12 = vrot.slane %v3711_v61, 5  ;;  %v3961_v27 = vld [vmem:[%s4333_s29 + $0x34] sm:$0xf] }
  0xcd   : > { %v517_v21 = vadd.f32 %v4775_v57, %v499_v16  ;;  %v2668_v16 = vunpack.c.l.b16 %v2487_v63  ;;  %v2890_v23 = vrot.slane %v3961_v27, 5  ;;  %v3964_v27 = vld [vmem:[%s4333_s29 + $0x40] sm:$0xf] }
  0xce   : > { %2113 = vmatmul.bf16.vlgmr.msra.gmra.mxu1 %v2041_v6  ;;  %2343 = vmatmul.bf16.vlgmr.msra.gmra.mxu2 %v4101_v8  ;;  %v1816_v28 = vpop.f32.mrf.mxu0  ;;  %v2494_v8 = vrot.slane %v2492_v49, 5  ;;  %v2506_v49 = vrot.slane %v2505_v30, 4  ;;  %v1959_v30 = vrot.slane %v3714_v17, 5 }
  0xcf   : > { %533 = vst [vmem:[%s4819_s28 + $0x78] sm:$0xff] %v517_v21  ;;  %v2966_v21 = vunpack.c.l.b16 %v2887_v4  ;;  %v2892_v59 = vrot.slane %v2890_v23, 4 }
  0xd0   : > { %v2495_v29 = vor.u32 %v2494_v8, %v2491_v2  ;;  %v2526_v2 = vshrl.u32 %v3892_v51, 16 }
  0xd1   : > { %v1176_v38 = vpop.f32.mrf.mxu2  ;;  %2753 = vmatmul.bf16.vlgmr.msra.gmra.mxu3 %v2681_v14  ;;  %3051 = vmatmul.bf16.vlgmr.msra.gmra.mxu0 %v2979_v20  ;;  %v2965_v20 = vunpack.c.l.b16 %v2884_v50 }
  0xd2   : > { %v1216_v44 = vadd.f32 %v1176_v38, %v915_v34  ;;  %v1954_v34 = vrot.slane %v1952_v12, 4  ;;  %v2682_v38 = vpack.c.b16 %v2668_v16, %v2667_v15  ;;  %v2891_v15 = vsel %vm4433_vm5, %v3980_v58, %v2890_v23 }
  0xd3   : > { %v877_v48 = vpop.f32.mrf.mxu1  ;;  %v2980_v39 = vpack.c.b16 %v2966_v21, %v2965_v20 }
  0xd4   : > { %v1406_v54 = vpop.f32.mrf.mxu3  ;;  %v916_v10 = vadd.f32 %v877_v48, %v503_v53  ;;  %v2496_v48 = vrot.slane %v2495_v29, 4  ;;  %v1953_v53 = vsel %vm4433_vm5, %v3730_v32, %v1952_v12 }
  0xd5   : > { %v1446_v55 = vadd.f32 %v1406_v54, %v1216_v44  ;;  %v3891_v44 = vld [vmem:[%s4333_s29 + $0x3c] sm:$0xf]  ;;  %v1956_v54 = vsel %vm4433_vm5, %v1954_v34, %v1955_v35  ;;  %v2029_v8 = vunpack.c.l.b16 %v1953_v53  ;;  %v4103_v35 = vld [vmem:[%s4333_s29 + $0x30] sm:$0xff] }
  0xd6   : > { %v1818_v1 = vpop.f32.mrf.mxu0  ;;  %v2513_v22 = vshrl.u32 %v3891_v44, 16  ;;  %v2516_v63 = vshll.u32 %v3891_v44, 16  ;;  %v2030_v62 = vunpack.c.l.b16 %v1956_v54 }
  0xd7   : > { %v1856_v6 = vadd.f32 %v1816_v28, %v1446_v55  ;;  %v2510_v55 = vrot.slane %v2508_v36, 5  ;;  %v3713_v36 = vld [vmem:[%s4333_s29 + $0x30] sm:$0xe] }
  0xd8   : > { %v2515_v18 = vrot.slane %v2513_v22, 4  ;;  %v2518_v19 = vrot.slane %v2516_v63, 5  ;;  %v2043_v29 = vpack.c.b16 %v2030_v62, %v2029_v8  ;;  %v3894_v63 = vld [vmem:[%s4333_s29 + $0x48] sm:$0xf] }
  0xd9   : > { %v1178_v14 = vpop.f32.mrf.mxu2  ;;  %1872 = vst [vmem:[%s4819_s28] sm:$0xff] %v1856_v6  ;;  %v2540_v17 = vshll.u32 %v3894_v63, 16 }
  0xda   : > { %v1217_v24 = vadd.f32 %v1178_v14, %v916_v10  ;;  %v2501_v10 = vsel %vm4427_vm4, %v2496_v48, %v4914_v9  ;;  %v2511_v14 = vsel %vm4427_vm4, %v2506_v49, %v2510_v55  ;;  %v2528_v9 = vrot.slane %v2526_v2, 4  ;;  %v3965_v48 = vld [vmem:[%s4333_s29 + $0x44] sm:$0x1]  ;;  %v3895_v2 = vld [vmem:[%s4333_s29 + $0x4c] sm:$0xf] }
  0xdb   : > { %v880_v28 = vpop.f32.mrf.mxu1 }
  0xdc   : > { %v1408_v31 = vpop.f32.mrf.mxu3  ;;  %v917_v52 = vadd.f32 %v880_v28, %v504_v40  ;;  %v3715_v40 = vld [vmem:[%s4333_s29 + $0x38] sm:$0x1] }
  0xdd   : > { %v1447_v37 = vadd.f32 %v1408_v31, %v1217_v24  ;;  %v3893_v24 = vld [vmem:[%s4333_s29 + $0x44] sm:$0x1]  ;;  %v2967_v31 = vunpack.c.l.b16 %v2891_v15  ;;  %v1962_v54 = vrot.slane %v3715_v40, 5  ;;  %v3716_v40 = vld [vmem:[%s4333_s29 + $0x3c] sm:$0xe] }
  0xde   : > { %2118 = vmatmul.bf16.gmra.mxu1 %v2042_v25  ;;  %2348 = vmatmul.bf16.gmra.mxu2 %v4102_v26  ;;  %v1821_v42 = vpop.f32.mrf.mxu0  ;;  %v2669_v25 = vunpack.c.l.b16 %v2501_v10  ;;  %v2670_v26 = vunpack.c.l.b16 %v2511_v14 }
  0xdf   : > { %v1857_v47 = vadd.f32 %v1818_v1, %v1447_v37  ;;  %v2522_v1 = vshll.u32 %v3892_v51, 16  ;;  %v2519_v37 = vor.u32 %v2518_v19, %v2515_v18  ;;  %v3731_v51 = vrot.slane %v3713_v36, 9 }
  0xe0   : > { %v2683_v46 = vpack.c.b16 %v2670_v26, %v2669_v25  ;;  %v2546_v18 = vshll.u32 %v3895_v2, 16  ;;  %v2550_v19 = vshrl.u32 %v3895_v2, 16  ;;  %v3717_v26 = vld [vmem:[%s4333_s29 + $0x40] sm:$0xf] }
  0xe1   : > { %v1181_v57 = vpop.f32.mrf.mxu2  ;;  %2758 = vmatmul.bf16.gmra.mxu3 %v2682_v38  ;;  %1873 = vst [vmem:[%s4819_s28 + $0x8] sm:$0xff] %v1857_v47  ;;  %3056 = vmatmul.bf16.gmra.mxu0 %v2980_v39  ;;  %v4945_v20 = vrot.slane %v2522_v1, 5  ;;  %v2532_v39 = vshll.u32 %v3893_v24, 16  ;;  %v3963_v47 = vld [vmem:[%s4333_s29 + $0x3c] sm:$0xe]  ;;  %v1966_v36 = vrot.slane %v3717_v26, 5 }
  0xe2   : > { %v1218_v61 = vadd.f32 %v1181_v57, %v917_v52  ;;  %v1961_v52 = vrot.slane %v1959_v30, 4  ;;  %v2520_v57 = vrot.slane %v2519_v37, 4  ;;  %v3896_v37 = vld [vmem:[%s4333_s29 + $0x50] sm:$0x1] }
  0xe3   : > { %v882_v50 = vpop.f32.mrf.mxu1  ;;  %v2529_v38 = vor.u32 %v2528_v9, %v4945_v20  ;;  %v2534_v58 = vrot.slane %v2532_v39, 5 }
  0xe4   : > { %v918_v4 = vadd.f32 %v882_v50, %v4877_v56  ;;  %v1411_v6 = vpop.f32.mrf.mxu3  ;;  %v2894_v56 = vsel %vm4433_vm5, %v2892_v59, %v2893_v60  ;;  %v2525_v8 = vsel %vm4427_vm4, %v2520_v57, %v4945_v20  ;;  %v1968_v57 = vrot.slane %v1966_v36, 4 }
  0xe5   : > { %v1448_v12 = vadd.f32 %v1411_v6, %v1218_v61  ;;  %v2968_v32 = vunpack.c.l.b16 %v2894_v56  ;;  %v2530_v22 = vrot.slane %v2529_v38, 4  ;;  %v2900_v61 = vrot.slane %v3965_v48, 5 }
  0xe6   : > { %v1823_v16 = vpop.f32.mrf.mxu0  ;;  %v1963_v6 = vsel %vm4433_vm5, %v1961_v52, %v1962_v54  ;;  %v2671_v24 = vunpack.c.l.b16 %v2525_v8 }
  0xe7   : > { %v1858_v21 = vadd.f32 %v1821_v42, %v1448_v12  ;;  %v2897_v42 = vrot.slane %v3964_v27, 5  ;;  %v2981_v53 = vpack.c.b16 %v2968_v32, %v2967_v31  ;;  %v2535_v10 = vsel %vm4427_vm4, %v2530_v22, %v2534_v58 }
  0xe8   : > { %v2537_v12 = vshrl.u32 %v3894_v63, 16  ;;  %v2542_v31 = vrot.slane %v2540_v17, 5  ;;  %v4978_v32 = vrot.slane %v2546_v18, 5  ;;  %v3897_v63 = vld [vmem:[%s4333_s29 + $0x54] sm:$0xf] }
  0xe9   : > { %v1183_v28 = vpop.f32.mrf.mxu2  ;;  %1874 = vst [vmem:[%s4819_s28 + $0x10] sm:$0xff] %v1858_v21  ;;  %v2899_v60 = vrot.slane %v2897_v42, 4  ;;  %v2032_v21 = vunpack.c.l.b16 %v1963_v6  ;;  %v2564_v17 = vshll.u32 %v3897_v63, 16 }
  0xea   : > { %v1219_v34 = vadd.f32 %v1183_v28, %v918_v4  ;;  %v1960_v4 = vsel %vm4433_vm5, %v3731_v51, %v1959_v30  ;;  %v2672_v28 = vunpack.c.l.b16 %v2535_v10 }
  0xeb   : > { %v885_v23 = vpop.f32.mrf.mxu1  ;;  %v2901_v15 = vsel %vm4433_vm5, %v2899_v60, %v2900_v61  ;;  %v2031_v20 = vunpack.c.l.b16 %v1960_v4 }
  0xec   : > { %v919_v44 = vadd.f32 %v885_v23, %v4792_v13  ;;  %v1413_v45 = vpop.f32.mrf.mxu3  ;;  %v3981_v13 = vrot.slane %v3963_v47, 9  ;;  %v2970_v30 = vunpack.c.l.b16 %v2901_v15  ;;  %v4104_v23 = vld [vmem:[%s4333_s29 + $0x3c] sm:$0xff]  ;;  %v3967_v47 = vld [vmem:[%s4333_s29 + $0x4c] sm:$0xf] }
  0xed   : > { %v1449_v49 = vadd.f32 %v1413_v45, %v1219_v34  ;;  %v2552_v34 = vrot.slane %v2550_v19, 4  ;;  %v2044_v39 = vpack.c.b16 %v2032_v21, %v2031_v20  ;;  %v2684_v45 = vpack.c.b16 %v2672_v28, %v2671_v24  ;;  %v3720_v28 = vld [vmem:[%s4333_s29 + $0x4c] sm:$0xf] }
  0xee   : > { %2123 = vmatmul.bf16.gmra.mxu1 %v2043_v29  ;;  %2353 = vmatmul.bf16.gmra.mxu2 %v4103_v35  ;;  %v1826_v55 = vpop.f32.mrf.mxu0  ;;  %v2898_v14 = vsel %vm4433_vm5, %v3981_v13, %v2897_v42  ;;  %v3718_v42 = vld [vmem:[%s4333_s29 + $0x44] sm:$0x1]  ;;  %v3966_v13 = vld [vmem:[%s4333_s29 + $0x48] sm:$0xe]  ;;  %v2904_v60 = vrot.slane %v3967_v47, 5 }
  0xef   : > { %v4957_v59 = vadd.f32 %v1823_v16, %v1449_v49  ;;  %v2969_v29 = vunpack.c.l.b16 %v2898_v14  ;;  %v2553_v52 = vor.u32 %v2552_v34, %v4978_v32  ;;  %v1969_v22 = vrot.slane %v3718_v42, 5  ;;  %v3721_v42 = vld [vmem:[%s4333_s29 + $0x50] sm:$0x1] }
  0xf0   : > { %v3982_v10 = vrot.slane %v3966_v13, 9  ;;  %v2561_v14 = vshrl.u32 %v3897_v63, 16  ;;  %v2906_v15 = vrot.slane %v2904_v60, 4 }
  0xf1   : > { %v1186_v1 = vpop.f32.mrf.mxu2  ;;  %2763 = vmatmul.bf16.gmra.mxu3 %v2683_v46  ;;  %3061 = vmatmul.bf16.gmra.mxu0 %v2981_v53  ;;  %v2982_v46 = vpack.c.b16 %v2970_v30, %v2969_v29  ;;  %v2556_v53 = vshll.u32 %v3896_v37, 16  ;;  %v2554_v2 = vrot.slane %v2553_v52, 4  ;;  %v1970_v8 = vsel %vm4433_vm5, %v1968_v57, %v1969_v22 }
  0xf2   : > { %v1220_v50 = vadd.f32 %v1186_v1, %v919_v44  ;;  %v1973_v37 = vrot.slane %v3720_v28, 5 }
  0xf3   : > { %v887_v62 = vpop.f32.mrf.mxu1 }
  0xf4   : > { %v920_v56 = vadd.f32 %v887_v62, %v4824_v41  ;;  %v1416_v16 = vpop.f32.mrf.mxu3  ;;  %v2539_v41 = vrot.slane %v2537_v12, 4  ;;  %v2558_v62 = vrot.slane %v2556_v53, 5  ;;  %v1975_v22 = vrot.slane %v1973_v37, 4 }
  0xf5   : > { %v1450_v9 = vadd.f32 %v1416_v16, %v1220_v50  ;;  %v3898_v50 = vld [vmem:[%s4333_s29 + $0x58] sm:$0xf] }
  0xf6   : > { %v1828_v25 = vpop.f32.mrf.mxu0  ;;  %v2543_v51 = vor.u32 %v2542_v31, %v2539_v41  ;;  %v2570_v18 = vshll.u32 %v3898_v50, 16  ;;  %v2574_v19 = vshrl.u32 %v3898_v50, 16  ;;  %v2559_v29 = vsel %vm4427_vm4, %v2554_v2, %v2558_v62  ;;  %v3900_v50 = vld [vmem:[%s4333_s29 + $0x60] sm:$0xf] }
  0xf7   : > { %v4976_v27 = vadd.f32 %v1826_v55, %v1450_v9  ;;  %v3732_v55 = vrot.slane %v3716_v40, 9  ;;  %v2563_v41 = vrot.slane %v2561_v14, 4  ;;  %v3719_v40 = vld [vmem:[%s4333_s29 + $0x48] sm:$0xe]  ;;  %v3901_v14 = vld [vmem:[%s4333_s29 + $0x64] sm:$0xf] }
  0xf8   : > { %v2544_v1 = vrot.slane %v2543_v51, 4  ;;  %v3970_v51 = vld [vmem:[%s4333_s29 + $0x58] sm:$0xf]  ;;  %v3733_v57 = vrot.slane %v3719_v40, 9  ;;  %v2598_v28 = vshrl.u32 %v3901_v14, 16 }
  0xf9   : > { %v1188_v35 = vpop.f32.mrf.mxu2  ;;  %v1967_v6 = vsel %vm4433_vm5, %v3732_v55, %v1966_v36  ;;  %v2576_v36 = vrot.slane %v2574_v19, 4  ;;  %v2585_v19 = vshrl.u32 %v3900_v50, 16 }
  0xfa   : > { %v1221_v38 = vadd.f32 %v1188_v35, %v920_v56  ;;  %v2033_v24 = vunpack.c.l.b16 %v1967_v6  ;;  %v2549_v26 = vsel %vm4427_vm4, %v2544_v1, %v4978_v32  ;;  %v2566_v35 = vrot.slane %v2564_v17, 5  ;;  %v3971_v6 = vld [vmem:[%s4333_s29 + $0x5c] sm:$0x1] }
  0xfb   : > { %v890_v44 = vpop.f32.mrf.mxu1  ;;  %v5010_v32 = vrot.slane %v2570_v18, 5  ;;  %v2911_v1 = vrot.slane %v3970_v51, 5  ;;  %v2587_v40 = vrot.slane %v2585_v19, 4 }
  0xfc   : > { %v921_v48 = vadd.f32 %v890_v44, %v4844_v11  ;;  %v1418_v49 = vpop.f32.mrf.mxu3  ;;  %v3968_v11 = vld [vmem:[%s4333_s29 + $0x50] sm:$0x1]  ;;  %v3899_v44 = vld [vmem:[%s4333_s29 + $0x5c] sm:$0x1]  ;;  %v2567_v53 = vor.u32 %v2566_v35, %v2563_v41 }
  0xfd   : > { %v1451_v54 = vadd.f32 %v1418_v49, %v1221_v38  ;;  %v2907_v56 = vrot.slane %v3968_v11, 5  ;;  %v4105_v49 = vld [vmem:[%s4333_s29 + $0x48] sm:$0xff]  ;;  %v2580_v13 = vshll.u32 %v3899_v44, 16 }
  0xfe   : > { %2128 = vmatmul.bf16.gmra.mxu1 %v2044_v39  ;;  %2358 = vmatmul.bf16.gmra.mxu2 %v4104_v23  ;;  %v1831_v58 = vpop.f32.mrf.mxu0  ;;  %v2673_v39 = vunpack.c.l.b16 %v2549_v26  ;;  %v2674_v23 = vunpack.c.l.b16 %v2559_v29  ;;  %v2594_v26 = vshll.u32 %v3901_v14, 16 }
  0xff   : > { %v4988_v61 = vadd.f32 %v1828_v25, %v1451_v54  ;;  %v2034_v25 = vunpack.c.l.b16 %v1970_v8  ;;  %v2908_v31 = vsel %vm4433_vm5, %v2906_v15, %v2907_v56  ;;  %v2577_v54 = vor.u32 %v2576_v36, %v5010_v32  ;;  %v761_v8 = vld [vmem:[%s4819_s28 + $0x40] sm:$0xff] }
 0x100   : > { %v2685_v63 = vpack.c.b16 %v2674_v23, %v2673_v39  ;;  %v1974_v56 = vsel %vm4433_vm5, %v3733_v57, %v1973_v37  ;;  %v2582_v17 = vrot.slane %v2580_v13, 5  ;;  %v3723_v23 = vld [vmem:[%s4333_s29 + $0x58] sm:$0xf]  ;;  %v5040_v44 = vrot.slane %v2594_v26, 5 }
 0x101   : > { %v1191_v4 = vpop.f32.mrf.mxu2  ;;  %2768 = vmatmul.bf16.gmra.mxu3 %v2684_v45  ;;  %3066 = vmatmul.bf16.gmra.mxu0 %v2982_v46  ;;  %v2972_v46 = vunpack.c.l.b16 %v2908_v31 }
 0x102   : > { %v1222_v12 = vadd.f32 %v1191_v4, %v921_v48  ;;  %v2045_v48 = vpack.c.b16 %v2034_v25, %v2033_v24  ;;  %v3969_v4 = vld [vmem:[%s4333_s29 + $0x54] sm:$0xe]  ;;  %v2588_v25 = vshll.u32 %v3900_v50, 16 }
 0x103   : > { %v892_v16 = vpop.f32.mrf.mxu1 }
 0x104   : > { %v922_v9 = vadd.f32 %v892_v16, %v4871_v43  ;;  %v1421_v20 = vpop.f32.mrf.mxu3  ;;  %v2905_v43 = vsel %vm4433_vm5, %v3982_v10, %v2904_v60  ;;  %v2568_v10 = vrot.slane %v2567_v53, 4  ;;  %v1980_v53 = vrot.slane %v3723_v23, 5 }
 0x105   : > { %v1452_v21 = vadd.f32 %v1421_v20, %v1222_v12  ;;  %v2971_v45 = vunpack.c.l.b16 %v2905_v43  ;;  %v2578_v12 = vrot.slane %v2577_v54, 4  ;;  %v2913_v20 = vrot.slane %v2911_v1, 4 }
 0x106   : > { %v1833_v30 = vpop.f32.mrf.mxu0  ;;  %v2035_v43 = vunpack.c.l.b16 %v1974_v56  ;;  %v2573_v35 = vsel %vm4427_vm4, %v2568_v10, %v5010_v32  ;;  %v3974_v10 = vld [vmem:[%s4333_s29 + $0x68] sm:$0x1] }
 0x107   : > { %v5008_v34 = vadd.f32 %v1831_v58, %v1452_v21  ;;  %v1976_v58 = vrot.slane %v3721_v42, 5  ;;  %v2983_v11 = vpack.c.b16 %v2972_v46, %v2971_v45  ;;  %v2914_v21 = vrot.slane %v3971_v6, 5  ;;  %v3902_v46 = vld [vmem:[%s4333_s29 + $0x68] sm:$0x1] }
 0x108   : > { %v2583_v37 = vsel %vm4427_vm4, %v2578_v12, %v2582_v17  ;;  %v2590_v42 = vrot.slane %v2588_v25, 5  ;;  %v2600_v45 = vrot.slane %v2598_v28, 4  ;;  %v3903_v25 = vld [vmem:[%s4333_s29 + $0x6c] sm:$0xf]  ;;  %v3904_v28 = vld [vmem:[%s4333_s29 + $0x70] sm:$0xf] }
 0x109   : > { %v1193_v38 = vpop.f32.mrf.mxu2  ;;  %v1977_v16 = vsel %vm4433_vm5, %v1975_v22, %v1976_v58  ;;  %v2915_v39 = vsel %vm4433_vm5, %v2913_v20, %v2914_v21  ;;  %v4106_v22 = vld [vmem:[%s4333_s29 + $0x54] sm:$0xff]  ;;  %v2612_v23 = vshll.u32 %v3903_v25, 16 }
 0x10a   : > { %v1223_v47 = vadd.f32 %v1193_v38, %v922_v9  ;;  %v3983_v9 = vrot.slane %v3969_v4, 9  ;;  %v2036_v31 = vunpack.c.l.b16 %v1977_v16  ;;  %v3722_v58 = vld [vmem:[%s4333_s29 + $0x54] sm:$0xe]  ;;  %v2591_v13 = vor.u32 %v2590_v42, %v2587_v40 }
 0x10b   : > { %v895_v52 = vpop.f32.mrf.mxu1  ;;  %v3734_v14 = vrot.slane %v3722_v58, 9  ;;  %v2618_v40 = vshll.u32 %v3904_v28, 16  ;;  %v2622_v42 = vshrl.u32 %v3904_v28, 16 }
 0x10c   : > { %v1423_v55 = vpop.f32.mrf.mxu3  ;;  %v923_v15 = vadd.f32 %v895_v52, %v761_v8  ;;  %v2912_v38 = vsel %vm4433_vm5, %v3983_v9, %v2911_v1  ;;  %v2046_v52 = vpack.c.b16 %v2036_v31, %v2035_v43  ;;  %v3724_v1 = vld [vmem:[%s4333_s29 + $0x5c] sm:$0x1]  ;;  %v3972_v8 = vld [vmem:[%s4333_s29 + $0x60] sm:$0xe] }
 0x10d   : > { %v1453_v60 = vadd.f32 %v1423_v55, %v1223_v47  ;;  %v2675_v47 = vunpack.c.l.b16 %v2573_v35  ;;  %v2973_v54 = vunpack.c.l.b16 %v2912_v38  ;;  %v2974_v55 = vunpack.c.l.b16 %v2915_v39 }
 0x10e   : > { %2133 = vmatmul.bf16.gmra.mxu1 %v2045_v48  ;;  %2363 = vmatmul.bf16.gmra.mxu2 %v4105_v49  ;;  %v1836_v2 = vpop.f32.mrf.mxu0  ;;  %v2676_v48 = vunpack.c.l.b16 %v2583_v37  ;;  %v3973_v49 = vld [vmem:[%s4333_s29 + $0x64] sm:$0xf]  ;;  %v1983_v16 = vrot.slane %v3724_v1, 5 }
 0x10f   : > { %v5022_v62 = vadd.f32 %v1833_v30, %v1453_v60  ;;  %v2601_v60 = vor.u32 %v2600_v45, %v5040_v44  ;;  %v2984_v56 = vpack.c.b16 %v2974_v55, %v2973_v54  ;;  %v2614_v55 = vrot.slane %v2612_v23, 5  ;;  %v4107_v1 = vld [vmem:[%s4333_s29 + $0x60] sm:$0xff] }
 0x110   : > { %v2686_v6 = vpack.c.b16 %v2676_v48, %v2675_v47 }
 0x111   : > { %v1196_v18 = vpop.f32.mrf.mxu2  ;;  %2773 = vmatmul.bf16.gmra.mxu3 %v2685_v63  ;;  %3071 = vmatmul.bf16.gmra.mxu0 %v2983_v11  ;;  %v2604_v63 = vshll.u32 %v3902_v46, 16  ;;  %v2602_v19 = vrot.slane %v2601_v60, 4  ;;  %v3905_v60 = vld [vmem:[%s4333_s29 + $0x74] sm:$0x1] }
 0x112   : > { %v1224_v24 = vadd.f32 %v1196_v18, %v923_v15  ;;  %v1982_v15 = vrot.slane %v1980_v53, 4  ;;  %v2592_v18 = vrot.slane %v2591_v13, 4 }
 0x113   : > { %v897_v29 = vpop.f32.mrf.mxu1  ;;  %v2606_v9 = vrot.slane %v2604_v63, 5 }
 0x114   : > { %v924_v30 = vadd.f32 %v897_v29, %v4839_v0  ;;  %v1426_v41 = vpop.f32.mrf.mxu3  ;;  %v2597_v43 = vsel %vm4427_vm4, %v2592_v18, %v5040_v44 }
 0x115   : > { %v1454_v36 = vadd.f32 %v1426_v41, %v1224_v24  ;;  %v2921_v24 = vrot.slane %v3974_v10, 5  ;;  %v1984_v41 = vsel %vm4433_vm5, %v1982_v15, %v1983_v16  ;;  %v2607_v35 = vsel %vm4427_vm4, %v2602_v19, %v2606_v9 }
 0x116   : > { %v1838_v0 = vpop.f32.mrf.mxu0  ;;  %v2038_v46 = vunpack.c.l.b16 %v1984_v41  ;;  %v2677_v47 = vunpack.c.l.b16 %v2597_v43  ;;  %v2628_v15 = vshll.u32 %v3905_v60, 16  ;;  %v4108_v60 = vld [vmem:[%s4333_s29 + $0x6c] sm:$0xff] }
 0x117   : > { %v5042_v32 = vadd.f32 %v1836_v2, %v1454_v36  ;;  %v2918_v2 = vrot.slane %v3973_v49, 5  ;;  %v2609_v36 = vshrl.u32 %v3903_v25, 16  ;;  %v3726_v49 = vld [vmem:[%s4333_s29 + $0x64] sm:$0xf]  ;;  %v3975_v25 = vld [vmem:[%s4333_s29 + $0x6c] sm:$0xe] }
 0x118   : > { %v1987_v13 = vrot.slane %v3726_v49, 5 }
 0x119   : > { %v1198_v51 = vpop.f32.mrf.mxu2  ;;  %v2920_v21 = vrot.slane %v2918_v2, 4  ;;  %v2611_v54 = vrot.slane %v2609_v36, 4 }
 0x11a   : > { %v1225_v57 = vadd.f32 %v1198_v51, %v924_v30  ;;  %v1981_v30 = vsel %vm4433_vm5, %v3734_v14, %v1980_v53  ;;  %v1989_v18 = vrot.slane %v1987_v13, 4 }
 0x11b   : > { %v900_v11 = vpop.f32.mrf.mxu1  ;;  %v2922_v38 = vsel %vm4433_vm5, %v2920_v21, %v2921_v24  ;;  %v2037_v44 = vunpack.c.l.b16 %v1981_v30  ;;  %v765_v21 = vld [vmem:[%s4819_s28 + $0x60] sm:$0xff] }
 0x11c   : > { %v925_v50 = vadd.f32 %v900_v11, %v4856_v33  ;;  %v1428_v4 = vpop.f32.mrf.mxu3  ;;  %v3984_v33 = vrot.slane %v3972_v8, 9  ;;  %v3976_v8 = vld [vmem:[%s4333_s29 + $0x70] sm:$0xf] }
 0x11d   : > { %v1455_v12 = vadd.f32 %v1428_v4, %v1225_v57  ;;  %v2620_v57 = vrot.slane %v2618_v40, 5  ;;  %v2047_v11 = vpack.c.b16 %v2038_v46, %v2037_v44 }
 0x11e   : > { %2138 = vmatmul.bf16.gmra.mxu1 %v2046_v52  ;;  %2368 = vmatmul.bf16.gmra.mxu2 %v4106_v22  ;;  %v1841_v17 = vpop.f32.mrf.mxu0  ;;  %v2919_v37 = vsel %vm4433_vm5, %v3984_v33, %v2918_v2  ;;  %v2678_v52 = vunpack.c.l.b16 %v2607_v35  ;;  %v2624_v22 = vrot.slane %v2622_v42, 4  ;;  %v3725_v2 = vld [vmem:[%s4333_s29 + $0x60] sm:$0xe]  ;;  %v2925_v33 = vrot.slane %v3976_v8, 5 }
 0x11f   : > { %v5053_v20 = vadd.f32 %v1838_v0, %v1455_v12  ;;  %v2975_v53 = vunpack.c.l.b16 %v2919_v37  ;;  %v2615_v12 = vor.u32 %v2614_v55, %v2611_v54  ;;  %v2630_v35 = vrot.slane %v2628_v15, 5 }
 0x120   : > { %v2625_v14 = vor.u32 %v2624_v22, %v2620_v57  ;;  %v3985_v37 = vrot.slane %v3975_v25, 9 }
 0x121   : > { %v1201_v26 = vpop.f32.mrf.mxu2  ;;  %2778 = vmatmul.bf16.gmra.mxu3 %v2686_v6  ;;  %3076 = vmatmul.bf16.gmra.mxu0 %v2984_v56  ;;  %v2687_v6 = vpack.c.b16 %v2678_v52, %v2677_v47  ;;  %v766_v52 = vld [vmem:[%s4819_s28 + $0x68] sm:$0xff] }
 0x122   : > { %v1226_v29 = vadd.f32 %v1201_v26, %v925_v50  ;;  %v3727_v50 = vld [vmem:[%s4333_s29 + $0x68] sm:$0x1]  ;;  %v3977_v26 = vld [vmem:[%s4333_s29 + $0x74] sm:$0x1] }
 0x123   : > { %v902_v31 = vpop.f32.mrf.mxu1  ;;  %v1990_v19 = vrot.slane %v3727_v50, 5 }
 0x124   : > { %v926_v39 = vadd.f32 %v902_v31, %v4883_v5  ;;  %v1431_v0 = vpop.f32.mrf.mxu3  ;;  %v2976_v5 = vunpack.c.l.b16 %v2922_v38  ;;  %v2626_v31 = vrot.slane %v2625_v14, 4  ;;  %v2927_v38 = vrot.slane %v2925_v33, 4 }
 0x125   : > { %v1456_v45 = vadd.f32 %v1431_v0, %v1226_v29  ;;  %v2616_v29 = vrot.slane %v2615_v12, 4  ;;  %v1991_v43 = vsel %vm4433_vm5, %v1989_v18, %v1990_v19 }
 0x126   : > { %v1843_v48 = vpop.f32.mrf.mxu0  ;;  %v2985_v56 = vpack.c.b16 %v2976_v5, %v2975_v53  ;;  %v2631_v46 = vsel %vm4427_vm4, %v2626_v31, %v2630_v35 }
 0x127   : > { %v5072_v51 = vadd.f32 %v1841_v17, %v1456_v45  ;;  %v3735_v17 = vrot.slane %v3725_v2, 9  ;;  %v2040_v45 = vunpack.c.l.b16 %v1991_v43  ;;  %v2621_v44 = vsel %vm4427_vm4, %v2616_v29, %v2620_v57  ;;  %v1992_v29 = vld [vmem:[%s4819_s28] sm:$0xff] }
 0x128   : > { %v2679_v55 = vunpack.c.l.b16 %v2621_v44  ;;  %v2680_v22 = vunpack.c.l.b16 %v2631_v46 }
 0x129   : > { %v1203_v58 = vpop.f32.mrf.mxu2  ;;  %v1988_v41 = vsel %vm4433_vm5, %v3735_v17, %v1987_v13  ;;  %v768_v17 = vld [vmem:[%s4819_s28 + $0x78] sm:$0xff] }
 0x12a   : > { %v1227_v63 = vadd.f32 %v1203_v58, %v926_v39  ;;  %v2928_v39 = vrot.slane %v3977_v26, 5  ;;  %v2039_v42 = vunpack.c.l.b16 %v1988_v41  ;;  %v2688_v2 = vpack.c.b16 %v2680_v22, %v2679_v55 }
 0x12b   : > { %v905_v4 = vpop.f32.mrf.mxu1 }
 0x12c   : > { %v1433_v10 = vpop.f32.mrf.mxu3  ;;  %v927_v28 = vadd.f32 %v905_v4, %v765_v21  ;;  %v2929_v49 = vsel %vm4433_vm5, %v2927_v38, %v2928_v39  ;;  %v2048_v3 = vpack.c.b16 %v2040_v45, %v2039_v42  ;;  %v767_v4 = vld [vmem:[%s4819_s28 + $0x70] sm:$0xff]  ;;  %v1993_v39 = vld [vmem:[%s4819_s28 + $0x8] sm:$0xff] }
 0x12d   : > { %v1457_v16 = vadd.f32 %v1433_v10, %v1227_v63  ;;  %v2978_v57 = vunpack.c.l.b16 %v2929_v49 }
 0x12e   : > { %2143 = vmatmul.bf16.gmra.mxu1 %v2047_v11  ;;  %2373 = vmatmul.bf16.gmra.mxu2 %v4107_v1  ;;  %v1846_v9 = vpop.f32.mrf.mxu0 }
 0x12f   : > { %v5080_v24 = vadd.f32 %v1843_v48, %v1457_v16  ;;  %v2926_v48 = vsel %vm4433_vm5, %v3985_v37, %v2925_v33 }
 0x130   : > { %v2977_v58 = vunpack.c.l.b16 %v2926_v48  ;;  %v1994_v48 = vld [vmem:[%s4819_s28 + $0x10] sm:$0xff] }
 0x131   : > { %v1206_v30 = vpop.f32.mrf.mxu2  ;;  %2783 = vmatmul.bf16.gmra.mxu3 %v2687_v6  ;;  %3081 = vmatmul.bf16.gmra.mxu0 %v2985_v56 }
 0x132   : > { %v1228_v36 = vadd.f32 %v1206_v30, %v927_v28  ;;  %v2986_v7 = vpack.c.b16 %v2978_v57, %v2977_v58 }
 0x133   : > { %v907_v0 = vpop.f32.mrf.mxu1 }
 0x134   : > { %v1436_v23 = vpop.f32.mrf.mxu3  ;;  %v928_v5 = vadd.f32 %v907_v0, %v766_v52 }
 0x135   : > { %v1458_v40 = vadd.f32 %v1436_v23, %v1228_v36 }
 0x136   : > { %v1848_v47 = vpop.f32.mrf.mxu0 }
 0x137   : > { %v5097_v53 = vadd.f32 %v1846_v9, %v1458_v40 }
 0x139   : > { %v1208_v54 = vpop.f32.mrf.mxu2 }
 0x13a   : > { %v1229_v13 = vadd.f32 %v1208_v54, %v928_v5 }
 0x13b   : > { %v910_v63 = vpop.f32.mrf.mxu1 }
 0x13c   : > { %v1438_v11 = vpop.f32.mrf.mxu3  ;;  %v929_v8 = vadd.f32 %v910_v63, %v767_v4 }
 0x13d   : > { %v1459_v1 = vadd.f32 %v1438_v11, %v1229_v13 }
 0x13e   : > { %2148 = vmatmul.bf16.gmra.mxu1 %v2048_v3  ;;  %2378 = vmatmul.bf16.gmra.mxu2 %v4108_v60  ;;  %v1851_v50 = vpop.f32.mrf.mxu0 }
 0x13f   : > { %v5101_v6 = vadd.f32 %v1848_v47, %v1459_v1 }
 0x141   : > { %v1211_v10 = vpop.f32.mrf.mxu2  ;;  %2788 = vmatmul.bf16.gmra.mxu3 %v2688_v2  ;;  %3086 = vmatmul.bf16.gmra.mxu0 %v2986_v7 }
 0x142   : > { %v1230_v12 = vadd.f32 %v1211_v10, %v929_v8 }
 0x143   : > { %v912_v14 = vpop.f32.mrf.mxu1 }
 0x144   : > { %v1441_v15 = vpop.f32.mrf.mxu3  ;;  %v930_v19 = vadd.f32 %v912_v14, %v768_v17 }
 0x145   : > { %v1460_v56 = vadd.f32 %v1441_v15, %v1230_v12 }
 0x146   : > { %v1853_v16 = vpop.f32.mrf.mxu0 }
 0x147   : > { %v5104_v18 = vadd.f32 %v1851_v50, %v1460_v56 }
 0x149   : > { %v1213_v9 = vpop.f32.mrf.mxu2 }
 0x14a   : > { %v1231_v33 = vadd.f32 %v1213_v9, %v930_v19 }
 0x14b   : > { %v2114_v21 = vpop.f32.mrf.mxu1 }
 0x14c   : > { %v1443_v25 = vpop.f32.mrf.mxu3  ;;  %v2154_v41 = vadd.f32 %v2114_v21, %v1992_v29 }
 0x14d   : > { %v1461_v26 = vadd.f32 %v1443_v25, %v1231_v33 }
 0x14e   : > { %v3052_v28 = vpop.f32.mrf.mxu0 }
 0x14f   : > { %v5107_v30 = vadd.f32 %v1853_v16, %v1461_v26 }
 0x151   : > { %v2344_v43 = vpop.f32.mrf.mxu2 }
 0x152   : > { %v2384_v31 = vadd.f32 %v2344_v43, %v2154_v41 }
 0x153   : > { %v2116_v35 = vpop.f32.mrf.mxu1 }
 0x154   : > { %v2754_v36 = vpop.f32.mrf.mxu3  ;;  %v2155_v23 = vadd.f32 %v2116_v35, %v1993_v39 }
 0x155   : > { %v2794_v37 = vadd.f32 %v2754_v36, %v2384_v31 }
 0x156   : > { %v3054_v38 = vpop.f32.mrf.mxu0 }
 0x157   : > { %v3092_v0 = vadd.f32 %v3052_v28, %v2794_v37 }
 0x159   : > { %v2346_v40 = vpop.f32.mrf.mxu2  ;;  %3108 = vst [vmem:[%s4819_s28] sm:$0xff] %v3092_v0  ;;  %v3162_v54 = vmul.f32 %v3092_v0, %v3092_v0 }
 0x15a   : > { %v2385_v42 = vadd.f32 %v2346_v40, %v2155_v23 }
 0x15b   : > { %v2119_v45 = vpop.f32.mrf.mxu1 }
 0x15c   : > { %v2756_v44 = vpop.f32.mrf.mxu3  ;;  %v2156_v52 = vadd.f32 %v2119_v45, %v1994_v48 }
 0x15d   : > { %v2795_v46 = vadd.f32 %v2756_v44, %v2385_v42 }
 0x15e   : > { %v3057_v47 = vpop.f32.mrf.mxu0 }
 0x15f   : > { %v3093_v49 = vadd.f32 %v3054_v38, %v2795_v46 }
 0x161   : > { %v2349_v5 = vpop.f32.mrf.mxu2  ;;  %3109 = vst [vmem:[%s4819_s28 + $0x8] sm:$0xff] %v3093_v49  ;;  %v3140_v55 = vadd.f32 %v3093_v49, %v3092_v0  ;;  %v3163_v22 = vmul.f32 %v3093_v49, %v3093_v49 }
 0x162   : > { %v2386_v58 = vadd.f32 %v2349_v5, %v2156_v52 }
 0x163   : > { %v2121_v57 = vpop.f32.mrf.mxu1  ;;  %v3178_v13 = vadd.f32 %v3163_v22, %v3162_v54 }
 0x164   : > { %v2759_v3 = vpop.f32.mrf.mxu3  ;;  %v2157_v1 = vadd.f32 %v2121_v57, %v4957_v59 }
 0x165   : > { %v2796_v60 = vadd.f32 %v2759_v3, %v2386_v58 }
 0x166   : > { %v3059_v63 = vpop.f32.mrf.mxu0 }
 0x167   : > { %v3094_v11 = vadd.f32 %v3057_v47, %v2796_v60 }
 0x169   : > { %v2351_v2 = vpop.f32.mrf.mxu2  ;;  %3110 = vst [vmem:[%s4819_s28 + $0x10] sm:$0xff] %v3094_v11  ;;  %v3141_v7 = vadd.f32 %v3140_v55, %v3094_v11  ;;  %v3164_v50 = vmul.f32 %v3094_v11, %v3094_v11 }
 0x16a   : > { %v2387_v4 = vadd.f32 %v2351_v2, %v2157_v1 }
 0x16b   : > { %v2124_v8 = vpop.f32.mrf.mxu1  ;;  %v3179_v10 = vadd.f32 %v3178_v13, %v3164_v50 }
 0x16c   : > { %v2761_v12 = vpop.f32.mrf.mxu3  ;;  %v2158_v16 = vadd.f32 %v2124_v8, %v4976_v27 }
 0x16d   : > { %v2797_v14 = vadd.f32 %v2761_v12, %v2387_v4 }
 0x16e   : > { %v3062_v15 = vpop.f32.mrf.mxu0 }
 0x16f   : > { %v3095_v56 = vadd.f32 %v3059_v63, %v2797_v14 }
 0x171   : > { %v2354_v17 = vpop.f32.mrf.mxu2  ;;  %3111 = vst [vmem:[%s4819_s28 + $0x18] sm:$0xff] %v3095_v56  ;;  %v3142_v19 = vadd.f32 %v3141_v7, %v3095_v56  ;;  %v3165_v9 = vmul.f32 %v3095_v56, %v3095_v56 }
 0x172   : > { %v2388_v33 = vadd.f32 %v2354_v17, %v2158_v16 }
 0x173   : > { %v2126_v59 = vpop.f32.mrf.mxu1  ;;  %v3180_v21 = vadd.f32 %v3179_v10, %v3165_v9 }
 0x174   : > { %v2764_v25 = vpop.f32.mrf.mxu3  ;;  %v2159_v41 = vadd.f32 %v2126_v59, %v4988_v61 }
 0x175   : > { %v2798_v26 = vadd.f32 %v2764_v25, %v2388_v33 }
 0x176   : > { %v3064_v28 = vpop.f32.mrf.mxu0 }
 0x177   : > { %v3096_v29 = vadd.f32 %v3062_v15, %v2798_v26 }
 0x179   : > { %v2356_v43 = vpop.f32.mrf.mxu2  ;;  %3112 = vst [vmem:[%s4819_s28 + $0x20] sm:$0xff] %v3096_v29  ;;  %v3143_v31 = vadd.f32 %v3142_v19, %v3096_v29  ;;  %v3166_v35 = vmul.f32 %v3096_v29, %v3096_v29 }
 0x17a   : > { %v2389_v36 = vadd.f32 %v2356_v43, %v2159_v41 }
 0x17b   : > { %v2129_v27 = vpop.f32.mrf.mxu1  ;;  %v3181_v37 = vadd.f32 %v3180_v21, %v3166_v35 }
 0x17c   : > { %v2766_v38 = vpop.f32.mrf.mxu3  ;;  %v2160_v40 = vadd.f32 %v2129_v27, %v5008_v34 }
 0x17d   : > { %v2799_v39 = vadd.f32 %v2766_v38, %v2389_v36 }
 0x17e   : > { %v3067_v0 = vpop.f32.mrf.mxu0 }
 0x17f   : > { %v3097_v23 = vadd.f32 %v3064_v28, %v2799_v39 }
 0x181   : > { %v2359_v42 = vpop.f32.mrf.mxu2  ;;  %3113 = vst [vmem:[%s4819_s28 + $0x28] sm:$0xff] %v3097_v23  ;;  %v3144_v45 = vadd.f32 %v3143_v31, %v3097_v23  ;;  %v3167_v44 = vmul.f32 %v3097_v23, %v3097_v23 }
 0x182   : > { %v2390_v46 = vadd.f32 %v2359_v42, %v2160_v40 }
 0x183   : > { %v2131_v61 = vpop.f32.mrf.mxu1  ;;  %v3182_v47 = vadd.f32 %v3181_v37, %v3167_v44 }
 0x184   : > { %v2769_v48 = vpop.f32.mrf.mxu3  ;;  %v2161_v54 = vadd.f32 %v2131_v61, %v5022_v62 }
 0x185   : > { %v2800_v49 = vadd.f32 %v2769_v48, %v2390_v46 }
 0x186   : > { %v3069_v52 = vpop.f32.mrf.mxu0 }
 0x187   : > { %v3098_v5 = vadd.f32 %v3067_v0, %v2800_v49 }
 0x189   : > { %v2361_v55 = vpop.f32.mrf.mxu2  ;;  %3114 = vst [vmem:[%s4819_s28 + $0x30] sm:$0xff] %v3098_v5  ;;  %v3145_v22 = vadd.f32 %v3144_v45, %v3098_v5  ;;  %v3168_v58 = vmul.f32 %v3098_v5, %v3098_v5 }
 0x18a   : > { %v2391_v57 = vadd.f32 %v2361_v55, %v2161_v54 }
 0x18b   : > { %v2134_v34 = vpop.f32.mrf.mxu1  ;;  %v3183_v13 = vadd.f32 %v3182_v47, %v3168_v58 }
 0x18c   : > { %v2771_v3 = vpop.f32.mrf.mxu3  ;;  %v2162_v1 = vadd.f32 %v2134_v34, %v5042_v32 }
 0x18d   : > { %v2801_v60 = vadd.f32 %v2771_v3, %v2391_v57 }
 0x18e   : > { %v3072_v63 = vpop.f32.mrf.mxu0 }
 0x18f   : > { %v3099_v11 = vadd.f32 %v3069_v52, %v2801_v60 }
 0x191   : > { %v2364_v2 = vpop.f32.mrf.mxu2  ;;  %3115 = vst [vmem:[%s4819_s28 + $0x38] sm:$0xff] %v3099_v11  ;;  %v3146_v7 = vadd.f32 %v3145_v22, %v3099_v11  ;;  %v3169_v50 = vmul.f32 %v3099_v11, %v3099_v11 }
 0x192   : > { %v2392_v4 = vadd.f32 %v2364_v2, %v2162_v1 }
 0x193   : > { %v2136_v62 = vpop.f32.mrf.mxu1  ;;  %v3184_v8 = vadd.f32 %v3183_v13, %v3169_v50 }
 0x194   : > { %v2774_v10 = vpop.f32.mrf.mxu3  ;;  %v2163_v56 = vadd.f32 %v2136_v62, %v5053_v20 }
 0x195   : > { %v2802_v12 = vadd.f32 %v2774_v10, %v2392_v4 }
 0x196   : > { %v3074_v14 = vpop.f32.mrf.mxu0 }
 0x197   : > { %v3100_v15 = vadd.f32 %v3072_v63, %v2802_v12 }
 0x199   : > { %v2366_v16 = vpop.f32.mrf.mxu2  ;;  %3116 = vst [vmem:[%s4819_s28 + $0x40] sm:$0xff] %v3100_v15  ;;  %v3147_v17 = vadd.f32 %v3146_v7, %v3100_v15  ;;  %v3170_v19 = vmul.f32 %v3100_v15, %v3100_v15 }
 0x19a   : > { %v2393_v9 = vadd.f32 %v2366_v16, %v2163_v56 }
 0x19b   : > { %v2139_v32 = vpop.f32.mrf.mxu1  ;;  %v3185_v33 = vadd.f32 %v3184_v8, %v3170_v19 }
 0x19c   : > { %v2776_v59 = vpop.f32.mrf.mxu3  ;;  %v2164_v28 = vadd.f32 %v2139_v32, %v5072_v51 }
 0x19d   : > { %v2803_v21 = vadd.f32 %v2776_v59, %v2393_v9 }
 0x19e   : > { %v3077_v25 = vpop.f32.mrf.mxu0 }
 0x19f   : > { %v3101_v26 = vadd.f32 %v3074_v14, %v2803_v21 }
 0x1a1   : > { %v2369_v29 = vpop.f32.mrf.mxu2  ;;  %3117 = vst [vmem:[%s4819_s28 + $0x48] sm:$0xff] %v3101_v26  ;;  %v3148_v41 = vadd.f32 %v3147_v17, %v3101_v26  ;;  %v3171_v43 = vmul.f32 %v3101_v26, %v3101_v26 }
 0x1a2   : > { %v2394_v31 = vadd.f32 %v2369_v29, %v2164_v28 }
 0x1a3   : > { %v2141_v20 = vpop.f32.mrf.mxu1  ;;  %v3186_v35 = vadd.f32 %v3185_v33, %v3171_v43 }
 0x1a4   : > { %v2779_v36 = vpop.f32.mrf.mxu3  ;;  %v2165_v39 = vadd.f32 %v2141_v20, %v5080_v24 }
 0x1a5   : > { %v2804_v27 = vadd.f32 %v2779_v36, %v2394_v31 }
 0x1a6   : > { %v3079_v37 = vpop.f32.mrf.mxu0 }
 0x1a7   : > { %v3102_v38 = vadd.f32 %v3077_v25, %v2804_v27 }
 0x1a9   : > { %v2371_v0 = vpop.f32.mrf.mxu2  ;;  %3118 = vst [vmem:[%s4819_s28 + $0x50] sm:$0xff] %v3102_v38  ;;  %v3149_v23 = vadd.f32 %v3148_v41, %v3102_v38  ;;  %v3172_v40 = vmul.f32 %v3102_v38, %v3102_v38 }
 0x1aa   : > { %v2395_v42 = vadd.f32 %v2371_v0, %v2165_v39 }
 0x1ab   : > { %v2144_v51 = vpop.f32.mrf.mxu1  ;;  %v3187_v45 = vadd.f32 %v3186_v35, %v3172_v40 }
 0x1ac   : > { %v2781_v44 = vpop.f32.mrf.mxu3  ;;  %v2166_v47 = vadd.f32 %v2144_v51, %v5097_v53 }
 0x1ad   : > { %v2805_v46 = vadd.f32 %v2781_v44, %v2395_v42 }
 0x1ae   : > { %v3082_v48 = vpop.f32.mrf.mxu0 }
 0x1af   : > { %v3103_v61 = vadd.f32 %v3079_v37, %v2805_v46 }
 0x1b1   : > { %v2374_v49 = vpop.f32.mrf.mxu2  ;;  %3119 = vst [vmem:[%s4819_s28 + $0x58] sm:$0xff] %v3103_v61  ;;  %v3150_v52 = vadd.f32 %v3149_v23, %v3103_v61  ;;  %v3173_v5 = vmul.f32 %v3103_v61, %v3103_v61 }
 0x1b2   : > { %v2396_v54 = vadd.f32 %v2374_v49, %v2166_v47 }
 0x1b3   : > { %v2146_v24 = vpop.f32.mrf.mxu1  ;;  %v3188_v55 = vadd.f32 %v3187_v45, %v3173_v5 }
 0x1b4   : > { %v2784_v22 = vpop.f32.mrf.mxu3  ;;  %v2167_v34 = vadd.f32 %v2146_v24, %v5101_v6 }
 0x1b5   : > { %v2806_v58 = vadd.f32 %v2784_v22, %v2396_v54 }
 0x1b6   : > { %v3084_v53 = vpop.f32.mrf.mxu0 }
 0x1b7   : > { %v3104_v57 = vadd.f32 %v3082_v48, %v2806_v58 }
 0x1b9   : > { %v2376_v13 = vpop.f32.mrf.mxu2  ;;  %3120 = vst [vmem:[%s4819_s28 + $0x60] sm:$0xff] %v3104_v57  ;;  %v3151_v3 = vadd.f32 %v3150_v52, %v3104_v57  ;;  %v3174_v60 = vmul.f32 %v3104_v57, %v3104_v57 }
 0x1ba   : > { %v2397_v63 = vadd.f32 %v2376_v13, %v2167_v34 }
 0x1bb   : > { %v2149_v11 = vpop.f32.mrf.mxu1  ;;  %v3189_v1 = vadd.f32 %v3188_v55, %v3174_v60 }
 0x1bc   : > { %v2786_v2 = vpop.f32.mrf.mxu3  ;;  %v2168_v4 = vadd.f32 %v2149_v11, %v5104_v18 }
 0x1bd   : > { %v2807_v7 = vadd.f32 %v2786_v2, %v2397_v63 }
 0x1be   : > { %v3087_v15 = vpop.f32.mrf.mxu0 }
 0x1bf   : > { %v3105_v50 = vadd.f32 %v3084_v53, %v2807_v7 }
 0x1c1   : > { %v2379_v62 = vpop.f32.mrf.mxu2  ;;  %3121 = vst [vmem:[%s4819_s28 + $0x68] sm:$0xff] %v3105_v50  ;;  %v3152_v8 = vadd.f32 %v3151_v3, %v3105_v50  ;;  %v3175_v10 = vmul.f32 %v3105_v50, %v3105_v50 }
 0x1c2   : > { %v2398_v12 = vadd.f32 %v2379_v62, %v2168_v4 }
 0x1c3   : > { %v3190_v6 = vadd.f32 %v3189_v1, %v3175_v10  ;;  %v2151_v56 = vpop.f32.mrf.mxu1 }
 0x1c4   : > { %v2789_v14 = vpop.f32.mrf.mxu3  ;;  %v2169_v19 = vadd.f32 %v2151_v56, %v5107_v30 }
 0x1c5   : > { %v2808_v16 = vadd.f32 %v2789_v14, %v2398_v12 }
 0x1c6   : > { %v3089_v26 = vpop.f32.mrf.mxu0 }
 0x1c7   : > { %v3106_v17 = vadd.f32 %v3087_v15, %v2808_v16 }
 0x1c9   : > { %v2381_v9 = vpop.f32.mrf.mxu2  ;;  %3122 = vst [vmem:[%s4819_s28 + $0x70] sm:$0xff] %v3106_v17  ;;  %v3153_v32 = vadd.f32 %v3152_v8, %v3106_v17  ;;  %v3176_v33 = vmul.f32 %v3106_v17, %v3106_v17 }
 0x1ca   : > { %v2399_v18 = vadd.f32 %v2381_v9, %v2169_v19 }
 0x1cb   : > { %v3191_v59 = vadd.f32 %v3190_v6, %v3176_v33 }
 0x1cc   : > { %v2791_v21 = vpop.f32.mrf.mxu3 }
 0x1cd   : > { %v2809_v25 = vadd.f32 %v2791_v21, %v2399_v18 }
 0x1cf   : > { %v3107_v28 = vadd.f32 %v3089_v26, %v2809_v25 }
 0x1d1   : > { %3123 = vst [vmem:[%s4819_s28 + $0x78] sm:$0xff] %v3107_v28  ;;  %v3154_v29 = vadd.f32 %v3153_v32, %v3107_v28  ;;  %v3177_v41 = vmul.f32 %v3107_v28, %v3107_v28 }
 0x1d3   : > { %v3155_v43 = vrot.slane %v3154_v29, 4  ;;  %v3192_v31 = vadd.f32 %v3191_v59, %v3177_v41 }
 0x1d5   : > { %v3156_v20 = vadd.f32 %v3155_v43, %v3154_v29  ;;  %v3193_v30 = vrot.slane %v3192_v31, 4 }
 0x1d7   : > { %v3157_v35 = vrot.slane %v3156_v20, 2  ;;  %v3194_v36 = vadd.f32 %v3193_v30, %v3192_v31 }
 0x1d9   : > { %v3158_v27 = vadd.f32 %v3157_v35, %v3156_v20  ;;  %v3195_v37 = vrot.slane %v3194_v36, 2 }
 0x1db   : > { %v3159_v38 = vrot.slane %v3158_v27, 1  ;;  %v3196_v39 = vadd.f32 %v3195_v37, %v3194_v36 }
 0x1dd   : > { %v3160_v0 = vadd.f32 %v3159_v38, %v3158_v27  ;;  %v3197_v23 = vrot.slane %v3196_v39, 1 }
 0x1df   : > { %3161 = vst [vmem:[%s275_s6] sm:$0x1] %v3160_v0  ;;  %v3198_v40 = vadd.f32 %v3197_v23, %v3196_v39 }
 0x1e1   : > { %3199 = vst [vmem:[%s282_s8] sm:$0x1] %v3198_v40 }
 0x1e2 PF: > { %s16_s22 = sadd.s32 1, %s4237_s22   ;;  %s5174_s18 = smov %s4229_s20 }
 0x1e3   : > { %p13_p8 = scmp.ge.s32.totalorder %s16_s22, 6   ;;  %s5175_s19 = smov %s4233_s21 }
 0x1e4   : > { %s5176_s20 = smov %s5179_s23  ;;  %s5177_s21 = smov %s5183_s24 }
 0x1e5   :  { %15 = sbr.rel (!%p13_p8) target bundleno = 3 (0x3), region = 97 }

</bundles_post_ra>
